<compile_context>
chip_gen: v7x
topology: tpu7x:2x2x1
jax: 0.10.0
libtpu: 0.0.40
codegen_flags: <defaults>
</compile_context>

<pallas_src>
import functools

import jax
import jax.numpy as jnp
from jax.experimental import pallas as pl
from jax.experimental.pallas import tpu as pltpu

VOCAB = (33, 5, 3, 4, 2, 3)                  # per-field vocab sizes (module spec)
NUM_FIELDS = len(VOCAB)
_offs, _o = [], 0
for _v in VOCAB:
    _offs.append(_o)
    _o += _v
OFFSETS = tuple(_offs)
VTOT = _o                                    # 50


def _round_up(x, m):
    return ((x + m - 1) // m) * m


# ----------------------------- Pallas kernel --------------------------------
def gcn_kernel(nodes_ref, src_ref, dst_ref,
               ew1_ref, b1_ref, w2_ref, b2_ref,
               wg1_ref, bg1_ref, gamma_ref, beta_ref,
               wg2_ref, bg2_ref, wo_ref, bo_ref,
               o_ref, *, n_per_batch, tile):
    f32, bf16 = jnp.float32, jnp.bfloat16
    N, T = n_per_batch, tile
    NN = nodes_ref.shape[1]                  # T * N stacked nodes
    Ep = src_ref.shape[1]                    # padded edge count (multiple of 128)
    Vp = ew1_ref.shape[0]                    # padded vocab (128)
    Bp = o_ref.shape[2]                      # padded graph-score lane width (128)

    nodes = nodes_ref[0]                     # [NN, 8] int32 (6 fields, graph id, pad)
    gid = nodes[:, 6:7]                      # [NN, 1] graph id in [0, T*B)

    # ---- fused embedding + W1: multi-hot [NN,Vp] @ (Emb·W1)  (bf16 MXU) ----
    iota_v = jax.lax.broadcasted_iota(jnp.int32, (NN, Vp), 1)
    onehot = (iota_v == (nodes[:, 0:1] + OFFSETS[0])).astype(bf16)
    for i in range(1, NUM_FIELDS):           # static 6-iter loop, disjoint offsets
        onehot = onehot + (iota_v == (nodes[:, i:i + 1] + OFFSETS[i])).astype(bf16)
    t1 = jnp.dot(onehot, ew1_ref[...], preferred_element_type=f32)      # [NN, Hp]

    # ---- block-diagonal (A + I) built in-kernel from offset edge indices ----
    src = src_ref[0]                         # [Ep, 1] int32 (sentinel NN for padding)
    dst = dst_ref[0]                         # [1, Ep] int32
    oh_dst = (jax.lax.broadcasted_iota(jnp.int32, (NN, Ep), 0) == dst).astype(bf16)
    oh_srcT = (jax.lax.broadcasted_iota(jnp.int32, (Ep, NN), 1) == src).astype(bf16)
    adj = jnp.dot(oh_dst, oh_srcT, preferred_element_type=f32)          # [NN, NN]
    eye = (jax.lax.broadcasted_iota(jnp.int32, (NN, NN), 0)
           == jax.lax.broadcasted_iota(jnp.int32, (NN, NN), 1)).astype(f32)
    a = adj + eye
    deg = jnp.sum(a, axis=1, keepdims=True)                             # [NN, 1]
    dinv = jax.lax.rsqrt(deg)
    a_rows = (dinv * a).astype(bf16)         # row scaling pre-folded; column scaling on inputs

    def agg(y):   # Â y = (dinv ⊙ rows)(A+I) (dinv ⊙ y)   bf16 MXU, f32 accumulation
        return jnp.dot(a_rows, (dinv * y).astype(bf16), preferred_element_type=f32)

    # ---- GCNConv1 / GCNConv2 (transform-then-aggregate) + sigmoid ----
    h = jax.nn.sigmoid(agg(t1) + b1_ref[...])                           # [NN, Hp]
    t2 = jnp.dot(h.astype(bf16), w2_ref[...], preferred_element_type=f32)
    h2 = jax.nn.sigmoid(agg(t2) + b2_ref[...])                          # [NN, Dp]

    # ---- gate_nn: Linear -> BatchNorm1d (per-mini-batch training stats) -> ReLU ----
    g0 = jnp.dot(h2.astype(bf16), wg1_ref[...], preferred_element_type=f32) + bg1_ref[...]

    # tile (mini-batch) membership one-hots built from iota (no transposes)
    d_tn = (jax.lax.broadcasted_iota(jnp.int32, (T, NN), 1)
            - jax.lax.broadcasted_iota(jnp.int32, (T, NN), 0) * N)
    tile_oh = jnp.logical_and(d_tn >= 0, d_tn < N).astype(f32)          # [T, NN]
    d_nt = (jax.lax.broadcasted_iota(jnp.int32, (NN, T), 0)
            - jax.lax.broadcasted_iota(jnp.int32, (NN, T), 1) * N)
    tile_ohT = jnp.logical_and(d_nt >= 0, d_nt < N).astype(f32)         # [NN, T]

    inv_n = 1.0 / N
    mean_t = jnp.dot(tile_oh, g0, preferred_element_type=f32) * inv_n   # [T, Dp]
    mean_n = jnp.dot(tile_ohT, mean_t, preferred_element_type=f32)      # [NN, Dp]
    c = g0 - mean_n
    var_t = jnp.dot(tile_oh, c * c, preferred_element_type=f32) * inv_n  # biased (train BN)
    var_n = jnp.dot(tile_ohT, var_t, preferred_element_type=f32)
    g = jnp.maximum(c * jax.lax.rsqrt(var_n + 1e-5) * gamma_ref[...] + beta_ref[...], 0.0)

    # ---- width-1 heads as VPU row reduces (no degenerate MXU matmuls) ----
    gate = jnp.sum(g * wg2_ref[...], axis=1, keepdims=True) + bg2_ref[...]   # [NN, 1]
    s = jnp.sum(h2 * wo_ref[...], axis=1, keepdims=True)                     # [NN, 1] = h2 @ wo

    # ---- segment softmax over graphs (graph ids already globally offset per tile) ----
    mt = (jax.lax.broadcasted_iota(jnp.int32, (NN, Bp), 1) == gid).astype(f32)  # [NN, Bp]
    masked = jnp.where(mt > 0.0, gate, jnp.float32(-1e30))
    mx = jnp.max(masked, axis=0, keepdims=True)                          # [1, Bp] per-graph max
    mx_node = jnp.sum(mt * mx, axis=1, keepdims=True)                    # [NN, 1]
    e = jnp.exp(gate - mx_node)
    denom = jnp.sum(mt * e, axis=0, keepdims=True)                       # [1, Bp]
    denom_node = jnp.sum(mt * denom, axis=1, keepdims=True)              # [NN, 1]
    wts = e / denom_node

    # ---- pooling with graph_linear folded in: per-graph sum of wts * (h2 @ wo) ----
    out = jnp.sum(mt * (wts * s), axis=0, keepdims=True) + bo_ref[...]   # [1, Bp]
    o_ref[0] = jax.nn.sigmoid(out)


# ------------------------------- wrapper -------------------------------------
def _pad2(x, rows, cols, dtype=jnp.float32):
    out = jnp.zeros((rows, cols), dtype)
    return out.at[:x.shape[0], :x.shape[1]].set(x.astype(dtype))


@functools.partial(jax.jit, static_argnames=("num_graphs", "tile"))
def gcn_forward(params, x_int, edge_index, batch, num_graphs, tile=8):
    """Batched forward over NB independent mini-batches.

    x_int:      [NB, N, 6]  int32 categorical node features
    edge_index: [NB, 2, E]  int32 (row 0 = src, row 1 = dst)
    batch:      [NB, N]     int32 graph id per node in [0, num_graphs)
    returns:    [NB, num_graphs, 1] f32 sigmoid graph scores
    """
    NB, N, _ = x_int.shape
    E = edge_index.shape[2]
    B = num_graphs

    # stack T mini-batches per grid step (largest divisor of NB that is <= tile)
    T = max(1, min(tile, NB))
    while NB % T:
        T -= 1
    NBg = NB // T
    NN = T * N
    Etot = T * E
    Ep = _round_up(max(Etot, 1), 128)
    Bp = 128
    assert T * B <= Bp, "too many graphs per stacked tile"
    assert VTOT <= 128

    in_embd = params["emb"][0].shape[1]
    F0 = NUM_FIELDS * in_embd
    H = params["w1"].shape[1]
    D = params["w2"].shape[1]
    Vp = 128
    Hp, Dp = _round_up(H, 128), _round_up(D, 128)

    # combined block-diagonal embedding table, folded with W1:  Emb·W1  [Vp, Hp] bf16
    emb_tab = jnp.zeros((Vp, F0), jnp.float32)
    for i in range(NUM_FIELDS):
        emb_tab = emb_tab.at[OFFSETS[i]:OFFSETS[i] + VOCAB[i],
                             i * in_embd:(i + 1) * in_embd].set(params["emb"][i])
    ew1 = _pad2(emb_tab @ params["w1"].astype(jnp.float32), Vp, Hp, jnp.bfloat16)

    b1 = _pad2(params["b1"], 1, Hp)
    w2 = _pad2(params["w2"], Hp, Dp, jnp.bfloat16)
    b2 = _pad2(params["b2"], 1, Dp)
    wg1 = _pad2(params["wg1"], Dp, Dp, jnp.bfloat16)
    bg1 = _pad2(params["bg1"], 1, Dp)
    gamma = _pad2(params["gamma"], 1, Dp)
    beta = _pad2(params["beta"], 1, Dp)
    wg2row = _pad2(params["wg2"].T, 1, Dp)          # row vectors: heads run on the VPU
    bg2 = params["bg2"].astype(jnp.float32).reshape(1, 1)
    worow = _pad2(params["wo"].T, 1, Dp)
    bo = params["bo"].astype(jnp.float32).reshape(1, 1)

    # node slab: fields + globally-offset graph id, one DMA per grid step
    xg = x_int.astype(jnp.int32).reshape(NBg, T, N, NUM_FIELDS)
    gid = (batch.astype(jnp.int32).reshape(NBg, T, N)
           + (jnp.arange(T, dtype=jnp.int32) * B)[None, :, None])
    nodes = jnp.concatenate(
        [xg, gid[..., None], jnp.zeros((NBg, T, N, 1), jnp.int32)],
        axis=-1).reshape(NBg, NN, NUM_FIELDS + 2)

    # edges: node indices offset per tile -> block-diagonal adjacency; pad with sentinel NN
    ei = edge_index.astype(jnp.int32).reshape(NBg, T, 2, E)
    ei = ei + (jnp.arange(T, dtype=jnp.int32) * N)[None, :, None, None]
    src = ei[:, :, 0, :].reshape(NBg, Etot)
    dst = ei[:, :, 1, :].reshape(NBg, Etot)
    src_col = jnp.full((NBg, Ep), NN, jnp.int32).at[:, :Etot].set(src).reshape(NBg, Ep, 1)
    dst_row = jnp.full((NBg, Ep), NN, jnp.int32).at[:, :Etot].set(dst).reshape(NBg, 1, Ep)

    kernel = functools.partial(gcn_kernel, n_per_batch=N, tile=T)

    def per_step(shape):
        return pl.BlockSpec(shape, lambda b: (b,) + (0,) * (len(shape) - 1))

    def shared(shape):
        return pl.BlockSpec(shape, lambda b: (0,) * len(shape))

    in_specs = [
        per_step((1, NN, NUM_FIELDS + 2)),   # node fields + graph ids
        per_step((1, Ep, 1)),                # edge src (column form)
        per_step((1, 1, Ep)),                # edge dst (row form)
        shared((Vp, Hp)),                    # Emb·W1 (bf16)
        shared((1, Hp)),                     # b1
        shared((Hp, Dp)), shared((1, Dp)),   # GCNConv2
        shared((Dp, Dp)), shared((1, Dp)),   # gate Linear 1
        shared((1, Dp)), shared((1, Dp)),    # BN gamma / beta
        shared((1, Dp)), shared((1, 1)),     # gate Linear 2 (row vector) / bias
        shared((1, Dp)), shared((1, 1)),     # graph_linear (row vector) / bias
    ]

    out = pl.pallas_call(
        kernel,
        out_shape=jax.ShapeDtypeStruct((NBg, 1, Bp), jnp.float32),
        grid=(NBg,),
        in_specs=in_specs,
        out_specs=pl.BlockSpec((1, 1, Bp), lambda b: (b, 0, 0)),
        compiler_params=pltpu.CompilerParams(dimension_semantics=("parallel",)),
    )(nodes, src_col, dst_row, ew1, b1, w2, b2, wg1, bg1, gamma, beta,
      wg2row, bg2, worow, bo)

    return out[:, 0, :T * B].reshape(NB, B, 1)


# ------------------------- pure-JAX reference (f32) ---------------------------
def reference_forward(params, x_int, edge_index, batch, num_graphs):
    N = x_int.shape[0]
    x = jnp.concatenate([params["emb"][i][x_int[:, i]] for i in range(NUM_FIELDS)],
                        axis=1).astype(jnp.float32)
    a = jnp.zeros((N, N), jnp.float32).at[edge_index[1], edge_index[0]].add(1.0)
    a = a + jnp.eye(N, dtype=jnp.float32)
    dinv = jax.lax.rsqrt(jnp.sum(a, axis=1))
    a_hat = a * dinv[:, None] * dinv[None, :]
    h = jax.nn.sigmoid(a_hat @ (x @ params["w1"]) + params["b1"])
    h2 = jax.nn.sigmoid(a_hat @ (h @ params["w2"]) + params["b2"])
    g = h2 @ params["wg1"] + params["bg1"]
    mean = jnp.mean(g, axis=0, keepdims=True)
    var = jnp.mean((g - mean) ** 2, axis=0, keepdims=True)
    g = jnp.maximum((g - mean) * jax.lax.rsqrt(var + 1e-5) * params["gamma"]
                    + params["beta"], 0.0)
    gate = g @ params["wg2"] + params["bg2"]
    onehot = (batch[:, None] == jnp.arange(num_graphs)[None, :]).astype(jnp.float32)
    mx = jnp.max(jnp.where(onehot > 0, gate, -1e30), axis=0, keepdims=True)
    e = jnp.exp(gate - jnp.sum(onehot * mx, axis=1, keepdims=True))
    denom = jnp.sum(onehot * e, axis=0, keepdims=True)
    wts = e / jnp.sum(onehot * denom, axis=1, keepdims=True)
    pooled = onehot.T @ (wts * h2)
    return jax.nn.sigmoid(pooled @ params["wo"] + params["bo"])


# ---------------------------- param construction -----------------------------
def make_params(key, in_embd, layer_embd, out_embd):
    ks = jax.random.split(key, 16)
    f0 = NUM_FIELDS * in_embd
    p = {}
    p["emb"] = [jax.random.normal(ks[i], (VOCAB[i], in_embd), jnp.float32)
                for i in range(NUM_FIELDS)]
    p["w1"] = jax.random.normal(ks[6], (f0, layer_embd), jnp.float32) * 0.2
    p["b1"] = jnp.zeros((1, layer_embd), jnp.float32)
    p["w2"] = jax.random.normal(ks[7], (layer_embd, out_embd), jnp.float32) * 0.2
    p["b2"] = jnp.zeros((1, out_embd), jnp.float32)
    p["wg1"] = jax.random.normal(ks[8], (out_embd, out_embd), jnp.float32) * 0.2
    p["bg1"] = jax.random.normal(ks[9], (1, out_embd), jnp.float32) * 0.1
    p["gamma"] = jnp.ones((1, out_embd), jnp.float32)
    p["beta"] = jnp.zeros((1, out_embd), jnp.float32)
    p["wg2"] = jax.random.normal(ks[10], (out_embd, 1), jnp.float32) * 0.2
    p["bg2"] = jnp.zeros((1, 1), jnp.float32)
    p["wo"] = jax.random.normal(ks[11], (out_embd, 1), jnp.float32) * 0.2
    p["bo"] = jnp.zeros((1, 1), jnp.float32)
    return p


if __name__ == "__main__":
    key = jax.random.PRNGKey(0)
    in_embd, layer_embd, out_embd = 4, 32, 16
    NB, B, N = 16, 2, 16              # 16 mini-batches, 2 graphs each, 16 nodes (8/graph)
    # tile=8 -> grid of 2 steps, each step stacks 8*16 = 128 nodes (full MXU M dim)

    k_params, k_x = jax.random.split(key)
    params = make_params(k_params, in_embd, layer_embd, out_embd)

    vocab = jnp.array(VOCAB, jnp.int32)
    x_int = (jax.random.randint(k_x, (NB, N, NUM_FIELDS), 0, 1_000_000)
             % vocab[None, None, :]).astype(jnp.int32)

    # Ring edges within each graph, both directions (edge_type unused by forward).
    src, dst = [], []
    for g in range(B):
        base = g * (N // B)
        for i in range(N // B):
            u = base + i
            v = base + (i + 1) % (N // B)
            src += [u, v]
            dst += [v, u]
    edge_one = jnp.array([src, dst], jnp.int32)                   # [2, E]
    edge_index = jnp.tile(edge_one[None], (NB, 1, 1))             # [NB, 2, E]
    batch = jnp.tile(jnp.repeat(jnp.arange(B, dtype=jnp.int32), N // B)[None],
                     (NB, 1))                                     # [NB, N]

    out = gcn_forward(params, x_int, edge_index, batch, num_graphs=B, tile=8)
    out = jax.block_until_ready(out)
    assert out.shape == (NB, B, 1)
    assert bool(jnp.all(jnp.isfinite(out)))

    # Numerical validation against the plain-JAX f32 dense-Â reference.
    ref = jnp.stack([reference_forward(params, x_int[b], edge_index[b], batch[b], B)
                     for b in range(NB)])
    max_err = float(jnp.max(jnp.abs(out - ref)))
    assert max_err < 5e-2, max_err   # bf16 transform + aggregation matmuls => small tolerance

    # TODO(synk): dropout arg of the module is unused in forward; edge_type is also unused;
    # BatchNorm running statistics are not updated (pure training-mode forward).
    print("KERNEL_OK")
</pallas_src>

<mosaic_0001>
module attributes {stable_mosaic.version = 11 : i64} {
  func.func @gcn_kernel(%arg0: i32, %arg1: memref<1x128x8xi32, #tpu.memory_space<vmem>>, %arg2: memref<1x256x1xi32, #tpu.memory_space<vmem>>, %arg3: memref<1x1x256xi32, #tpu.memory_space<vmem>>, %arg4: memref<128x128xbf16, #tpu.memory_space<vmem>>, %arg5: memref<1x128xf32, #tpu.memory_space<vmem>>, %arg6: memref<128x128xbf16, #tpu.memory_space<vmem>>, %arg7: memref<1x128xf32, #tpu.memory_space<vmem>>, %arg8: memref<128x128xbf16, #tpu.memory_space<vmem>>, %arg9: memref<1x128xf32, #tpu.memory_space<vmem>>, %arg10: memref<1x128xf32, #tpu.memory_space<vmem>>, %arg11: memref<1x128xf32, #tpu.memory_space<vmem>>, %arg12: memref<1x128xf32, #tpu.memory_space<vmem>>, %arg13: memref<1x1xf32, #tpu.memory_space<vmem>>, %arg14: memref<1x128xf32, #tpu.memory_space<vmem>>, %arg15: memref<1x1xf32, #tpu.memory_space<vmem>>, %arg16: memref<1x1x128xf32, #tpu.memory_space<vmem>>) attributes {dimension_semantics = [#tpu.dimension_semantics<parallel>], iteration_bounds = array<i64: 2>, scalar_prefetch = 0 : i64, scratch_operands = 0 : i64, tpu.core_type = #tpu.core_type<tc>, window_params = [{transform_indices = @transform_0, window_bounds = array<i64: 1, 128, 8>}, {transform_indices = @transform_1, window_bounds = array<i64: 1, 256, 1>}, {transform_indices = @transform_2, window_bounds = array<i64: 1, 1, 256>}, {pipeline_mode = #tpu.pipeline_mode<synchronous>, transform_indices = @transform_3, window_bounds = array<i64: 128, 128>}, {pipeline_mode = #tpu.pipeline_mode<synchronous>, transform_indices = @transform_4, window_bounds = array<i64: 1, 128>}, {pipeline_mode = #tpu.pipeline_mode<synchronous>, transform_indices = @transform_5, window_bounds = array<i64: 128, 128>}, {pipeline_mode = #tpu.pipeline_mode<synchronous>, transform_indices = @transform_6, window_bounds = array<i64: 1, 128>}, {pipeline_mode = #tpu.pipeline_mode<synchronous>, transform_indices = @transform_7, window_bounds = array<i64: 128, 128>}, {pipeline_mode = #tpu.pipeline_mode<synchronous>, transform_indices = @transform_8, window_bounds = array<i64: 1, 128>}, {pipeline_mode = #tpu.pipeline_mode<synchronous>, transform_indices = @transform_9, window_bounds = array<i64: 1, 128>}, {pipeline_mode = #tpu.pipeline_mode<synchronous>, transform_indices = @transform_10, window_bounds = array<i64: 1, 128>}, {pipeline_mode = #tpu.pipeline_mode<synchronous>, transform_indices = @transform_11, window_bounds = array<i64: 1, 128>}, {pipeline_mode = #tpu.pipeline_mode<synchronous>, transform_indices = @transform_12, window_bounds = array<i64: 1, 1>}, {pipeline_mode = #tpu.pipeline_mode<synchronous>, transform_indices = @transform_13, window_bounds = array<i64: 1, 128>}, {pipeline_mode = #tpu.pipeline_mode<synchronous>, transform_indices = @transform_14, window_bounds = array<i64: 1, 1>}, {transform_indices = @transform_15, window_bounds = array<i64: 1, 1, 128>}]} {
    %c0 = arith.constant 0 : index
    %c0_0 = arith.constant 0 : index
    %c0_1 = arith.constant 0 : index
    %0 = vector.load %arg1[%c0, %c0_0, %c0_1] : memref<1x128x8xi32, #tpu.memory_space<vmem>>, vector<1x128x8xi32>
    %1 = vector.shape_cast %0 : vector<1x128x8xi32> to vector<128x8xi32>
    %2 = vector.extract_strided_slice %1 {offsets = [0, 6], sizes = [128, 1], strides = [1, 1]} : vector<128x8xi32> to vector<128x1xi32>
    %3 = tpu.iota {dimensions = array<i32: 1>} : vector<128x128xi32>
    %4 = vector.extract_strided_slice %1 {offsets = [0, 0], sizes = [128, 1], strides = [1, 1]} : vector<128x8xi32> to vector<128x1xi32>
    %c0_i32 = arith.constant 0 : i32
    %5 = vector.broadcast %c0_i32 : i32 to vector<128x1xi32>
    %6 = arith.addi %4, %5 : vector<128x1xi32>
    %7 = vector.broadcast %6 : vector<128x1xi32> to vector<128x128xi32>
    %8 = arith.cmpi eq, %3, %7 : vector<128x128xi32>
    %9 = arith.extui %8 : vector<128x128xi1> to vector<128x128xi32>
    %10 = arith.sitofp %9 : vector<128x128xi32> to vector<128x128xf32>
    %11 = arith.truncf %10 : vector<128x128xf32> to vector<128x128xbf16>
    %12 = vector.extract_strided_slice %1 {offsets = [0, 1], sizes = [128, 1], strides = [1, 1]} : vector<128x8xi32> to vector<128x1xi32>
    %c33_i32 = arith.constant 33 : i32
    %13 = vector.broadcast %c33_i32 : i32 to vector<128x1xi32>
    %14 = arith.addi %12, %13 : vector<128x1xi32>
    %15 = vector.broadcast %14 : vector<128x1xi32> to vector<128x128xi32>
    %16 = arith.cmpi eq, %3, %15 : vector<128x128xi32>
    %17 = arith.extui %16 : vector<128x128xi1> to vector<128x128xi32>
    %18 = arith.sitofp %17 : vector<128x128xi32> to vector<128x128xf32>
    %19 = arith.truncf %18 : vector<128x128xf32> to vector<128x128xbf16>
    %20 = arith.addf %11, %19 : vector<128x128xbf16>
    %21 = vector.extract_strided_slice %1 {offsets = [0, 2], sizes = [128, 1], strides = [1, 1]} : vector<128x8xi32> to vector<128x1xi32>
    %c38_i32 = arith.constant 38 : i32
    %22 = vector.broadcast %c38_i32 : i32 to vector<128x1xi32>
    %23 = arith.addi %21, %22 : vector<128x1xi32>
    %24 = vector.broadcast %23 : vector<128x1xi32> to vector<128x128xi32>
    %25 = arith.cmpi eq, %3, %24 : vector<128x128xi32>
    %26 = arith.extui %25 : vector<128x128xi1> to vector<128x128xi32>
    %27 = arith.sitofp %26 : vector<128x128xi32> to vector<128x128xf32>
    %28 = arith.truncf %27 : vector<128x128xf32> to vector<128x128xbf16>
    %29 = arith.addf %20, %28 : vector<128x128xbf16>
    %30 = vector.extract_strided_slice %1 {offsets = [0, 3], sizes = [128, 1], strides = [1, 1]} : vector<128x8xi32> to vector<128x1xi32>
    %c41_i32 = arith.constant 41 : i32
    %31 = vector.broadcast %c41_i32 : i32 to vector<128x1xi32>
    %32 = arith.addi %30, %31 : vector<128x1xi32>
    %33 = vector.broadcast %32 : vector<128x1xi32> to vector<128x128xi32>
    %34 = arith.cmpi eq, %3, %33 : vector<128x128xi32>
    %35 = arith.extui %34 : vector<128x128xi1> to vector<128x128xi32>
    %36 = arith.sitofp %35 : vector<128x128xi32> to vector<128x128xf32>
    %37 = arith.truncf %36 : vector<128x128xf32> to vector<128x128xbf16>
    %38 = arith.addf %29, %37 : vector<128x128xbf16>
    %39 = vector.extract_strided_slice %1 {offsets = [0, 4], sizes = [128, 1], strides = [1, 1]} : vector<128x8xi32> to vector<128x1xi32>
    %c45_i32 = arith.constant 45 : i32
    %40 = vector.broadcast %c45_i32 : i32 to vector<128x1xi32>
    %41 = arith.addi %39, %40 : vector<128x1xi32>
    %42 = vector.broadcast %41 : vector<128x1xi32> to vector<128x128xi32>
    %43 = arith.cmpi eq, %3, %42 : vector<128x128xi32>
    %44 = arith.extui %43 : vector<128x128xi1> to vector<128x128xi32>
    %45 = arith.sitofp %44 : vector<128x128xi32> to vector<128x128xf32>
    %46 = arith.truncf %45 : vector<128x128xf32> to vector<128x128xbf16>
    %47 = arith.addf %38, %46 : vector<128x128xbf16>
    %48 = vector.extract_strided_slice %1 {offsets = [0, 5], sizes = [128, 1], strides = [1, 1]} : vector<128x8xi32> to vector<128x1xi32>
    %c47_i32 = arith.constant 47 : i32
    %49 = vector.broadcast %c47_i32 : i32 to vector<128x1xi32>
    %50 = arith.addi %48, %49 : vector<128x1xi32>
    %51 = vector.broadcast %50 : vector<128x1xi32> to vector<128x128xi32>
    %52 = arith.cmpi eq, %3, %51 : vector<128x128xi32>
    %53 = arith.extui %52 : vector<128x128xi1> to vector<128x128xi32>
    %54 = arith.sitofp %53 : vector<128x128xi32> to vector<128x128xf32>
    %55 = arith.truncf %54 : vector<128x128xf32> to vector<128x128xbf16>
    %56 = arith.addf %47, %55 : vector<128x128xbf16>
    %c0_2 = arith.constant 0 : index
    %c0_3 = arith.constant 0 : index
    %57 = vector.load %arg4[%c0_2, %c0_3] : memref<128x128xbf16, #tpu.memory_space<vmem>>, vector<128x128xbf16>
    %cst = arith.constant dense<0.000000e+00> : vector<128x128xf32>
    %58 = tpu.matmul %56, %57, %cst {dimension_numbers = #tpu.dot_dimension_numbers<[1], [0], [0], [1], [0, 0, 1, 1], [], []>} : vector<128x128xbf16>, vector<128x128xbf16>, vector<128x128xf32> -> vector<128x128xf32>
    %c0_4 = arith.constant 0 : index
    %c0_5 = arith.constant 0 : index
    %c0_6 = arith.constant 0 : index
    %59 = vector.load %arg2[%c0_4, %c0_5, %c0_6] : memref<1x256x1xi32, #tpu.memory_space<vmem>>, vector<1x256x1xi32>
    %60 = vector.shape_cast %59 : vector<1x256x1xi32> to vector<256x1xi32>
    %c0_7 = arith.constant 0 : index
    %c0_8 = arith.constant 0 : index
    %c0_9 = arith.constant 0 : index
    %61 = vector.load %arg3[%c0_7, %c0_8, %c0_9] : memref<1x1x256xi32, #tpu.memory_space<vmem>>, vector<1x1x256xi32>
    %62 = vector.shape_cast %61 : vector<1x1x256xi32> to vector<1x256xi32>
    %63 = tpu.iota {dimensions = array<i32: 0>} : vector<128x256xi32>
    %64 = vector.broadcast %62 : vector<1x256xi32> to vector<128x256xi32>
    %65 = arith.cmpi eq, %63, %64 : vector<128x256xi32>
    %66 = arith.extui %65 : vector<128x256xi1> to vector<128x256xi32>
    %67 = arith.sitofp %66 : vector<128x256xi32> to vector<128x256xf32>
    %68 = arith.truncf %67 : vector<128x256xf32> to vector<128x256xbf16>
    %69 = tpu.iota {dimensions = array<i32: 1>} : vector<256x128xi32>
    %70 = vector.broadcast %60 : vector<256x1xi32> to vector<256x128xi32>
    %71 = arith.cmpi eq, %69, %70 : vector<256x128xi32>
    %72 = arith.extui %71 : vector<256x128xi1> to vector<256x128xi32>
    %73 = arith.sitofp %72 : vector<256x128xi32> to vector<256x128xf32>
    %74 = arith.truncf %73 : vector<256x128xf32> to vector<256x128xbf16>
    %cst_10 = arith.constant dense<0.000000e+00> : vector<128x128xf32>
    %75 = tpu.matmul %68, %74, %cst_10 {dimension_numbers = #tpu.dot_dimension_numbers<[1], [0], [0], [1], [0, 0, 1, 1], [], []>} : vector<128x256xbf16>, vector<256x128xbf16>, vector<128x128xf32> -> vector<128x128xf32>
    %76 = tpu.iota {dimensions = array<i32: 0>} : vector<128x128xi32>
    %77 = tpu.iota {dimensions = array<i32: 1>} : vector<128x128xi32>
    %78 = arith.cmpi eq, %76, %77 : vector<128x128xi32>
    %79 = arith.extui %78 : vector<128x128xi1> to vector<128x128xi32>
    %80 = arith.sitofp %79 : vector<128x128xi32> to vector<128x128xf32>
    %81 = arith.addf %75, %80 : vector<128x128xf32>
    %cst_11 = arith.constant dense<0.000000e+00> : vector<128xf32>
    %82 = vector.multi_reduction <add>, %81, %cst_11 [1] : vector<128x128xf32> to vector<128xf32>
    %83 = vector.shape_cast %82 : vector<128xf32> to vector<128x1xf32>
    %84 = math.rsqrt %83 : vector<128x1xf32>
    %85 = vector.broadcast %84 : vector<128x1xf32> to vector<128x128xf32>
    %86 = arith.mulf %85, %81 : vector<128x128xf32>
    %87 = arith.truncf %86 : vector<128x128xf32> to vector<128x128xbf16>
    %88 = vector.broadcast %84 : vector<128x1xf32> to vector<128x128xf32>
    %89 = arith.mulf %88, %58 : vector<128x128xf32>
    %90 = arith.truncf %89 : vector<128x128xf32> to vector<128x128xbf16>
    %cst_12 = arith.constant dense<0.000000e+00> : vector<128x128xf32>
    %91 = tpu.matmul %87, %90, %cst_12 {dimension_numbers = #tpu.dot_dimension_numbers<[1], [0], [0], [1], [0, 0, 1, 1], [], []>} : vector<128x128xbf16>, vector<128x128xbf16>, vector<128x128xf32> -> vector<128x128xf32>
    %c0_13 = arith.constant 0 : index
    %c0_14 = arith.constant 0 : index
    %92 = vector.load %arg5[%c0_13, %c0_14] : memref<1x128xf32, #tpu.memory_space<vmem>>, vector<1x128xf32>
    %93 = vector.broadcast %92 : vector<1x128xf32> to vector<128x128xf32>
    %94 = arith.addf %91, %93 : vector<128x128xf32>
    %95 = arith.negf %94 : vector<128x128xf32>
    %96 = math.exp %95 : vector<128x128xf32>
    %cst_15 = arith.constant 1.000000e+00 : f32
    %97 = vector.broadcast %cst_15 : f32 to vector<128x128xf32>
    %98 = arith.addf %97, %96 : vector<128x128xf32>
    %99 = arith.divf %97, %98 : vector<128x128xf32>
    %100 = arith.truncf %99 : vector<128x128xf32> to vector<128x128xbf16>
    %c0_16 = arith.constant 0 : index
    %c0_17 = arith.constant 0 : index
    %101 = vector.load %arg6[%c0_16, %c0_17] : memref<128x128xbf16, #tpu.memory_space<vmem>>, vector<128x128xbf16>
    %cst_18 = arith.constant dense<0.000000e+00> : vector<128x128xf32>
    %102 = tpu.matmul %100, %101, %cst_18 {dimension_numbers = #tpu.dot_dimension_numbers<[1], [0], [0], [1], [0, 0, 1, 1], [], []>} : vector<128x128xbf16>, vector<128x128xbf16>, vector<128x128xf32> -> vector<128x128xf32>
    %103 = vector.broadcast %84 : vector<128x1xf32> to vector<128x128xf32>
    %104 = arith.mulf %103, %102 : vector<128x128xf32>
    %105 = arith.truncf %104 : vector<128x128xf32> to vector<128x128xbf16>
    %cst_19 = arith.constant dense<0.000000e+00> : vector<128x128xf32>
    %106 = tpu.matmul %87, %105, %cst_19 {dimension_numbers = #tpu.dot_dimension_numbers<[1], [0], [0], [1], [0, 0, 1, 1], [], []>} : vector<128x128xbf16>, vector<128x128xbf16>, vector<128x128xf32> -> vector<128x128xf32>
    %c0_20 = arith.constant 0 : index
    %c0_21 = arith.constant 0 : index
    %107 = vector.load %arg7[%c0_20, %c0_21] : memref<1x128xf32, #tpu.memory_space<vmem>>, vector<1x128xf32>
    %108 = vector.broadcast %107 : vector<1x128xf32> to vector<128x128xf32>
    %109 = arith.addf %106, %108 : vector<128x128xf32>
    %110 = arith.negf %109 : vector<128x128xf32>
    %111 = math.exp %110 : vector<128x128xf32>
    %cst_22 = arith.constant 1.000000e+00 : f32
    %112 = vector.broadcast %cst_22 : f32 to vector<128x128xf32>
    %113 = arith.addf %112, %111 : vector<128x128xf32>
    %114 = arith.divf %112, %113 : vector<128x128xf32>
    %115 = arith.truncf %114 : vector<128x128xf32> to vector<128x128xbf16>
    %c0_23 = arith.constant 0 : index
    %c0_24 = arith.constant 0 : index
    %116 = vector.load %arg8[%c0_23, %c0_24] : memref<128x128xbf16, #tpu.memory_space<vmem>>, vector<128x128xbf16>
    %cst_25 = arith.constant dense<0.000000e+00> : vector<128x128xf32>
    %117 = tpu.matmul %115, %116, %cst_25 {dimension_numbers = #tpu.dot_dimension_numbers<[1], [0], [0], [1], [0, 0, 1, 1], [], []>} : vector<128x128xbf16>, vector<128x128xbf16>, vector<128x128xf32> -> vector<128x128xf32>
    %c0_26 = arith.constant 0 : index
    %c0_27 = arith.constant 0 : index
    %118 = vector.load %arg9[%c0_26, %c0_27] : memref<1x128xf32, #tpu.memory_space<vmem>>, vector<1x128xf32>
    %119 = vector.broadcast %118 : vector<1x128xf32> to vector<128x128xf32>
    %120 = arith.addf %117, %119 : vector<128x128xf32>
    %121 = tpu.iota {dimensions = array<i32: 1>} : vector<8x128xi32>
    %122 = tpu.iota {dimensions = array<i32: 0>} : vector<8x128xi32>
    %c16_i32 = arith.constant 16 : i32
    %123 = vector.broadcast %c16_i32 : i32 to vector<8x128xi32>
    %124 = arith.muli %122, %123 : vector<8x128xi32>
    %125 = arith.subi %121, %124 : vector<8x128xi32>
    %c0_i32_28 = arith.constant 0 : i32
    %126 = vector.broadcast %c0_i32_28 : i32 to vector<8x128xi32>
    %127 = arith.cmpi sge, %125, %126 : vector<8x128xi32>
    %c16_i32_29 = arith.constant 16 : i32
    %128 = vector.broadcast %c16_i32_29 : i32 to vector<8x128xi32>
    %129 = arith.cmpi slt, %125, %128 : vector<8x128xi32>
    %130 = arith.andi %127, %129 : vector<8x128xi1>
    %131 = arith.extui %130 : vector<8x128xi1> to vector<8x128xi32>
    %132 = arith.sitofp %131 : vector<8x128xi32> to vector<8x128xf32>
    %133 = tpu.iota {dimensions = array<i32: 0>} : vector<128x8xi32>
    %134 = tpu.iota {dimensions = array<i32: 1>} : vector<128x8xi32>
    %c16_i32_30 = arith.constant 16 : i32
    %135 = vector.broadcast %c16_i32_30 : i32 to vector<128x8xi32>
    %136 = arith.muli %134, %135 : vector<128x8xi32>
    %137 = arith.subi %133, %136 : vector<128x8xi32>
    %c0_i32_31 = arith.constant 0 : i32
    %138 = vector.broadcast %c0_i32_31 : i32 to vector<128x8xi32>
    %139 = arith.cmpi sge, %137, %138 : vector<128x8xi32>
    %c16_i32_32 = arith.constant 16 : i32
    %140 = vector.broadcast %c16_i32_32 : i32 to vector<128x8xi32>
    %141 = arith.cmpi slt, %137, %140 : vector<128x8xi32>
    %142 = arith.andi %139, %141 : vector<128x8xi1>
    %143 = arith.extui %142 : vector<128x8xi1> to vector<128x8xi32>
    %144 = arith.sitofp %143 : vector<128x8xi32> to vector<128x8xf32>
    %cst_33 = arith.constant dense<0.000000e+00> : vector<8x128xf32>
    %145 = tpu.matmul %132, %120, %cst_33 {dimension_numbers = #tpu.dot_dimension_numbers<[1], [0], [0], [1], [0, 0, 1, 1], [], []>} : vector<8x128xf32>, vector<128x128xf32>, vector<8x128xf32> -> vector<8x128xf32>
    %cst_34 = arith.constant 6.250000e-02 : f32
    %146 = vector.broadcast %cst_34 : f32 to vector<8x128xf32>
    %147 = arith.mulf %145, %146 : vector<8x128xf32>
    %cst_35 = arith.constant dense<0.000000e+00> : vector<128x128xf32>
    %148 = tpu.matmul %144, %147, %cst_35 {dimension_numbers = #tpu.dot_dimension_numbers<[1], [0], [0], [1], [0, 0, 1, 1], [], []>} : vector<128x8xf32>, vector<8x128xf32>, vector<128x128xf32> -> vector<128x128xf32>
    %149 = arith.subf %120, %148 : vector<128x128xf32>
    %150 = arith.mulf %149, %149 : vector<128x128xf32>
    %cst_36 = arith.constant dense<0.000000e+00> : vector<8x128xf32>
    %151 = tpu.matmul %132, %150, %cst_36 {dimension_numbers = #tpu.dot_dimension_numbers<[1], [0], [0], [1], [0, 0, 1, 1], [], []>} : vector<8x128xf32>, vector<128x128xf32>, vector<8x128xf32> -> vector<8x128xf32>
    %cst_37 = arith.constant 6.250000e-02 : f32
    %152 = vector.broadcast %cst_37 : f32 to vector<8x128xf32>
    %153 = arith.mulf %151, %152 : vector<8x128xf32>
    %cst_38 = arith.constant dense<0.000000e+00> : vector<128x128xf32>
    %154 = tpu.matmul %144, %153, %cst_38 {dimension_numbers = #tpu.dot_dimension_numbers<[1], [0], [0], [1], [0, 0, 1, 1], [], []>} : vector<128x8xf32>, vector<8x128xf32>, vector<128x128xf32> -> vector<128x128xf32>
    %cst_39 = arith.constant 9.99999974E-6 : f32
    %155 = vector.broadcast %cst_39 : f32 to vector<128x128xf32>
    %156 = arith.addf %154, %155 : vector<128x128xf32>
    %157 = math.rsqrt %156 : vector<128x128xf32>
    %158 = arith.mulf %149, %157 : vector<128x128xf32>
    %c0_40 = arith.constant 0 : index
    %c0_41 = arith.constant 0 : index
    %159 = vector.load %arg10[%c0_40, %c0_41] : memref<1x128xf32, #tpu.memory_space<vmem>>, vector<1x128xf32>
    %160 = vector.broadcast %159 : vector<1x128xf32> to vector<128x128xf32>
    %161 = arith.mulf %158, %160 : vector<128x128xf32>
    %c0_42 = arith.constant 0 : index
    %c0_43 = arith.constant 0 : index
    %162 = vector.load %arg11[%c0_42, %c0_43] : memref<1x128xf32, #tpu.memory_space<vmem>>, vector<1x128xf32>
    %163 = vector.broadcast %162 : vector<1x128xf32> to vector<128x128xf32>
    %164 = arith.addf %161, %163 : vector<128x128xf32>
    %cst_44 = arith.constant 0.000000e+00 : f32
    %165 = vector.broadcast %cst_44 : f32 to vector<128x128xf32>
    %166 = arith.maximumf %164, %165 : vector<128x128xf32>
    %c0_45 = arith.constant 0 : index
    %c0_46 = arith.constant 0 : index
    %167 = vector.load %arg12[%c0_45, %c0_46] : memref<1x128xf32, #tpu.memory_space<vmem>>, vector<1x128xf32>
    %168 = vector.broadcast %167 : vector<1x128xf32> to vector<128x128xf32>
    %169 = arith.mulf %166, %168 : vector<128x128xf32>
    %cst_47 = arith.constant dense<0.000000e+00> : vector<128xf32>
    %170 = vector.multi_reduction <add>, %169, %cst_47 [1] : vector<128x128xf32> to vector<128xf32>
    %171 = vector.shape_cast %170 : vector<128xf32> to vector<128x1xf32>
    %c0_48 = arith.constant 0 : index
    %c0_49 = arith.constant 0 : index
    %172 = vector.load %arg13[%c0_48, %c0_49] : memref<1x1xf32, #tpu.memory_space<vmem>>, vector<1x1xf32>
    %173 = vector.broadcast %172 : vector<1x1xf32> to vector<128x1xf32>
    %174 = arith.addf %171, %173 : vector<128x1xf32>
    %c0_50 = arith.constant 0 : index
    %c0_51 = arith.constant 0 : index
    %175 = vector.load %arg14[%c0_50, %c0_51] : memref<1x128xf32, #tpu.memory_space<vmem>>, vector<1x128xf32>
    %176 = vector.broadcast %175 : vector<1x128xf32> to vector<128x128xf32>
    %177 = arith.mulf %114, %176 : vector<128x128xf32>
    %cst_52 = arith.constant dense<0.000000e+00> : vector<128xf32>
    %178 = vector.multi_reduction <add>, %177, %cst_52 [1] : vector<128x128xf32> to vector<128xf32>
    %179 = vector.shape_cast %178 : vector<128xf32> to vector<128x1xf32>
    %180 = tpu.iota {dimensions = array<i32: 1>} : vector<128x128xi32>
    %181 = vector.broadcast %2 : vector<128x1xi32> to vector<128x128xi32>
    %182 = arith.cmpi eq, %180, %181 : vector<128x128xi32>
    %183 = arith.extui %182 : vector<128x128xi1> to vector<128x128xi32>
    %184 = arith.sitofp %183 : vector<128x128xi32> to vector<128x128xf32>
    %cst_53 = arith.constant 0.000000e+00 : f32
    %185 = vector.broadcast %cst_53 : f32 to vector<128x128xf32>
    %186 = arith.cmpf ogt, %184, %185 : vector<128x128xf32>
    %cst_54 = arith.constant -1.000000e+30 : f32
    %187 = vector.shape_cast %174 : vector<128x1xf32> to vector<128x1xf32>
    %188 = vector.broadcast %187 : vector<128x1xf32> to vector<128x128xf32>
    %189 = vector.broadcast %cst_54 : f32 to vector<128x128xf32>
    %190 = arith.select %186, %188, %189 : vector<128x128xi1>, vector<128x128xf32>
    %cst_55 = arith.constant dense<0xFF800000> : vector<128xf32>
    %191 = vector.multi_reduction <maximumf>, %190, %cst_55 [0] : vector<128x128xf32> to vector<128xf32>
    %192 = vector.shape_cast %191 : vector<128xf32> to vector<1x128xf32>
    %193 = vector.broadcast %192 : vector<1x128xf32> to vector<128x128xf32>
    %194 = arith.mulf %184, %193 : vector<128x128xf32>
    %cst_56 = arith.constant dense<0.000000e+00> : vector<128xf32>
    %195 = vector.multi_reduction <add>, %194, %cst_56 [1] : vector<128x128xf32> to vector<128xf32>
    %196 = vector.shape_cast %195 : vector<128xf32> to vector<128x1xf32>
    %197 = arith.subf %174, %196 : vector<128x1xf32>
    %198 = math.exp %197 : vector<128x1xf32>
    %199 = vector.broadcast %198 : vector<128x1xf32> to vector<128x128xf32>
    %200 = arith.mulf %184, %199 : vector<128x128xf32>
    %cst_57 = arith.constant dense<0.000000e+00> : vector<128xf32>
    %201 = vector.multi_reduction <add>, %200, %cst_57 [0] : vector<128x128xf32> to vector<128xf32>
    %202 = vector.shape_cast %201 : vector<128xf32> to vector<1x128xf32>
    %203 = vector.broadcast %202 : vector<1x128xf32> to vector<128x128xf32>
    %204 = arith.mulf %184, %203 : vector<128x128xf32>
    %cst_58 = arith.constant dense<0.000000e+00> : vector<128xf32>
    %205 = vector.multi_reduction <add>, %204, %cst_58 [1] : vector<128x128xf32> to vector<128xf32>
    %206 = vector.shape_cast %205 : vector<128xf32> to vector<128x1xf32>
    %207 = arith.divf %198, %206 : vector<128x1xf32>
    %208 = arith.mulf %207, %179 : vector<128x1xf32>
    %209 = vector.broadcast %208 : vector<128x1xf32> to vector<128x128xf32>
    %210 = arith.mulf %184, %209 : vector<128x128xf32>
    %cst_59 = arith.constant dense<0.000000e+00> : vector<128xf32>
    %211 = vector.multi_reduction <add>, %210, %cst_59 [0] : vector<128x128xf32> to vector<128xf32>
    %212 = vector.shape_cast %211 : vector<128xf32> to vector<1x128xf32>
    %c0_60 = arith.constant 0 : index
    %c0_61 = arith.constant 0 : index
    %213 = vector.load %arg15[%c0_60, %c0_61] : memref<1x1xf32, #tpu.memory_space<vmem>>, vector<1x1xf32>
    %214 = vector.broadcast %213 : vector<1x1xf32> to vector<1x128xf32>
    %215 = arith.addf %212, %214 : vector<1x128xf32>
    %216 = arith.negf %215 : vector<1x128xf32>
    %217 = math.exp %216 : vector<1x128xf32>
    %cst_62 = arith.constant 1.000000e+00 : f32
    %218 = vector.broadcast %cst_62 : f32 to vector<1x128xf32>
    %219 = arith.addf %218, %217 : vector<1x128xf32>
    %220 = arith.divf %218, %219 : vector<1x128xf32>
    %c0_63 = arith.constant 0 : index
    %c0_64 = arith.constant 0 : index
    %c0_65 = arith.constant 0 : index
    %221 = vector.load %arg16[%c0_63, %c0_64, %c0_65] : memref<1x1x128xf32, #tpu.memory_space<vmem>>, vector<1x1x128xf32>
    %222 = vector.shape_cast %221 : vector<1x1x128xf32> to vector<1x128xf32>
    %223 = vector.shape_cast %220 : vector<1x128xf32> to vector<1x1x128xf32>
    tpu.vector_store %arg16[%c0_63, %c0_64, %c0_65], %223 {strides = array<i32>} : memref<1x1x128xf32, #tpu.memory_space<vmem>>, vector<1x1x128xf32>,
    return
  }
  func.func @transform_0(%arg0: i32) -> (i32, i32, i32) {
    %c0_i32 = arith.constant 0 : i32
    %c0_i32_0 = arith.constant 0 : i32
    %c0_i32_1 = arith.constant 0 : i32
    return %arg0, %c0_i32, %c0_i32_0 : i32, i32, i32
  }
  func.func @transform_1(%arg0: i32) -> (i32, i32, i32) {
    %c0_i32 = arith.constant 0 : i32
    %c0_i32_0 = arith.constant 0 : i32
    %c0_i32_1 = arith.constant 0 : i32
    return %arg0, %c0_i32, %c0_i32_0 : i32, i32, i32
  }
  func.func @transform_2(%arg0: i32) -> (i32, i32, i32) {
    %c0_i32 = arith.constant 0 : i32
    %c0_i32_0 = arith.constant 0 : i32
    %c0_i32_1 = arith.constant 0 : i32
    return %arg0, %c0_i32, %c0_i32_0 : i32, i32, i32
  }
  func.func @transform_3(%arg0: i32) -> (i32, i32) {
    %c0_i32 = arith.constant 0 : i32
    %c0_i32_0 = arith.constant 0 : i32
    %c0_i32_1 = arith.constant 0 : i32
    return %c0_i32, %c0_i32_0 : i32, i32
  }
  func.func @transform_4(%arg0: i32) -> (i32, i32) {
    %c0_i32 = arith.constant 0 : i32
    %c0_i32_0 = arith.constant 0 : i32
    %c0_i32_1 = arith.constant 0 : i32
    return %c0_i32, %c0_i32_0 : i32, i32
  }
  func.func @transform_5(%arg0: i32) -> (i32, i32) {
    %c0_i32 = arith.constant 0 : i32
    %c0_i32_0 = arith.constant 0 : i32
    %c0_i32_1 = arith.constant 0 : i32
    return %c0_i32, %c0_i32_0 : i32, i32
  }
  func.func @transform_6(%arg0: i32) -> (i32, i32) {
    %c0_i32 = arith.constant 0 : i32
    %c0_i32_0 = arith.constant 0 : i32
    %c0_i32_1 = arith.constant 0 : i32
    return %c0_i32, %c0_i32_0 : i32, i32
  }
  func.func @transform_7(%arg0: i32) -> (i32, i32) {
    %c0_i32 = arith.constant 0 : i32
    %c0_i32_0 = arith.constant 0 : i32
    %c0_i32_1 = arith.constant 0 : i32
    return %c0_i32, %c0_i32_0 : i32, i32
  }
  func.func @transform_8(%arg0: i32) -> (i32, i32) {
    %c0_i32 = arith.constant 0 : i32
    %c0_i32_0 = arith.constant 0 : i32
    %c0_i32_1 = arith.constant 0 : i32
    return %c0_i32, %c0_i32_0 : i32, i32
  }
  func.func @transform_9(%arg0: i32) -> (i32, i32) {
    %c0_i32 = arith.constant 0 : i32
    %c0_i32_0 = arith.constant 0 : i32
    %c0_i32_1 = arith.constant 0 : i32
    return %c0_i32, %c0_i32_0 : i32, i32
  }
  func.func @transform_10(%arg0: i32) -> (i32, i32) {
    %c0_i32 = arith.constant 0 : i32
    %c0_i32_0 = arith.constant 0 : i32
    %c0_i32_1 = arith.constant 0 : i32
    return %c0_i32, %c0_i32_0 : i32, i32
  }
  func.func @transform_11(%arg0: i32) -> (i32, i32) {
    %c0_i32 = arith.constant 0 : i32
    %c0_i32_0 = arith.constant 0 : i32
    %c0_i32_1 = arith.constant 0 : i32
    return %c0_i32, %c0_i32_0 : i32, i32
  }
  func.func @transform_12(%arg0: i32) -> (i32, i32) {
    %c0_i32 = arith.constant 0 : i32
    %c0_i32_0 = arith.constant 0 : i32
    %c0_i32_1 = arith.constant 0 : i32
    return %c0_i32, %c0_i32_0 : i32, i32
  }
  func.func @transform_13(%arg0: i32) -> (i32, i32) {
    %c0_i32 = arith.constant 0 : i32
    %c0_i32_0 = arith.constant 0 : i32
    %c0_i32_1 = arith.constant 0 : i32
    return %c0_i32, %c0_i32_0 : i32, i32
  }
  func.func @transform_14(%arg0: i32) -> (i32, i32) {
    %c0_i32 = arith.constant 0 : i32
    %c0_i32_0 = arith.constant 0 : i32
    %c0_i32_1 = arith.constant 0 : i32
    return %c0_i32, %c0_i32_0 : i32, i32
  }
  func.func @transform_15(%arg0: i32) -> (i32, i32, i32) {
    %c0_i32 = arith.constant 0 : i32
    %c0_i32_0 = arith.constant 0 : i32
    %c0_i32_1 = arith.constant 0 : i32
    return %arg0, %c0_i32, %c0_i32_0 : i32, i32, i32
  }
}

</mosaic_0001>

<bundles_post_ra>
// kernel: squeeze.5
= control target key start
LH: loop header
LB: loop body
LE: loop exit
PB: predicated region body
PF: predicated region fallthrough
CT: control target
= control target key end

     0   :  { %s66_s8 = smov 122   ;;  %vm7_vm0 = vcmask 15360   ;;  %s67_s11 = smov 124   ;;  %s117_s0 = inlined_call_operand.vmem [shape: f32[2,16], index: 0, kind: input, shape index: {}]   ;;  %s118_s1 = inlined_call_operand.vmem [shape: f32[16,2,1], index: 1, kind: output, shape index: {}]  }
   0x1   :  { %v4_v0 = vld [vmem:[%s117_s0] sm:$0x3]  ;;  %s65_s0 = smov 126   ;;  %s68_s12 = smov 120  }
   0x2   :  { %5 = vst [vmem:[#allocation0] sm:$0x3] %v4_v0  ;;  %s69_s13 = smov 118   ;;  %s70_s14 = smov 116  }
   0x3   :  { %s71_s15 = smov 114  }
   0x9   :  { %v9_v1 = vld [vmem:[#allocation0] sm:$0x3]  }
   0xa   :  { %v21_v2 = vld [vmem:[#allocation0] sm:$0x3]   ;;  %10 = vrot.lane.b32.xlu0 %v9_v1, %s65_s0 }
   0xb   :  { %22 = vrot.lane.b32.xlu1 %v21_v2, %s66_s8  ;;  %v15_v3 = vld [vmem:[#allocation0] sm:$0x3]  }
   0xc   :  { %v27_v4 = vld [vmem:[#allocation0] sm:$0x3]  }
   0xd   :  { %v6_v5 = vld [vmem:[#allocation0] sm:$0x3]  }
   0xe   :  { %8 = vst.msk [vmem:[%s118_s1] ss:$8 sm:$0x3] %vm7_vm0, %v6_v5   ;;  %16 = vrot.lane.b32.xlu0 %v15_v3, %s67_s11  ;;  %v33_v6 = vld [vmem:[#allocation0] sm:$0x3]  }
   0xf   :  { %28 = vrot.lane.b32.xlu1 %v27_v4, %s68_s12  ;;  %v39_v7 = vld [vmem:[#allocation0] sm:$0x3]  }
  0x10   :  { %v45_v8 = vld [vmem:[#allocation0] sm:$0x3]  }
  0x12   :  { %34 = vrot.lane.b32.xlu0 %v33_v6, %s69_s13 }
  0x13   :  { %40 = vrot.lane.b32.xlu1 %v39_v7, %s70_s14 }
  0x16   :  { %46 = vrot.lane.b32.xlu0 %v45_v8, %s71_s15 }
  0x7c   :  { %v11_v9 = vpop.permute.xlu0 %10  }
  0x7d   :  { %v23_v10 = vpop.permute.xlu1 %22   ;;  %51 = vst.msk [vmem:[%s118_s1 + $0x1] ss:$8 sm:$0x3] %vm7_vm0, %v11_v9  }
  0x7e   :  { %53 = vst.msk [vmem:[%s118_s1 + $0x3] ss:$8 sm:$0x3] %vm7_vm0, %v23_v10  }
  0x80   :  { %v17_v11 = vpop.permute.xlu0 %16  }
  0x81   :  { %v29_v12 = vpop.permute.xlu1 %28   ;;  %52 = vst.msk [vmem:[%s118_s1 + $0x2] ss:$8 sm:$0x3] %vm7_vm0, %v17_v11  }
  0x82   :  { %54 = vst.msk [vmem:[%s118_s1 + $0x4] ss:$8 sm:$0x3] %vm7_vm0, %v29_v12  }
  0x84   :  { %v35_v13 = vpop.permute.xlu0 %34  }
  0x85   :  { %v41_v14 = vpop.permute.xlu1 %40   ;;  %55 = vst.msk [vmem:[%s118_s1 + $0x5] ss:$8 sm:$0x3] %vm7_vm0, %v35_v13  }
  0x86   :  { %56 = vst.msk [vmem:[%s118_s1 + $0x6] ss:$8 sm:$0x3] %vm7_vm0, %v41_v14  }
  0x88   :  { %v47_v15 = vpop.permute.xlu0 %46  }
  0x89   :  { %57 = vst.msk [vmem:[%s118_s1 + $0x7] ss:$8 sm:$0x3] %vm7_vm0, %v47_v15  }

// kernel: gcn_forward.1
= control target key start
LH: loop header
LB: loop body
LE: loop exit
PB: predicated region body
PF: predicated region fallthrough
CT: control target
= control target key end

     0   :  { %s5837_s22 = smov 0   ;;  %s7836_s0 = inlined_call_operand.vmem [shape: s32[2,128,8], index: 0, kind: input, shape index: {}]   ;;  %s7837_s1 = inlined_call_operand.vmem [shape: s32[2,256,1], index: 1, kind: input, shape index: {}]   ;;  %s7838_s2 = inlined_call_operand.vmem [shape: s32[2,1,256], index: 2, kind: input, shape index: {}]   ;;  %s7839_s3 = inlined_call_operand.vmem [shape: bf16[128,128], index: 3, kind: input, shape index: {}]   ;;  %s7840_s4 = inlined_call_operand.vmem [shape: f32[1,128], index: 4, kind: input, shape index: {}]   ;;  %s7841_s5 = inlined_call_operand.vmem [shape: bf16[128,128], index: 5, kind: input, shape index: {}]   ;;  %s7842_s6 = inlined_call_operand.vmem [shape: f32[1,128], index: 6, kind: input, shape index: {}]   ;;  %s7843_s7 = inlined_call_operand.vmem [shape: bf16[128,128], index: 7, kind: input, shape index: {}]   ;;  %s7844_s8 = inlined_call_operand.vmem [shape: f32[1,128], index: 8, kind: input, shape index: {}]   ;;  %s7845_s9 = inlined_call_operand.vmem [shape: f32[1,128], index: 9, kind: input, shape index: {}]   ;;  %s7846_s10 = inlined_call_operand.vmem [shape: f32[1,128], index: 10, kind: input, shape index: {}]   ;;  %s7847_s11 = inlined_call_operand.vmem [shape: f32[1,128], index: 11, kind: input, shape index: {}]   ;;  %s7848_s12 = inlined_call_operand.<no memory space> [shape: f32[1,1], index: 12, kind: input, shape index: {}]   ;;  %s7849_s13 = inlined_call_operand.vmem [shape: f32[1,128], index: 13, kind: input, shape index: {}]   ;;  %s7850_s15 = inlined_call_operand.vmem [shape: f32[2,1,128], index: 15, kind: output, shape index: {}]   ;;  %s7851_s14 = inlined_call_operand.<no memory space> [shape: f32[1,1], index: 14, kind: input, shape index: {}]  }
   0x1   :  { %v20_v0 = vstv %s7848_s12  ;;  %v22_v1 = vstv %s7851_s14 }
   0x2   :  { %21 = vst [vmem:[#allocation2] sm:$0x1] %v20_v0  ;;  %23 = vst [vmem:[#allocation3] sm:$0x1] %v22_v1 }
   0x3 LB: > { %s4432_s23 = sadd.s32 4294967295, %s5737_s22   ;;  %p4436_p0 = scmp.ge.s32.totalorder %s5737_s22, 1  ;;  %s5737_s22 = sphi %s5837_s22, %s29_s22  }
   0x4   : > { %p460_p1 = scmp.lt.s32.totalorder %s5737_s22, 3 }
   0x6   : > { %p461_p2 = pnand %p4436_p0, %p460_p1 }
   0x8   : > { %464 = sbr.rel (%p461_p2) target bundleno = 3671 (0xe57), region = 80 }
   0xf   : > { %p515_p3 = scmp.lt.s32.totalorder %s4432_s23, 1  ;;  %v7856_v2 = vmov 0   ;;  %v549_v33 = vlaneseq  ;;  %v7858_v45 = vmov 5   ;;  %v5741_v48 = vmov 1.0|1.0  }
  0x10   : > { %5383 = vset.pattern.permute.xlu1 %v7856_v2  ;;  %5382 = vset.pattern.permute.xlu0 %v7856_v2  ;;  %v7866_v49 = vmov 1   ;;  %v7855_v59 = vmov 2   ;;  %v7853_v63 = vmov 3  }
  0x11   : > { %s7933_s23 = smov (!%p515_p3, %s4432_s23), 1  ;;  %v5894_v36 = vshrl.u32 %v549_v33, 7 }
  0x12   : > { %s4817_s12 = sshll.u32 %s7933_s23, 8  ;;  %s4816_s26 = sshll.u32 %s7933_s23, 7 }
  0x13   : > { %s5853_s25 = scalar_lea.vmem %s7837_s1, %s4817_s12  ;;  %s5889_s29 = scalar_lea.vmem %s7836_s0, %s4816_s26  ;;  %7877 = vst [vmem:[#allocation4_spill] sm:$0xff] %v5894_v36  ;;  %v1512_v38 = vsub.s32 1, %v5894_v36  ;;  %v5911_v42 = vadd.s32 8, %v5894_v36 }
  0x14   : > { %v1472_v3 = vld [vmem:[%s5853_s25 + $0x80] sm:$0xff]  ;;  %v1473_v5 = vld [vmem:[%s5853_s25 + $0x88] sm:$0xff]  ;;  %v1474_v7 = vld [vmem:[%s5853_s25 + $0x90] sm:$0xff]  ;;  %s4441_s30 = sshll.u32 %s7933_s23, 1  ;;  %s531_s28 = scalar_lea.vmem %s7850_s15, %s7933_s23 }
  0x15   : > { %v1456_v4 = vld [vmem:[%s5853_s25] sm:$0xff]  ;;  %1675 = vperm.xlu0 %5382, %v1472_v3   ;;  %v1457_v6 = vld [vmem:[%s5853_s25 + $0x8] sm:$0xff]  ;;  %v1475_v8 = vld [vmem:[%s5853_s25 + $0x98] sm:$0xff]  ;;  %s528_s18 = scalar_lea.vmem %s7838_s2, %s4441_s30 }
  0x16   : > { %1627 = vperm.xlu1 %5383, %v1456_v4   ;;  %v1458_v9 = vld [vmem:[%s5853_s25 + $0x10] sm:$0xff]  ;;  %v1459_v10 = vld [vmem:[%s5853_s25 + $0x18] sm:$0xff]  ;;  %v1476_v11 = vld [vmem:[%s5853_s25 + $0xa0] sm:$0xff] }
  0x17   : > { %v1477_v12 = vld [vmem:[%s5853_s25 + $0xa8] sm:$0xff]  ;;  %v1460_v13 = vld [vmem:[%s5853_s25 + $0x20] sm:$0xff]  ;;  %v1478_v15 = vld [vmem:[%s5853_s25 + $0xb0] sm:$0xff] }
  0x18   : > { %v1461_v14 = vld [vmem:[%s5853_s25 + $0x28] sm:$0xff]  ;;  %v1479_v16 = vld [vmem:[%s5853_s25 + $0xb8] sm:$0xff]  ;;  %v1462_v17 = vld [vmem:[%s5853_s25 + $0x30] sm:$0xff] }
  0x19   : > { %1678 = vperm.xlu0 %5382, %v1473_v5   ;;  %v1463_v18 = vld [vmem:[%s5853_s25 + $0x38] sm:$0xff]  ;;  %v1480_v19 = vld [vmem:[%s5853_s25 + $0xc0] sm:$0xff]  ;;  %v1481_v20 = vld [vmem:[%s5853_s25 + $0xc8] sm:$0xff] }
  0x1a   : > { %1630 = vperm.xlu1 %5383, %v1457_v6   ;;  %v1464_v21 = vld [vmem:[%s5853_s25 + $0x40] sm:$0xff]  ;;  %v1465_v22 = vld [vmem:[%s5853_s25 + $0x48] sm:$0xff]  ;;  %v1482_v23 = vld [vmem:[%s5853_s25 + $0xd0] sm:$0xff] }
  0x1b   : > { %v1483_v24 = vld [vmem:[%s5853_s25 + $0xd8] sm:$0xff]  ;;  %v1466_v25 = vld [vmem:[%s5853_s25 + $0x50] sm:$0xff]  ;;  %v1484_v27 = vld [vmem:[%s5853_s25 + $0xe0] sm:$0xff] }
  0x1c   : > { %v1467_v26 = vld [vmem:[%s5853_s25 + $0x58] sm:$0xff]  ;;  %v1485_v28 = vld [vmem:[%s5853_s25 + $0xe8] sm:$0xff]  ;;  %v1468_v29 = vld [vmem:[%s5853_s25 + $0x60] sm:$0xff] }
  0x1d   : > { %1681 = vperm.xlu0 %5382, %v1474_v7   ;;  %v1469_v30 = vld [vmem:[%s5853_s25 + $0x68] sm:$0xff]  ;;  %v1486_v31 = vld [vmem:[%s5853_s25 + $0xf0] sm:$0xff]  ;;  %v1487_v32 = vld [vmem:[%s5853_s25 + $0xf8] sm:$0xff] }
  0x1e   : > { %1684 = vperm.xlu1 %5383, %v1475_v8   ;;  %v1470_v34 = vld [vmem:[%s5853_s25 + $0x70] sm:$0xff]  ;;  %v1471_v35 = vld [vmem:[%s5853_s25 + $0x78] sm:$0xff]  ;;  %v5897_v37 = vld [vmem:[%s5889_s29] sm:$0xff]  ;;  %v7854_v8 = vmov 4  }
  0x1f   : > { %v5904_v39 = vld [vmem:[%s528_s18] sm:$0x3]  ;;  %v5907_v40 = vld [vmem:[%s5889_s29 + $0x8] sm:$0xff]  ;;  %v1167_v41 = vadd.s32 47, %v5897_v37  ;;  %v535_v44 = vld [vmem:[%s5889_s29 + $0x10] sm:$0xff]  ;;  %v655_v50 = vadd.s32 33, %v5897_v37 }
  0x20   : > { %v5914_v43 = vrot.slane %v5904_v39, %v1512_v38  ;;  %v656_v46 = vadd.s32 33, %v5907_v40  ;;  %v1169_v47 = vadd.s32 47, %v535_v44  ;;  %v5928_v51 = vld [vmem:[%s5889_s29 + $0x48] sm:$0xff]  ;;  %v657_v53 = vadd.s32 33, %v535_v44  ;;  %v5934_v54 = vld [vmem:[%s5889_s29 + $0x58] sm:$0xff]  ;;  %v5958_v3 = vld [vmem:[%s5889_s29 + $0x40] sm:$0xff] }
  0x21   : > { %1633 = vperm.xlu0 %5382, %v1458_v9   ;;  %v664_v52 = vadd.s32 33, %v5928_v51  ;;  %v5937_v55 = vld [vmem:[%s5889_s29 + $0x18] sm:$0xff]  ;;  %v666_v56 = vadd.s32 33, %v5934_v54  ;;  %v784_v58 = vadd.s32 38, %v5907_v40  ;;  %v785_v60 = vadd.s32 38, %v535_v44  ;;  %v5948_v61 = vld [vmem:[%s5889_s29 + $0x28] sm:$0xff] }
  0x22   : > { %1636 = vperm.xlu1 %5383, %v1459_v10   ;;  %vm1515_vm0 = vcmp.eq.s32.totalorder %v5894_v36, %v5914_v43  ;;  %vm1517_vm1 = vcmp.eq.s32.totalorder %v5911_v42, %v5914_v43  ;;  %v658_v57 = vadd.s32 33, %v5937_v55  ;;  %v911_v62 = vadd.s32 41, %v5897_v37  ;;  %v5954_v0 = vld [vmem:[%s5889_s29 + $0x38] sm:$0xff]  ;;  %v5963_v5 = vld [vmem:[%s5889_s29 + $0x50] sm:$0xff]  ;;  %v5968_v7 = vld [vmem:[%s5889_s29 + $0x68] sm:$0xff] }
  0x23   : > { %vm4658_vm2 = vmpackc.low %vm1517_vm1, %vm1515_vm0  ;;  %v913_v1 = vadd.s32 41, %v535_v44  ;;  %v914_v4 = vadd.s32 41, %v5937_v55  ;;  %v1040_v6 = vadd.s32 45, %v5907_v40  ;;  %v1041_v9 = vadd.s32 45, %v535_v44  ;;  %v5973_v10 = vld [vmem:[%s5889_s29 + $0x78] sm:$0xff] }
  0x24   : > { %4659 = vmatprep.mubr.msk.bf16.mxu1 %vm4658_vm2, %v5741_v48 }
  0x25   : > { %1687 = vperm.xlu0 %5382, %v1476_v11   ;;  %v5977_v11 = vld [vmem:[%s5889_s29 + $0x20] sm:$0xff] }
  0x26   : > { %1690 = vperm.xlu1 %5383, %v1477_v12   ;;  %v783_v12 = vadd.s32 38, %v5897_v37  ;;  %v915_v38 = vadd.s32 41, %v5977_v11 }
  0x29   : > { %1639 = vperm.xlu0 %5382, %v1460_v13   ;;  %v659_v13 = vadd.s32 33, %v5977_v11 }
  0x2a   : > { %1642 = vperm.xlu1 %5383, %v1461_v14   ;;  %v786_v14 = vadd.s32 38, %v5937_v55 }
  0x2d   : > { %1693 = vperm.xlu0 %5382, %v1478_v15   ;;  %v660_v15 = vadd.s32 33, %v5948_v61 }
  0x2e   : > { %1696 = vperm.xlu1 %5383, %v1479_v16   ;;  %v788_v16 = vadd.s32 38, %v5948_v61 }
  0x31   : > { %1645 = vperm.xlu0 %5382, %v1462_v17  }
  0x32   : > { %1648 = vperm.xlu1 %5383, %v1463_v18  }
  0x35   : > { %1699 = vperm.xlu0 %5382, %v1480_v19   ;;  %v5989_v19 = vand.u32 127, %v549_v33 }
  0x36   : > { %1702 = vperm.xlu1 %5383, %v1481_v20   ;;  %v791_v20 = vadd.s32 38, %v5958_v3 }
  0x39   : > { %1651 = vperm.xlu0 %5382, %v1464_v21   ;;  %v1168_v21 = vadd.s32 47, %v5907_v40 }
  0x3a   : > { %1654 = vperm.xlu1 %5383, %v1465_v22  }
  0x3d   : > { %1705 = vperm.xlu0 %5382, %v1482_v23  }
  0x3e   : > { %1708 = vperm.xlu1 %5383, %v1483_v24   ;;  %v794_v24 = vadd.s32 38, %v5934_v54 }
  0x41   : > { %1657 = vperm.xlu0 %5382, %v1466_v25  }
  0x42   : > { %1660 = vperm.xlu1 %5383, %v1467_v26  }
  0x45   : > { %1711 = vperm.xlu0 %5382, %v1484_v27   ;;  %v6002_v27 = vld [vmem:[%s5889_s29 + $0x30] sm:$0xff] }
  0x46   : > { %1714 = vperm.xlu1 %5383, %v1485_v28   ;;  %v796_v28 = vadd.s32 38, %v5968_v7 }
  0x49   : > { %1663 = vperm.xlu0 %5382, %v1468_v29  }
  0x4a   : > { %1666 = vperm.xlu1 %5383, %v1469_v30  }
  0x4d   : > { %1717 = vperm.xlu0 %5382, %v1486_v31   ;;  %v661_v31 = vadd.s32 33, %v6002_v27 }
  0x4e   : > { %1720 = vperm.xlu1 %5383, %v1487_v32   ;;  %v912_v32 = vadd.s32 41, %v5907_v40 }
  0x51   : > { %1669 = vperm.xlu0 %5382, %v1470_v34  }
  0x52   : > { %1672 = vperm.xlu1 %5383, %v1471_v35   ;;  %v662_v35 = vadd.s32 33, %v5954_v0 }
  0x55   : > { %5392 = vset.pattern.permute.xlu0 %v7858_v45 }
  0x56   : > { %555 = vperm.xlu1 %5383, %v5907_v40   ;;  %1184 = vperm.xlu0 %5392, %v1167_v41  }
  0x5a   : > { %5384 = vset.pattern.permute.xlu1 %v7866_v49  ;;  %1190 = vperm.xlu0 %5392, %v1169_v47   ;;  %v5429_v47 = vld [vmem:[%s7839_s3] sm:$0xff]  }
  0x5b   : > { %675 = vperm.xlu1 %5384, %v656_v46   ;;  %v918_v46 = vadd.s32 41, %v5954_v0  ;;  %5030 = vmatprep.subr.bf16.mxu0 %v5429_v47 }
  0x5c   : > { %5031 = vmatpush3.bf16.msra.mxu0 %v5429_v47  ;;  %v1046_v47 = vadd.s32 45, %v5954_v0 }
  0x5e   : > { %5396 = vset.pattern.permute.xlu0 %v7866_v49 }
  0x5f   : > { %5385 = vset.pattern.permute.xlu1 %v7856_v2  ;;  %672 = vperm.xlu0 %5396, %v655_v50  }
  0x60   : > { %558 = vperm.xlu1 %5385, %v535_v44   ;;  %v1170_v44 = vadd.s32 47, %v5937_v55 }
  0x63   : > { %699 = vperm.xlu0 %5396, %v664_v52  }
  0x64   : > { %5386 = vset.pattern.permute.xlu1 %v7866_v49 }
  0x65   : > { %678 = vperm.xlu1 %5386, %v657_v53   ;;  %v787_v53 = vadd.s32 38, %v5977_v11 }
  0x67   : > { %705 = vperm.xlu0 %5396, %v666_v56   ;;  %v920_v56 = vadd.s32 41, %v5928_v51 }
  0x69   : > { %681 = vperm.xlu1 %5386, %v658_v57   ;;  %v5430_v57 = vld [vmem:[%s7839_s3 + $0x8] sm:$0xff]  }
  0x6a   : > { %5032 = vmatprep.subr.bf16.mxu0 %v5430_v57 }
  0x6b   : > { %5406 = vset.pattern.permute.xlu0 %v7856_v2  ;;  %5033 = vmatpush3.bf16.msra.mxu0 %v5430_v57 }
  0x6c   : > { %552 = vperm.xlu0 %5406, %v5897_v37  }
  0x6d   : > { %5387 = vset.pattern.permute.xlu1 %v7855_v59 }
  0x6e   : > { %803 = vperm.xlu1 %5387, %v784_v58   ;;  %v6040_v58 = vld [vmem:[%s5889_s29 + $0x60] sm:$0xff] }
  0x70   : > { %561 = vperm.xlu0 %5406, %v5937_v55  }
  0x72   : > { %806 = vperm.xlu1 %5387, %v785_v60  }
  0x74   : > { %567 = vperm.xlu0 %5406, %v5948_v61  }
  0x76   : > { %5388 = vset.pattern.permute.xlu1 %v7853_v63 }
  0x77   : > { %928 = vperm.xlu1 %5388, %v911_v62  }
  0x78   : > { %573 = vperm.xlu0 %5406, %v5954_v0  }
  0x7b   : > { %934 = vperm.xlu1 %5388, %v913_v1   ;;  %v789_v1 = vadd.s32 38, %v6002_v27 }
  0x7c   : > { %576 = vperm.xlu0 %5406, %v5958_v3  }
  0x7f   : > { %937 = vperm.xlu1 %5388, %v914_v4   ;;  %v923_v4 = vadd.s32 41, %v6040_v58 }
  0x80   : > { %582 = vperm.xlu0 %5406, %v5963_v5  }
  0x83   : > { %5389 = vset.pattern.permute.xlu1 %v7854_v8 }
  0x84   : > { %1059 = vperm.xlu1 %5389, %v1040_v6   ;;  %591 = vperm.xlu0 %5406, %v5968_v7   ;;  %v5431_v6 = vld [vmem:[%s7839_s3 + $0x10] sm:$0xff]  }
  0x85   : > { %5034 = vmatprep.subr.bf16.mxu0 %v5431_v6 }
  0x86   : > { %5035 = vmatpush3.bf16.msra.mxu0 %v5431_v6  ;;  %v6136_v6 = vadd.s32 40, %v5894_v36 }
  0x88   : > { %1062 = vperm.xlu1 %5389, %v1041_v9   ;;  %597 = vperm.xlu0 %5406, %v5973_v10  }
  0x8c   : > { %5390 = vset.pattern.permute.xlu1 %v7856_v2  ;;  %5415 = vset.pattern.permute.xlu0 %v7855_v59 }
  0x8d   : > { %564 = vperm.xlu1 %5390, %v5977_v11   ;;  %800 = vperm.xlu0 %5415, %v783_v12  }
  0x91   : > { %5391 = vset.pattern.permute.xlu1 %v7866_v49  ;;  %809 = vperm.xlu0 %5415, %v786_v14   ;;  %v926_v14 = vadd.s32 41, %v5973_v10 }
  0x92   : > { %684 = vperm.xlu1 %5391, %v659_v13   ;;  %v790_v13 = vadd.s32 38, %v5954_v0 }
  0x94   : > { %v1676_v17 = vpop.permute.xlu0 %1675 }
  0x95   : > { %v1628_v18 = vpop.permute.xlu1 %1627  ;;  %815 = vperm.xlu0 %5415, %v788_v16   ;;  %vm1738_vm3 = vcmp.eq.s32.totalorder %v5989_v19, %v1676_v17 }
  0x96   : > { %687 = vperm.xlu1 %5391, %v660_v15   ;;  %vm1722_vm6 = vcmp.eq.s32.totalorder %v5989_v19, %v1628_v18  ;;  %v5432_v15 = vld [vmem:[%s7839_s3 + $0x18] sm:$0xff]   ;;  %v5433_v18 = vld [vmem:[%s7839_s3 + $0x20] sm:$0xff]  }
  0x97   : > { %5036 = vmatprep.subr.bf16.mxu0 %v5432_v15 }
  0x98   : > { %v1679_v22 = vpop.permute.xlu0 %1678  ;;  %5037 = vmatpush3.bf16.msra.mxu0 %v5432_v15  ;;  %v1177_v15 = vadd.s32 47, %v5963_v5 }
  0x99   : > { %v1631_v23 = vpop.permute.xlu1 %1630  ;;  %824 = vperm.xlu0 %5415, %v791_v20   ;;  %vm1739_vm5 = vcmp.eq.s32.totalorder %v5989_v19, %v1679_v22  ;;  %v916_v20 = vadd.s32 41, %v5948_v61  ;;  %5038 = vmatprep.subr.bf16.mxu0 %v5433_v18 }
  0x9a   : > { %vm1723_vm4 = vcmp.eq.s32.totalorder %v5989_v19, %v1631_v23  ;;  %5393 = vset.pattern.permute.xlu1 %v7858_v45  ;;  %vm4642_vm7 = vmpackc.low %vm1739_vm5, %vm1738_vm3  ;;  %v1039_v23 = vadd.s32 45, %v5897_v37  ;;  %v917_v37 = vadd.s32 41, %v6002_v27 }
  0x9b   : > { %1187 = vperm.xlu1 %5393, %v1168_v21   ;;  %4834 = vmatprep.subr.msk.bf16.mxu1 %vm4642_vm7, %v5741_v48  ;;  %vm4626_vm8 = vmpackc.low %vm1723_vm4, %vm1722_vm6 }
  0x9c   : > { %v1682_v25 = vpop.permute.xlu0 %1681  ;;  %4835 = vmatpush3.bf16.msk.msra.mxu1 %vm4626_vm8, %v5741_v48  ;;  %5039 = vmatpush3.bf16.msra.mxu0 %v5433_v18  ;;  %v6162_v18 = vadd.s32 56, %v5894_v36 }
  0x9d   : > { %v1685_v26 = vpop.permute.xlu1 %1684  ;;  %vm1740_vm9 = vcmp.eq.s32.totalorder %v5989_v19, %v1682_v25  ;;  %833 = vperm.xlu0 %5415, %v794_v24   ;;  %v5434_v24 = vld [vmem:[%s7839_s3 + $0x28] sm:$0xff]  }
  0x9e   : > { %vm1741_vm10 = vcmp.eq.s32.totalorder %v5989_v19, %v1685_v26  ;;  %5040 = vmatprep.subr.bf16.mxu0 %v5434_v24 }
  0x9f   : > { %vm4644_vm11 = vmpackc.low %vm1741_vm10, %vm1740_vm9  ;;  %5394 = vset.pattern.permute.xlu1 %v7856_v2 }
  0xa0   : > { %4836 = vmatprep.subr.msk.bf16.mxu1 %vm4644_vm11, %v5741_v48  ;;  %570 = vperm.xlu1 %5394, %v6002_v27   ;;  %v1634_v29 = vpop.permute.xlu0 %1633 }
  0xa1   : > { %v1637_v30 = vpop.permute.xlu1 %1636  ;;  %vm1724_vm12 = vcmp.eq.s32.totalorder %v5989_v19, %v1634_v29  ;;  %839 = vperm.xlu0 %5415, %v796_v28   ;;  %v1042_v28 = vadd.s32 45, %v5937_v55  ;;  %5041 = vmatpush3.bf16.msra.mxu0 %v5434_v24  ;;  %v5435_v29 = vld [vmem:[%s7839_s3 + $0x30] sm:$0xff]   ;;  %v1044_v55 = vadd.s32 45, %v5948_v61 }
  0xa2   : > { %vm1725_vm13 = vcmp.eq.s32.totalorder %v5989_v19, %v1637_v30  ;;  %5042 = vmatprep.subr.bf16.mxu0 %v5435_v29 }
  0xa3   : > { %vm4628_vm14 = vmpackc.low %vm1725_vm13, %vm1724_vm12 }
  0xa4   : > { %4837 = vmatpush3.bf16.msk.msra.mxu1 %vm4628_vm14, %v5741_v48  ;;  %5395 = vset.pattern.permute.xlu1 %v7866_v49  ;;  %v1688_v33 = vpop.permute.xlu0 %1687 }
  0xa5   : > { %v1691_v34 = vpop.permute.xlu1 %1690  ;;  %690 = vperm.xlu1 %5395, %v661_v31   ;;  %vm1742_vm15 = vcmp.eq.s32.totalorder %v5989_v19, %v1688_v33  ;;  %5419 = vset.pattern.permute.xlu0 %v7853_v63  ;;  %v5436_v33 = vld [vmem:[%s7839_s3 + $0x38] sm:$0xff]  }
  0xa6   : > { %vm1743_vm0 = vcmp.eq.s32.totalorder %v5989_v19, %v1691_v34  ;;  %931 = vperm.xlu0 %5419, %v912_v32   ;;  %v1043_v32 = vadd.s32 45, %v5977_v11  ;;  %5043 = vmatpush3.bf16.msra.mxu0 %v5435_v29  ;;  %v665_v29 = vadd.s32 33, %v5963_v5 }
  0xa7   : > { %vm4646_vm1 = vmpackc.low %vm1743_vm0, %vm1742_vm15  ;;  %5044 = vmatprep.subr.bf16.mxu0 %v5436_v33 }
  0xa8   : > { %4838 = vmatprep.subr.msk.bf16.mxu1 %vm4646_vm1, %v5741_v48  ;;  %v1640_v40 = vpop.permute.xlu0 %1639 }
  0xa9   : > { %v1643_v41 = vpop.permute.xlu1 %1642  ;;  %693 = vperm.xlu1 %5395, %v662_v35   ;;  %vm1726_vm2 = vcmp.eq.s32.totalorder %v5989_v19, %v1640_v40  ;;  %v7852_v40 = vsub.s32 0, %v5894_v36 }
  0xaa   : > { %vm1727_vm3 = vcmp.eq.s32.totalorder %v5989_v19, %v1643_v41  ;;  %940 = vperm.xlu0 %5419, %v915_v38   ;;  %v1045_v38 = vadd.s32 45, %v6002_v27  ;;  %v1047_v41 = vadd.s32 45, %v5958_v3  ;;  %5045 = vmatpush3.bf16.msra.mxu0 %v5436_v33  ;;  %v1173_v33 = vadd.s32 47, %v6002_v27 }
  0xab   : > { %vm4630_vm4 = vmpackc.low %vm1727_vm3, %vm1726_vm2  ;;  %v1174_v27 = vadd.s32 47, %v5954_v0 }
  0xac   : > { %4839 = vmatpush3.bf16.msk.msra.mxu1 %vm4630_vm4, %v5741_v48  ;;  %v1694_v50 = vpop.permute.xlu0 %1693 }
  0xad   : > { %v1697_v52 = vpop.permute.xlu1 %1696  ;;  %5397 = vset.pattern.permute.xlu1 %v7858_v45  ;;  %vm1744_vm5 = vcmp.eq.s32.totalorder %v5989_v19, %v1694_v50  ;;  %v6102_v50 = vrot.slane %v5904_v39, %v7852_v40  ;;  %v1052_v39 = vadd.s32 45, %v5968_v7 }
  0xae   : > { %vm1745_vm6 = vcmp.eq.s32.totalorder %v5989_v19, %v1697_v52  ;;  %1193 = vperm.xlu1 %5397, %v1170_v44   ;;  %949 = vperm.xlu0 %5419, %v918_v46   ;;  %v1050_v52 = vadd.s32 45, %v5934_v54 }
  0xaf   : > { %vm4648_vm7 = vmpackc.low %vm1745_vm6, %vm1744_vm5 }
  0xb0   : > { %4840 = vmatprep.subr.msk.bf16.mxu1 %vm4648_vm7, %v5741_v48  ;;  %v1646_v60 = vpop.permute.xlu0 %1645 }
  0xb1   : > { %v1649_v62 = vpop.permute.xlu1 %1648  ;;  %vm1728_vm8 = vcmp.eq.s32.totalorder %v5989_v19, %v1646_v60 }
  0xb2   : > { %vm1729_vm9 = vcmp.eq.s32.totalorder %v5989_v19, %v1649_v62  ;;  %5398 = vset.pattern.permute.xlu1 %v7855_v59  ;;  %955 = vperm.xlu0 %5419, %v920_v56   ;;  %v6111_v56 = vadd.s32 24, %v5894_v36 }
  0xb3   : > { %vm4632_vm10 = vmpackc.low %vm1729_vm9, %vm1728_vm8  ;;  %812 = vperm.xlu1 %5398, %v787_v53   ;;  %v6108_v53 = vadd.s32 16, %v5894_v36 }
  0xb4   : > { %4841 = vmatpush3.bf16.msk.msra.mxu1 %vm4632_vm10, %v5741_v48  ;;  %v1700_v9 = vpop.permute.xlu0 %1699 }
  0xb5   : > { %v1703_v12 = vpop.permute.xlu1 %1702  ;;  %vm1746_vm11 = vcmp.eq.s32.totalorder %v5989_v19, %v1700_v9  ;;  %v1175_v9 = vadd.s32 47, %v5958_v3 }
  0xb6   : > { %vm1747_vm12 = vcmp.eq.s32.totalorder %v5989_v19, %v1703_v12  ;;  %964 = vperm.xlu0 %5419, %v923_v4   ;;  %v6133_v4 = vadd.s32 32, %v5894_v36  ;;  %v663_v12 = vadd.s32 33, %v5958_v3 }
  0xb7   : > { %vm4650_vm13 = vmpackc.low %vm1747_vm12, %vm1746_vm11  ;;  %818 = vperm.xlu1 %5398, %v789_v1  }
  0xb8   : > { %4842 = vmatprep.subr.msk.bf16.mxu1 %vm4650_vm13, %v5741_v48  ;;  %v1652_v16 = vpop.permute.xlu0 %1651 }
  0xb9   : > { %v1655_v17 = vpop.permute.xlu1 %1654  ;;  %vm1730_vm14 = vcmp.eq.s32.totalorder %v5989_v19, %v1652_v16  ;;  %v1171_v16 = vadd.s32 47, %v5977_v11  ;;  %v1172_v11 = vadd.s32 47, %v5948_v61 }
  0xba   : > { %vm1731_vm15 = vcmp.eq.s32.totalorder %v5989_v19, %v1655_v17  ;;  %973 = vperm.xlu0 %5419, %v926_v14   ;;  %v6159_v17 = vadd.s32 48, %v5894_v36 }
  0xbb   : > { %vm4634_vm0 = vmpackc.low %vm1731_vm15, %vm1730_vm14  ;;  %821 = vperm.xlu1 %5398, %v790_v13  }
  0xbc   : > { %4843 = vmatpush3.bf16.msk.msra.mxu1 %vm4634_vm0, %v5741_v48  ;;  %v1706_v21 = vpop.permute.xlu0 %1705  ;;  %vm1514_vm0 = vcmp.eq.s32.totalorder %v5894_v36, %v6102_v50 }
  0xbd   : > { %v1709_v22 = vpop.permute.xlu1 %1708  ;;  %vm1748_vm1 = vcmp.eq.s32.totalorder %v5989_v19, %v1706_v21 }
  0xbe   : > { %vm1749_vm2 = vcmp.eq.s32.totalorder %v5989_v19, %v1709_v22  ;;  %5421 = vset.pattern.permute.xlu0 %v7854_v8 }
  0xbf   : > { %vm4652_vm3 = vmpackc.low %vm1749_vm2, %vm1748_vm1  ;;  %5399 = vset.pattern.permute.xlu1 %v7853_v63  ;;  %1056 = vperm.xlu0 %5421, %v1039_v23   ;;  %vm1516_vm1 = vcmp.eq.s32.totalorder %v5911_v42, %v6102_v50  ;;  %v1182_v23 = vadd.s32 47, %v5973_v10 }
  0xc0   : > { %4844 = vmatprep.subr.msk.bf16.mxu1 %vm4652_vm3, %v5741_v48  ;;  %943 = vperm.xlu1 %5399, %v916_v20   ;;  %v1658_v25 = vpop.permute.xlu0 %1657  ;;  %v1179_v20 = vadd.s32 47, %v6040_v58 }
  0xc1   : > { %v1661_v26 = vpop.permute.xlu1 %1660  ;;  %vm1732_vm4 = vcmp.eq.s32.totalorder %v5989_v19, %v1658_v25  ;;  %v6190_v25 = vadd.s32 72, %v5894_v36 }
  0xc2   : > { %vm1733_vm5 = vcmp.eq.s32.totalorder %v5989_v19, %v1661_v26 }
  0xc3   : > { %vm4636_vm6 = vmpackc.low %vm1733_vm5, %vm1732_vm4  ;;  %1065 = vperm.xlu0 %5421, %v1042_v28   ;;  %vm1519_vm4 = vcmp.eq.s32.totalorder %v6108_v53, %v5914_v43  ;;  %vm1521_vm5 = vcmp.eq.s32.totalorder %v6111_v56, %v5914_v43 }
  0xc4   : > { %4845 = vmatpush3.bf16.msk.msra.mxu1 %vm4636_vm6, %v5741_v48  ;;  %946 = vperm.xlu1 %5399, %v917_v37   ;;  %v1712_v30 = vpop.permute.xlu0 %1711  ;;  %v6187_v37 = vadd.s32 64, %v5894_v36 }
  0xc5   : > { %v1715_v31 = vpop.permute.xlu1 %1714  ;;  %vm1750_vm7 = vcmp.eq.s32.totalorder %v5989_v19, %v1712_v30 }
  0xc6   : > { %vm1751_vm8 = vcmp.eq.s32.totalorder %v5989_v19, %v1715_v31 }
  0xc7   : > { %vm4654_vm9 = vmpackc.low %vm1751_vm8, %vm1750_vm7  ;;  %1071 = vperm.xlu0 %5421, %v1044_v55   ;;  %v6218_v55 = vadd.s32 88, %v5894_v36 }
  0xc8   : > { %4846 = vmatprep.subr.msk.bf16.mxu1 %vm4654_vm9, %v5741_v48  ;;  %5400 = vset.pattern.permute.xlu1 %v7854_v8  ;;  %v1664_v34 = vpop.permute.xlu0 %1663  ;;  %vm4660_vm7 = vmpackc.low %vm1516_vm1, %vm1514_vm0  ;;  %vm1518_vm9 = vcmp.eq.s32.totalorder %v6108_v53, %v6102_v50  ;;  %vm1524_vm0 = vcmp.eq.s32.totalorder %v6136_v6, %v6102_v50  ;;  %vm1527_vm1 = vcmp.eq.s32.totalorder %v6159_v17, %v5914_v43 }
  0xc9   : > { %v1667_v35 = vpop.permute.xlu1 %1666  ;;  %1068 = vperm.xlu1 %5400, %v1043_v32   ;;  %vm1734_vm10 = vcmp.eq.s32.totalorder %v5989_v19, %v1664_v34  ;;  %vm4662_vm8 = vmpackc.low %vm1521_vm5, %vm1519_vm4  ;;  %vm1526_vm5 = vcmp.eq.s32.totalorder %v6159_v17, %v6102_v50  ;;  %v6215_v32 = vadd.s32 80, %v5894_v36  ;;  %7879 = vst [vmem:[#allocation6_spill] sm:$0xff] %v6218_v55 }
  0xca   : > { %vm1735_vm11 = vcmp.eq.s32.totalorder %v5989_v19, %v1667_v35 }
  0xcb   : > { %vm4638_vm12 = vmpackc.low %vm1735_vm11, %vm1734_vm10  ;;  %1080 = vperm.xlu0 %5421, %v1047_v41   ;;  %vm1520_vm10 = vcmp.eq.s32.totalorder %v6111_v56, %v6102_v50  ;;  %vm1523_vm11 = vcmp.eq.s32.totalorder %v6133_v4, %v5914_v43  ;;  %7878 = vst [vmem:[#allocation5_spill] sm:$0xff] %v6215_v32 }
  0xcc   : > { %4847 = vmatpush3.bf16.msk.msra.mxu1 %vm4638_vm12, %v5741_v48  ;;  %v1718_v44 = vpop.permute.xlu0 %1717  ;;  %vm1525_vm12 = vcmp.eq.s32.totalorder %v6136_v6, %v5914_v43 }
  0xcd   : > { %v1721_v46 = vpop.permute.xlu1 %1720  ;;  %1074 = vperm.xlu1 %5400, %v1045_v38   ;;  %vm1752_vm13 = vcmp.eq.s32.totalorder %v5989_v19, %v1718_v44  ;;  %v6242_v44 = vadd.s32 96, %v5894_v36 }
  0xce   : > { %vm1753_vm14 = vcmp.eq.s32.totalorder %v5989_v19, %v1721_v46  ;;  %v6245_v46 = vadd.s32 104, %v5894_v36 }
  0xcf   : > { %vm4656_vm15 = vmpackc.low %vm1753_vm14, %vm1752_vm13  ;;  %1089 = vperm.xlu0 %5421, %v1050_v52   ;;  %7880 = vst [vmem:[#allocation7_spill] sm:$0xff] %v6242_v44  ;;  %v792_v52 = vadd.s32 38, %v5928_v51 }
  0xd0   : > { %4848 = vmatprep.subr.msk.bf16.mxu1 %vm4656_vm15, %v5741_v48  ;;  %v1670_v57 = vpop.permute.xlu0 %1669  ;;  %vm4664_vm13 = vmpackc.low %vm1520_vm10, %vm1518_vm9  ;;  %vm1522_vm15 = vcmp.eq.s32.totalorder %v6133_v4, %v6102_v50  ;;  %7881 = vst [vmem:[#allocation8_spill] sm:$0xff] %v6245_v46 }
  0xd1   : > { %v1673_v60 = vpop.permute.xlu1 %1672  ;;  %1077 = vperm.xlu1 %5400, %v1046_v47   ;;  %vm1736_vm2 = vcmp.eq.s32.totalorder %v5989_v19, %v1670_v57  ;;  %vm4666_vm14 = vmpackc.low %vm1525_vm12, %vm1523_vm11  ;;  %vm1530_vm11 = vcmp.eq.s32.totalorder %v6187_v37, %v6102_v50  ;;  %vm1532_vm12 = vcmp.eq.s32.totalorder %v6190_v25, %v6102_v50 }
  0xd2   : > { %vm1737_vm3 = vcmp.eq.s32.totalorder %v5989_v19, %v1673_v60  ;;  %v793_v60 = vadd.s32 38, %v5963_v5 }
  0xd3   : > { %vm4640_vm6 = vmpackc.low %vm1737_vm3, %vm1736_vm2  ;;  %1095 = vperm.xlu0 %5421, %v1052_v39   ;;  %vm1529_vm2 = vcmp.eq.s32.totalorder %v6162_v18, %v5914_v43 }
  0xd4   : > { %4849 = vmatpush3.bf16.msk.msra.mxu1 %vm4640_vm6, %v5741_v48  ;;  %vm4668_vm3 = vmpackc.low %vm1524_vm0, %vm1522_vm15  ;;  %vm1528_vm6 = vcmp.eq.s32.totalorder %v6162_v18, %v6102_v50 }
  0xd5   : > { %v6126_v62 = vpop.permute.xlu1 %555  ;;  %5401 = vset.pattern.permute.xlu1 %v7856_v2  ;;  %v6130_v1 = vpop.permute.xlu0 %1184  ;;  %vm4670_vm4 = vmpackc.low %vm1529_vm2, %vm1527_vm1  ;;  %vm1534_vm1 = vcmp.eq.s32.totalorder %v6215_v32, %v6102_v50  ;;  %vm1536_vm2 = vcmp.eq.s32.totalorder %v6218_v55, %v6102_v50 }
  0xd6   : > { %579 = vperm.xlu1 %5401, %v5928_v51   ;;  %vm4672_vm9 = vmpackc.low %vm1528_vm6, %vm1526_vm5 }
  0xd7   : > { %4661 = vmatmul.mubr.msk.bf16.vlgmr.msra.gmra.mrb[0].mxu1 %vm4660_vm7, %v5741_v48  ;;  %5423 = vset.pattern.permute.xlu0 %v7858_v45  ;;  %vm1531_vm7 = vcmp.eq.s32.totalorder %v6187_v37, %v5914_v43  ;;  %vm4676_vm15 = vmpackc.low %vm1532_vm12, %vm1530_vm11 }
  0xd8   : > { %4663 = vmatprep.mubr.msk.bf16.mxu1 %vm4662_vm8, %v5741_v48  ;;  %1208 = vperm.xlu0 %5423, %v1175_v9   ;;  %vm1533_vm8 = vcmp.eq.s32.totalorder %v6190_v25, %v5914_v43  ;;  %vm4680_vm5 = vmpackc.low %vm1536_vm2, %vm1534_vm1  ;;  %v6269_v9 = vadd.s32 112, %v5894_v36  ;;  %vm600_vm1 = vcmp.eq.s32.totalorder %v5989_v19, %v6126_v62  ;;  %v7874_v62 = vmov 0.0  }
  0xd9   : > { %v6150_v14 = vpop.permute.xlu0 %1190  ;;  %vm4674_vm10 = vmpackc.low %vm1533_vm8, %vm1531_vm7  ;;  %vm1538_vm7 = vcmp.eq.s32.totalorder %v6242_v44, %v6102_v50  ;;  %vm1540_vm8 = vcmp.eq.s32.totalorder %v6245_v46, %v6102_v50 }
  0xda   : > { %v6147_v13 = vpop.permute.xlu1 %675  ;;  %5402 = vset.pattern.permute.xlu1 %v7866_v49  ;;  %7882 = vst [vmem:[#allocation9_spill] sm:$0xff] %v6269_v9  ;;  %vm4684_vm11 = vmpackc.low %vm1540_vm8, %vm1538_vm7 }
  0xdb   : > { %696 = vperm.xlu1 %5402, %v663_v12   ;;  %v6272_v12 = vadd.s32 120, %v5894_v36  ;;  %vm720_vm2 = vcmp.eq.s32.totalorder %v5989_v19, %v6147_v13 }
  0xdc   : > { %1214 = vperm.xlu0 %5423, %v1177_v15  }
  0xdd   : > { %7883 = vst [vmem:[#allocation10_spill] sm:$0xff] %v6272_v12 }
  0xde   : > { %v6169_v22 = vpop.permute.xlu0 %672 }
  0xdf   : > { %4665 = vmatmul.mubr.msk.bf16.gmra.mrb[4].mxu1 %vm4664_vm13, %v5741_v48  ;;  %v6166_v21 = vpop.permute.xlu1 %558  ;;  %5403 = vset.pattern.permute.xlu1 %v7858_v45  ;;  %vm1535_vm13 = vcmp.eq.s32.totalorder %v6215_v32, %v5914_v43 }
  0xe0   : > { %1196 = vperm.xlu1 %5403, %v1171_v16   ;;  %4667 = vmatprep.mubr.msk.bf16.mxu1 %vm4666_vm14, %v5741_v48  ;;  %vm1537_vm14 = vcmp.eq.s32.totalorder %v6218_v55, %v5914_v43  ;;  %v919_v16 = vadd.s32 41, %v5958_v3  ;;  %v921_v3 = vadd.s32 41, %v5963_v5 }
  0xe1   : > { %1220 = vperm.xlu0 %5423, %v1179_v20   ;;  %vm4678_vm0 = vmpackc.low %vm1537_vm14, %vm1535_vm13  ;;  %vm1542_vm13 = vcmp.eq.s32.totalorder %v6269_v9, %v6102_v50  ;;  %vm1544_vm14 = vcmp.eq.s32.totalorder %v6272_v12, %v6102_v50 }
  0xe2   : > { %v6182_v24 = vpop.permute.xlu0 %699 }
  0xe4   : > { %v6184_v61 = vpop.permute.xlu1 %678  ;;  %1199 = vperm.xlu1 %5403, %v1172_v11  }
  0xe5   : > { %1229 = vperm.xlu0 %5423, %v1182_v23   ;;  %vm721_vm8 = vcmp.eq.s32.totalorder %v5989_v19, %v6184_v61 }
  0xe6   : > { %v6193_v26 = vpop.permute.xlu0 %705 }
  0xe7   : > { %4669 = vmatmul.mubr.msk.bf16.gmra.mrb[8].mxu1 %vm4668_vm3, %v5741_v48  ;;  %vm1539_vm3 = vcmp.eq.s32.totalorder %v6242_v44, %v5914_v43 }
  0xe8   : > { %v6195_v28 = vpop.permute.xlu1 %681  ;;  %5404 = vset.pattern.permute.xlu1 %v7856_v2  ;;  %4671 = vmatprep.mubr.msk.bf16.mxu1 %vm4670_vm4, %v5741_v48  ;;  %vm1541_vm4 = vcmp.eq.s32.totalorder %v6245_v46, %v5914_v43 }
  0xe9   : > { %585 = vperm.xlu1 %5404, %v5934_v54   ;;  %vm4682_vm6 = vmpackc.low %vm1541_vm4, %vm1539_vm3  ;;  %vm719_vm3 = vcmp.eq.s32.totalorder %v5989_v19, %v6169_v22  ;;  %v4443_v22 = vsel %vm600_vm1, 1.0, %v7874_v62 }
  0xeb   : > { %v6209_v30 = vpop.permute.xlu0 %552 }
  0xed   : > { %v6211_v31 = vpop.permute.xlu1 %803  ;;  %5405 = vset.pattern.permute.xlu1 %v7866_v49 }
  0xee   : > { %702 = vperm.xlu1 %5405, %v665_v29  }
  0xef   : > { %4673 = vmatmul.mubr.msk.bf16.gmra.mrb[12].mxu1 %vm4672_vm9, %v5741_v48  ;;  %v6222_v34 = vpop.permute.xlu0 %561  ;;  %vm1543_vm9 = vcmp.eq.s32.totalorder %v6269_v9, %v5914_v43 }
  0xf0   : > { %4675 = vmatprep.mubr.msk.bf16.mxu1 %vm4674_vm10, %v5741_v48  ;;  %vm1545_vm10 = vcmp.eq.s32.totalorder %v6272_v12, %v5914_v43  ;;  %v922_v43 = vadd.s32 41, %v5934_v54  ;;  %v7887_v12 = vmov 5   ;;  %vm602_vm4 = vcmp.eq.s32.totalorder %v5989_v19, %v6222_v34 }
  0xf1   : > { %v6225_v35 = vpop.permute.xlu1 %806  ;;  %vm4686_vm12 = vmpackc.low %vm1545_vm10, %vm1543_vm9  ;;  %v4458_v34 = vsel %vm719_vm3, 1.0, %v7874_v62  ;;  %vm848_vm9 = vcmp.eq.s32.totalorder %v5989_v19, %v6211_v31  ;;  %v4460_v31 = vsel %vm721_vm8, 1.0, %v7874_v62 }
  0xf2   : > { %5407 = vset.pattern.permute.xlu1 %v7858_v45 }
  0xf3   : > { %1202 = vperm.xlu1 %5407, %v1173_v33   ;;  %v6237_v38 = vpop.permute.xlu0 %567 }
  0xf6   : > { %v6239_v41 = vpop.permute.xlu1 %928 }
  0xf7   : > { %4677 = vmatmul.mubr.msk.bf16.gmra.mrb[16].mxu1 %vm4676_vm15, %v5741_v48  ;;  %1205 = vperm.xlu1 %5407, %v1174_v27   ;;  %v6248_v47 = vpop.permute.xlu0 %573  ;;  %vm4688_vm15 = vmpackc.low %vm1544_vm14, %vm1542_vm13  ;;  %vm975_vm13 = vcmp.eq.s32.totalorder %v5989_v19, %v6239_v41  ;;  %vm1231_vm14 = vcmp.eq.s32.totalorder %v5989_v19, %v6130_v1 }
  0xf8   : > { %4679 = vmatprep.mubr.msk.bf16.mxu1 %vm4678_vm0, %v5741_v48  ;;  %vm599_vm0 = vcmp.eq.s32.totalorder %v5989_v19, %v6209_v30  ;;  %v4459_v30 = vsel %vm720_vm2, 1.0, %v7874_v62  ;;  %vm1233_vm2 = vcmp.eq.s32.totalorder %v5989_v19, %v6150_v14  ;;  %v924_v14 = vadd.s32 41, %v5968_v7 }
  0xf9   : > { %v4442_v13 = vsel %vm599_vm0, 1.0, %v7874_v62  ;;  %v767_v32 = vpack.c.bf16 %v4459_v30, %v4458_v34 }
  0xfa   : > { %v6256_v0 = vpop.permute.xlu1 %934 }
  0xfb   : > { %5408 = vset.pattern.permute.xlu1 %v7855_v59  ;;  %v6263_v57 = vpop.permute.xlu0 %576  ;;  %vm977_vm3 = vcmp.eq.s32.totalorder %v5989_v19, %v6256_v0 }
  0xfc   : > { %827 = vperm.xlu1 %5408, %v792_v52   ;;  %v1048_v52 = vadd.s32 45, %v5928_v51 }
  0xfe   : > { %v6266_v39 = vpop.permute.xlu1 %937 }
  0xff   : > { %4681 = vmatmul.mubr.msk.bf16.gmra.mrb[20].mxu1 %vm4680_vm5, %v5741_v48  ;;  %v6275_v15 = vpop.permute.xlu0 %582  ;;  %vm601_vm5 = vcmp.eq.s32.totalorder %v5989_v19, %v6166_v21 }
 0x100   : > { %830 = vperm.xlu1 %5408, %v793_v60   ;;  %4683 = vmatprep.mubr.msk.bf16.mxu1 %vm4682_vm6, %v5741_v48  ;;  %vm722_vm6 = vcmp.eq.s32.totalorder %v5989_v19, %v6195_v28  ;;  %v4444_v21 = vsel %vm601_vm5, 1.0, %v7874_v62 }
 0x101   : > { %v4461_v28 = vsel %vm722_vm6, 1.0, %v7874_v62 }
 0x102   : > { %v768_v30 = vpack.c.bf16 %v4461_v28, %v4460_v31 }
 0x103   : > { %v6287_v20 = vpop.permute.xlu1 %1059  ;;  %v6290_v11 = vpop.permute.xlu0 %591 }
 0x104   : > { %5409 = vset.pattern.permute.xlu1 %v7853_v63  ;;  %7884 = vst [vmem:[#allocation11_spill] sm:$0xff] %v6290_v11  ;;  %v4490_v11 = vsel %vm975_vm13, 1.0, %v7874_v62  ;;  %vm1104_vm0 = vcmp.eq.s32.totalorder %v5989_v19, %v6287_v20  ;;  %v4492_v20 = vsel %vm977_vm3, 1.0, %v7874_v62 }
 0x105   : > { %952 = vperm.xlu1 %5409, %v919_v16  }
 0x107   : > { %4685 = vmatmul.mubr.msk.bf16.gmra.mrb[24].mxu1 %vm4684_vm11, %v5741_v48  ;;  %v6294_v23 = vpop.permute.xlu1 %1062  ;;  %v6296_v29 = vpop.permute.xlu0 %597 }
 0x108   : > { %7885 = vst [vmem:[#allocation12_spill] sm:$0xff] %v6296_v29  ;;  %4687 = vmatprep.mubr.msk.bf16.mxu1 %vm4686_vm12, %v5741_v48  ;;  %vm849_vm12 = vcmp.eq.s32.totalorder %v5989_v19, %v6225_v35  ;;  %v795_v35 = vadd.s32 38, %v6040_v58  ;;  %vm1105_vm5 = vcmp.eq.s32.totalorder %v5989_v19, %v6294_v23  ;;  %v7893_v23 = vmov 3  }
 0x109   : > { %958 = vperm.xlu1 %5409, %v921_v3   ;;  %v1049_v3 = vadd.s32 45, %v5963_v5  ;;  %v4476_v41 = vsel %vm849_vm12, 1.0, %v7874_v62 }
 0x10c   : > { %v6304_v33 = vpop.permute.xlu1 %564  ;;  %v6306_v27 = vpop.permute.xlu0 %800 }
 0x10d   : > { %961 = vperm.xlu1 %5409, %v922_v43   ;;  %vm847_vm7 = vcmp.eq.s32.totalorder %v5989_v19, %v6306_v27  ;;  %v647_v27 = vpack.c.bf16 %v4443_v22, %v4442_v13 }
 0x10f   : > { %4689 = vmatmul.mubr.msk.bf16.gmra.mrb[28].mxu1 %vm4688_vm15, %v5741_v48  ;;  %v667_v48 = vadd.s32 33, %v6040_v58  ;;  %vm978_vm15 = vcmp.eq.s32.totalorder %v5989_v19, %v6266_v39 }
 0x110   : > { %v6313_v16 = vpop.permute.xlu0 %809 }
 0x111   : > { %5410 = vset.pattern.permute.xlu1 %v7854_v8  ;;  %v6311_v60 = vpop.permute.xlu1 %684  ;;  %vm850_vm10 = vcmp.eq.s32.totalorder %v5989_v19, %v6313_v16 }
 0x112   : > { %1083 = vperm.xlu1 %5410, %v1048_v52   ;;  %v668_v52 = vadd.s32 33, %v5968_v7  ;;  %v4477_v13 = vsel %vm850_vm10, 1.0, %v7874_v62  ;;  %v7894_v7 = vmov 4   ;;  %vm603_vm10 = vcmp.eq.s32.totalorder %v5989_v19, %v6304_v33 }
 0x114   : > { %v6318_v40 = vpop.permute.xlu0 %815 }
 0x115   : > { %v6316_v50 = vpop.permute.xlu1 %687  ;;  %vm852_vm12 = vcmp.eq.s32.totalorder %v5989_v19, %v6318_v40  ;;  %v4446_v40 = vsel %vm603_vm10, 1.0, %v7874_v62 }
 0x116   : > { %1086 = vperm.xlu1 %5410, %v1049_v3   ;;  %vm724_vm8 = vcmp.eq.s32.totalorder %v5989_v19, %v6316_v50 }
 0x118   : > { %v6320_v43 = vpop.permute.xlu0 %824 }
 0x11a   : > { %5411 = vset.pattern.permute.xlu1 %v7856_v2  ;;  %v6323_v63 = vpop.permute.xlu1 %1187  ;;  %v1176_v2 = vadd.s32 47, %v5928_v51 }
 0x11b   : > { %588 = vperm.xlu1 %5411, %v6040_v58   ;;  %vm1232_vm1 = vcmp.eq.s32.totalorder %v5989_v19, %v6323_v63 }
 0x11c   : > { %v6327_v8 = vpop.permute.xlu0 %833 }
 0x11f   : > { %5412 = vset.pattern.permute.xlu1 %v7866_v49  ;;  %v6330_v5 = vpop.permute.xlu1 %570  ;;  %v6344_v49 = vld [vmem:[%s5889_s29 + $0x70] sm:$0xff] }
 0x120   : > { %708 = vperm.xlu1 %5412, %v667_v48   ;;  %v6333_v3 = vpop.permute.xlu0 %839  ;;  %v7888_v48 = vmov 0   ;;  %v669_v51 = vadd.s32 33, %v6344_v49  ;;  %v797_v39 = vadd.s32 38, %v6344_v49 }
 0x121   : > { %7886 = vst [vmem:[#allocation13_spill] sm:$0xff] %v6333_v3  ;;  %v7889_v3 = vmov 1  }
 0x124   : > { %711 = vperm.xlu1 %5412, %v668_v52   ;;  %v6335_v59 = vpop.permute.xlu1 %690 }
 0x125   : > { %v932_v45 = vpop.permute.xlu0 %931 }
 0x126   : > { %vm976_vm11 = vcmp.eq.s32.totalorder %v5989_v19, %v932_v45  ;;  %v4475_v45 = vsel %vm848_vm9, 1.0, %v7874_v62  ;;  %vm604_vm9 = vcmp.eq.s32.totalorder %v5989_v19, %v6237_v38 }
 0x127   : > { %v4491_v22 = vsel %vm976_vm11, 1.0, %v7874_v62  ;;  %vm723_vm11 = vcmp.eq.s32.totalorder %v5989_v19, %v6311_v60  ;;  %v4447_v38 = vsel %vm604_vm9, 1.0, %v7874_v62  ;;  %v1054_v60 = vadd.s32 45, %v5973_v10 }
 0x128   : > { %5413 = vset.pattern.permute.xlu1 %v7887_v12  ;;  %v6339_v9 = vpop.permute.xlu1 %693  ;;  %v1023_v1 = vpack.c.bf16 %v4491_v22, %v4490_v11  ;;  %v4507_v11 = vsel %vm1104_vm0, 1.0, %v7874_v62 }
 0x129   : > { %1211 = vperm.xlu1 %5413, %v1176_v2   ;;  %v6341_v46 = vpop.permute.xlu0 %940  ;;  %v670_v2 = vadd.s32 33, %v5973_v10 }
 0x12d   : > { %5414 = vset.pattern.permute.xlu1 %v7888_v48  ;;  %v6347_v44 = vpop.permute.xlu1 %1193  ;;  %v6350_v52 = vpop.permute.xlu0 %949  ;;  %v1178_v48 = vadd.s32 47, %v5934_v54  ;;  %v4445_v54 = vsel %vm602_vm4, 1.0, %v7874_v62 }
 0x12e   : > { %594 = vperm.xlu1 %5414, %v6344_v49   ;;  %v648_v16 = vpack.c.bf16 %v4445_v54, %v4444_v21  ;;  %v896_v54 = vpack.c.bf16 %v4477_v13, %v4476_v41  ;;  %v4522_v21 = vsel %vm1231_vm14, 1.0, %v7874_v62  ;;  %vm1234_vm6 = vcmp.eq.s32.totalorder %v5989_v19, %v6347_v44 }
 0x12f   : > { %v4524_v44 = vsel %vm1233_vm2, 1.0, %v7874_v62  ;;  %vm979_vm14 = vcmp.eq.s32.totalorder %v5989_v19, %v6341_v46  ;;  %vm982_vm9 = vcmp.eq.s32.totalorder %v5989_v19, %v6350_v52 }
 0x130   : > { %v4494_v46 = vsel %vm979_vm14, 1.0, %v7874_v62  ;;  %v4497_v52 = vsel %vm982_vm9, 1.0, %v7874_v62 }
 0x131   : > { %v6356_v29 = vpop.permute.xlu0 %955 }
 0x132   : > { %5416 = vset.pattern.permute.xlu1 %v7889_v3  ;;  %v6354_v55 = vpop.permute.xlu1 %812 }
 0x133   : > { %714 = vperm.xlu1 %5416, %v669_v51   ;;  %vm851_vm13 = vcmp.eq.s32.totalorder %v5989_v19, %v6354_v55  ;;  %v4479_v55 = vsel %vm852_vm12, 1.0, %v7874_v62 }
 0x135   : > { %v6371_v51 = vpop.permute.xlu0 %964 }
 0x136   : > { %v6369_v3 = vpop.permute.xlu1 %818  ;;  %7890 = vst [vmem:[#allocation14_spill] sm:$0xff] %v6371_v51 }
 0x137   : > { %717 = vperm.xlu1 %5416, %v670_v2   ;;  %v4474_v2 = vsel %vm847_vm7, 1.0, %v7874_v62  ;;  %vm853_vm10 = vcmp.eq.s32.totalorder %v5989_v19, %v6369_v3 }
 0x138   : > { %v895_v34 = vpack.c.bf16 %v4475_v45, %v4474_v2  ;;  %v4493_v2 = vsel %vm978_vm15, 1.0, %v7874_v62  ;;  %v4523_v45 = vsel %vm1232_vm1, 1.0, %v7874_v62  ;;  %v4480_v3 = vsel %vm853_vm10, 1.0, %v7874_v62 }
 0x139   : > { %v6397_v61 = vpop.permute.xlu0 %973  ;;  %v1279_v41 = vpack.c.bf16 %v4523_v45, %v4522_v21 }
 0x13a   : > { %v6395_v51 = vpop.permute.xlu1 %821  ;;  %7891 = vst [vmem:[#allocation15_spill] sm:$0xff] %v6397_v61  ;;  %v775_v61 = vadd.bf16 %v767_v32, %v647_v27  ;;  %v776_v32 = vadd.bf16 %v768_v30, %v648_v16  ;;  %v7892_v27 = vmov 2  }
 0x13b   : > { %5417 = vset.pattern.permute.xlu1 %v7887_v12 }
 0x13c   : > { %1217 = vperm.xlu1 %5417, %v1178_v48   ;;  %v903_v31 = vadd.bf16 %v895_v34, %v775_v61  ;;  %v904_v16 = vadd.bf16 %v896_v54, %v776_v32  ;;  %v798_v34 = vadd.s32 38, %v5973_v10  ;;  %v4508_v54 = vsel %vm1105_vm5, 1.0, %v7874_v62 }
 0x13d   : > { %v649_v10 = vpack.c.bf16 %v4447_v38, %v4446_v40  ;;  %vm606_vm5 = vcmp.eq.s32.totalorder %v5989_v19, %v6248_v47 }
 0x13e   : > { %v1057_v28 = vpop.permute.xlu0 %1056  ;;  %v1031_v22 = vadd.bf16 %v1023_v1, %v903_v31  ;;  %v4525_v1 = vsel %vm1234_vm6, 1.0, %v7874_v62  ;;  %vm605_vm6 = vcmp.eq.s32.totalorder %v5989_v19, %v6330_v5 }
 0x13f   : > { %v6419_v48 = vpop.permute.xlu1 %943  ;;  %vm1103_vm4 = vcmp.eq.s32.totalorder %v5989_v19, %v1057_v28  ;;  %v1280_v31 = vpack.c.bf16 %v4525_v1, %v4524_v44 }
 0x140   : > { %5418 = vset.pattern.permute.xlu1 %v7892_v27  ;;  %v4506_v0 = vsel %vm1103_vm4, 1.0, %v7874_v62  ;;  %vm980_vm15 = vcmp.eq.s32.totalorder %v5989_v19, %v6419_v48  ;;  %vm726_vm4 = vcmp.eq.s32.totalorder %v5989_v19, %v6339_v9  ;;  %v4449_v9 = vsel %vm606_vm5, 1.0, %v7874_v62 }
 0x141   : > { %836 = vperm.xlu1 %5418, %v795_v35   ;;  %v1151_v61 = vpack.c.bf16 %v4507_v11, %v4506_v0  ;;  %v1024_v35 = vpack.c.bf16 %v4493_v2, %v4492_v20  ;;  %v925_v0 = vadd.s32 41, %v6344_v49  ;;  %v1053_v20 = vadd.s32 45, %v6344_v49 }
 0x142   : > { %v1066_v30 = vpop.permute.xlu0 %1065  ;;  %v4495_v48 = vsel %vm980_vm15, 1.0, %v7874_v62 }
 0x143   : > { %v6443_v13 = vpop.permute.xlu1 %946  ;;  %vm1106_vm7 = vcmp.eq.s32.totalorder %v5989_v19, %v1066_v30  ;;  %v1159_v63 = vadd.bf16 %v1151_v61, %v1031_v22  ;;  %v1032_v28 = vadd.bf16 %v1024_v35, %v904_v16  ;;  %v1051_v16 = vadd.s32 45, %v6040_v58 }
 0x144   : > { %v4509_v32 = vsel %vm1106_vm7, 1.0, %v7874_v62  ;;  %v4463_v58 = vsel %vm724_vm8, 1.0, %v7874_v62  ;;  %v4462_v30 = vsel %vm723_vm11, 1.0, %v7874_v62  ;;  %vm725_vm7 = vcmp.eq.s32.totalorder %v5989_v19, %v6335_v59 }
 0x145   : > { %842 = vperm.xlu1 %5418, %v797_v39   ;;  %v1152_v27 = vpack.c.bf16 %v4509_v32, %v4508_v54  ;;  %v1287_v2 = vadd.bf16 %v1279_v41, %v1159_v63  ;;  %v769_v35 = vpack.c.bf16 %v4463_v58, %v4462_v30  ;;  %v1025_v32 = vpack.c.bf16 %v4495_v48, %v4494_v46 }
 0x146   : > { %v1072_v50 = vpop.permute.xlu0 %1071  ;;  %vm854_vm8 = vcmp.eq.s32.totalorder %v5989_v19, %v6395_v51  ;;  %vm981_vm11 = vcmp.eq.s32.totalorder %v5989_v19, %v6443_v13  ;;  %v4448_v59 = vsel %vm605_vm6, 1.0, %v7874_v62  ;;  %vm984_vm6 = vcmp.eq.s32.totalorder %v5989_v19, %v6356_v29 }
 0x147   : > { %v1160_v21 = vadd.bf16 %v1152_v27, %v1032_v28  ;;  %5046 = vmatprep.mubr.bf16.mxu0 %v1287_v2  ;;  %vm1108_vm1 = vcmp.eq.s32.totalorder %v5989_v19, %v1072_v50  ;;  %v777_v1 = vadd.bf16 %v769_v35, %v649_v10  ;;  %v5713_v28 = vld [vmem:[%s5889_s29 + $0x68] sm:$0xff]  ;;  %v4481_v5 = vsel %vm854_vm8, 1.0, %v7874_v62 }
 0x148   : > { %v1069_v39 = vpop.permute.xlu1 %1068  ;;  %v4511_v44 = vsel %vm1108_vm1, 1.0, %v7874_v62  ;;  %v1180_v27 = vadd.s32 47, %v5713_v28  ;;  %v4496_v13 = vsel %vm981_vm11, 1.0, %v7874_v62  ;;  %v650_v58 = vpack.c.bf16 %v4449_v9, %v4448_v59 }
 0x149   : > { %845 = vperm.xlu1 %5418, %v798_v34   ;;  %v1288_v11 = vadd.bf16 %v1280_v31, %v1160_v21  ;;  %v4478_v34 = vsel %vm851_vm13, 1.0, %v7874_v62  ;;  %vm1107_vm0 = vcmp.eq.s32.totalorder %v5989_v19, %v1069_v39  ;;  %v898_v50 = vpack.c.bf16 %v4481_v5, %v4480_v3 }
 0x14a   : > { %v897_v63 = vpack.c.bf16 %v4479_v55, %v4478_v34  ;;  %v4510_v41 = vsel %vm1107_vm0, 1.0, %v7874_v62  ;;  %v1026_v30 = vpack.c.bf16 %v4497_v52, %v4496_v13  ;;  %vm728_vm0 = vcmp.eq.s32.totalorder %v5989_v19, %v6182_v24 }
 0x14b   : > { %5047 = vmatmul.mubr.bf16.vlgmr.msra.gmra.mrb[0].mxu0 %v1288_v11  ;;  %v1153_v39 = vpack.c.bf16 %v4511_v44, %v4510_v41  ;;  %vm1834_vm11 = vcmp.eq.s32.totalorder %v5894_v36, %v5989_v19 }
 0x14c   : > { %v6459_v45 = vpop.permute.xlu1 %1074  ;;  %v905_v2 = vadd.bf16 %v897_v63, %v777_v1 }
 0x14d   : > { %5420 = vset.pattern.permute.xlu1 %v7893_v23  ;;  %vm1109_vm13 = vcmp.eq.s32.totalorder %v5989_v19, %v6459_v45 }
 0x14e   : > { %967 = vperm.xlu1 %5420, %v924_v14   ;;  %v1033_v21 = vadd.bf16 %v1025_v32, %v905_v2  ;;  %v1181_v14 = vadd.s32 47, %v6344_v49  ;;  %v4465_v49 = vsel %vm726_vm4, 1.0, %v7874_v62  ;;  %v4512_v55 = vsel %vm1109_vm13, 1.0, %v7874_v62  ;;  %v1081_v2 = vpop.permute.xlu0 %1080 }
 0x14f   : > { %vm1111_vm9 = vcmp.eq.s32.totalorder %v5989_v19, %v1081_v2  ;;  %vm1835_vm13 = vcmp.eq.s32.totalorder %v5911_v42, %v5989_v19 }
 0x150   : > { %v6463_v61 = vpop.permute.xlu1 %1077  ;;  %v4514_v5 = vsel %vm1111_vm9, 1.0, %v7874_v62 }
 0x151   : > { %vm1110_vm12 = vcmp.eq.s32.totalorder %v5989_v19, %v6463_v61 }
 0x152   : > { %970 = vperm.xlu1 %5420, %v925_v0   ;;  %v1161_v0 = vadd.bf16 %v1153_v39, %v1033_v21  ;;  %v4513_v38 = vsel %vm1110_vm12, 1.0, %v7874_v62 }
 0x153   : > { %v1154_v61 = vpack.c.bf16 %v4513_v38, %v4512_v55 }
 0x155   : > { %v6466_v22 = vpop.permute.xlu1 %579 }
 0x156   : > { %5422 = vset.pattern.permute.xlu1 %v7894_v7  ;;  %vm608_vm4 = vcmp.eq.s32.totalorder %v5989_v19, %v6466_v22 }
 0x157   : > { %1092 = vperm.xlu1 %5422, %v1051_v16  }
 0x15a   : > { %v6488_v33 = vpop.permute.xlu1 %696 }
 0x15b   : > { %1098 = vperm.xlu1 %5422, %v1053_v20   ;;  %vm727_vm1 = vcmp.eq.s32.totalorder %v5989_v19, %v6488_v33 }
 0x15c   : > { %v4466_v24 = vsel %vm727_vm1, 1.0, %v7874_v62  ;;  %vm858_vm1 = vcmp.eq.s32.totalorder %v5989_v19, %v6327_v8 }
 0x15f   : > { %1101 = vperm.xlu1 %5422, %v1054_v60   ;;  %v1197_v54 = vpop.permute.xlu1 %1196 }
 0x160   : > { %vm1235_vm2 = vcmp.eq.s32.totalorder %v5989_v19, %v1197_v54 }
 0x161   : > { %v4526_v11 = vsel %vm1235_vm2, 1.0, %v7874_v62  ;;  %vm607_vm2 = vcmp.eq.s32.totalorder %v5989_v19, %v6263_v57 }
 0x162   : > { %v4450_v57 = vsel %vm607_vm2, 1.0, %v7874_v62 }
 0x163   : > { %5424 = vset.pattern.permute.xlu1 %v7887_v12  ;;  %v1200_v31 = vpop.permute.xlu1 %1199  ;;  %v4464_v12 = vsel %vm725_vm7, 1.0, %v7874_v62 }
 0x164   : > { %vm1236_vm3 = vcmp.eq.s32.totalorder %v5989_v19, %v1200_v31  ;;  %1223 = vperm.xlu1 %5424, %v1180_v27   ;;  %v770_v51 = vpack.c.bf16 %v4465_v49, %v4464_v12  ;;  %v6554_v31 = vpop.permute.xlu0 %1089 }
 0x165   : > { %v4527_v23 = vsel %vm1236_vm3, 1.0, %v7874_v62  ;;  %vm855_vm3 = vcmp.eq.s32.totalorder %v5989_v19, %v6320_v43 }
 0x166   : > { %v1281_v16 = vpack.c.bf16 %v4527_v23, %v4526_v11  ;;  %v778_v40 = vadd.bf16 %v770_v51, %v650_v58  ;;  %v4467_v11 = vsel %vm728_vm0, 1.0, %v7874_v62  ;;  %v4482_v43 = vsel %vm855_vm3, 1.0, %v7874_v62 }
 0x167   : > { %v4451_v23 = vsel %vm608_vm4, 1.0, %v7874_v62  ;;  %vm609_vm0 = vcmp.eq.s32.totalorder %v5989_v19, %v6275_v15  ;;  %vm1836_vm4 = vcmp.eq.s32.totalorder %v6108_v53, %v5989_v19 }
 0x168   : > { %1226 = vperm.xlu1 %5424, %v1181_v14   ;;  %v6508_v7 = vpop.permute.xlu1 %585  ;;  %v1289_v20 = vadd.bf16 %v1281_v16, %v1161_v0  ;;  %v906_v34 = vadd.bf16 %v898_v50, %v778_v40  ;;  %v6562_v14 = vpop.permute.xlu0 %1095  ;;  %v771_v0 = vpack.c.bf16 %v4467_v11, %v4466_v24  ;;  %v4499_v16 = vsel %vm984_vm6, 1.0, %v7874_v62 }
 0x169   : > { %v651_v49 = vpack.c.bf16 %v4451_v23, %v4450_v57  ;;  %vm610_vm2 = vcmp.eq.s32.totalorder %v5989_v19, %v6508_v7  ;;  %v4452_v8 = vsel %vm609_vm0, 1.0, %v7874_v62  ;;  %vm1837_vm6 = vcmp.eq.s32.totalorder %v6111_v56, %v5989_v19 }
 0x16a   : > { %5050 = vmatprep.mubr.bf16.mxu0 %v1289_v20  ;;  %v1034_v46 = vadd.bf16 %v1026_v30, %v906_v34  ;;  %v4610_v34 = vsel %vm1834_vm11, 1.0, %v7874_v62  ;;  %v4612_v11 = vsel %vm1836_vm4, 1.0, %v7874_v62  ;;  %vm1842_vm0 = vcmp.eq.s32.totalorder %v6187_v37, %v5989_v19 }
 0x16b   : > { %v779_v51 = vadd.bf16 %v771_v0, %v651_v49 }
 0x16c   : > { %v1162_v45 = vadd.bf16 %v1154_v61, %v1034_v46  ;;  %v1209_v20 = vpop.permute.xlu0 %1208 }
 0x16d   : > { %v6527_v47 = vpop.permute.xlu1 %702  ;;  %vm1239_vm10 = vcmp.eq.s32.totalorder %v5989_v19, %v1209_v20 }
 0x16e   : > { %v4530_v50 = vsel %vm1239_vm10, 1.0, %v7874_v62  ;;  %vm1838_vm10 = vcmp.eq.s32.totalorder %v6133_v4, %v5989_v19 }
 0x172   : > { %v1203_v60 = vpop.permute.xlu1 %1202 }
 0x173   : > { %vm1237_vm14 = vcmp.eq.s32.totalorder %v5989_v19, %v1203_v60 }
 0x174   : > { %v4528_v48 = vsel %vm1237_vm14, 1.0, %v7874_v62  ;;  %vm730_vm14 = vcmp.eq.s32.totalorder %v5989_v19, %v6193_v26 }
 0x176   : > { %v1206_v35 = vpop.permute.xlu1 %1205 }
 0x177   : > { %vm1238_vm15 = vcmp.eq.s32.totalorder %v5989_v19, %v1206_v35 }
 0x178   : > { %v4529_v10 = vsel %vm1238_vm15, 1.0, %v7874_v62  ;;  %vm729_vm15 = vcmp.eq.s32.totalorder %v5989_v19, %v6527_v47  ;;  %v4469_v47 = vsel %vm730_vm14, 1.0, %v7874_v62  ;;  %vm1840_vm14 = vcmp.eq.s32.totalorder %v6159_v17, %v5989_v19 }
 0x179   : > { %v1282_v63 = vpack.c.bf16 %v4529_v10, %v4528_v48  ;;  %v4611_v48 = vsel %vm1835_vm13, 1.0, %v7874_v62  ;;  %v4468_v15 = vsel %vm729_vm15, 1.0, %v7874_v62  ;;  %vm1841_vm15 = vcmp.eq.s32.totalorder %v6162_v18, %v5989_v19 }
 0x17a   : > { %v772_v57 = vpack.c.bf16 %v4469_v47, %v4468_v15 }
 0x17b   : > { %v828_v41 = vpop.permute.xlu1 %827  ;;  %v1290_v44 = vadd.bf16 %v1282_v63, %v1162_v45 }
 0x17c   : > { %vm856_vm5 = vcmp.eq.s32.totalorder %v5989_v19, %v828_v41 }
 0x17d   : > { %5051 = vmatmul.mubr.bf16.gmra.mrb[4].mxu0 %v1290_v44  ;;  %v4483_v22 = vsel %vm856_vm5, 1.0, %v7874_v62 }
 0x17e   : > { %v899_v9 = vpack.c.bf16 %v4483_v22, %v4482_v43  ;;  %v4613_v22 = vsel %vm1837_vm6, 1.0, %v7874_v62 }
 0x17f   : > { %v6546_v54 = vpop.permute.xlu1 %830 }
 0x180   : > { %v907_v3 = vadd.bf16 %v899_v9, %v779_v51  ;;  %vm857_vm3 = vcmp.eq.s32.totalorder %v5989_v19, %v6546_v54 }
 0x181   : > { %v4484_v2 = vsel %vm857_vm3, 1.0, %v7874_v62 }
 0x184   : > { %v953_v1 = vpop.permute.xlu1 %952 }
 0x185   : > { %vm983_vm7 = vcmp.eq.s32.totalorder %v5989_v19, %v953_v1  ;;  %v4485_v1 = vsel %vm858_vm1, 1.0, %v7874_v62  ;;  %vm1843_vm1 = vcmp.eq.s32.totalorder %v6190_v25, %v5989_v19 }
 0x186   : > { %v4498_v29 = vsel %vm983_vm7, 1.0, %v7874_v62  ;;  %vm1114_vm7 = vcmp.eq.s32.totalorder %v5989_v19, %v6554_v31  ;;  %v900_v20 = vpack.c.bf16 %v4485_v1, %v4484_v2  ;;  %v4614_v31 = vsel %vm1838_vm10, 1.0, %v7874_v62 }
 0x187   : > { %v1027_v52 = vpack.c.bf16 %v4499_v16, %v4498_v29  ;;  %v1215_v16 = vpop.permute.xlu0 %1214 }
 0x188   : > { %v6548_v32 = vpop.permute.xlu1 %958  ;;  %vm1241_vm11 = vcmp.eq.s32.totalorder %v5989_v19, %v1215_v16 }
 0x189   : > { %v1035_v38 = vadd.bf16 %v1027_v52, %v907_v3 }
 0x18c   : > { %v6550_v28 = vpop.permute.xlu1 %961 }
 0x18d   : > { %vm986_vm5 = vcmp.eq.s32.totalorder %v5989_v19, %v6550_v28 }
 0x18e   : > { %v4501_v23 = vsel %vm986_vm5, 1.0, %v7874_v62 }
 0x191   : > { %v1084_v27 = vpop.permute.xlu1 %1083 }
 0x192   : > { %vm1112_vm8 = vcmp.eq.s32.totalorder %v5989_v19, %v1084_v27  ;;  %v4453_v27 = vsel %vm610_vm2, 1.0, %v7874_v62 }
 0x193   : > { %v4515_v12 = vsel %vm1112_vm8, 1.0, %v7874_v62  ;;  %vm985_vm8 = vcmp.eq.s32.totalorder %v5989_v19, %v6548_v32  ;;  %v652_v29 = vpack.c.bf16 %v4453_v27, %v4452_v8 }
 0x194   : > { %v1155_v13 = vpack.c.bf16 %v4515_v12, %v4514_v5  ;;  %v4500_v32 = vsel %vm985_vm8, 1.0, %v7874_v62  ;;  %vm1116_vm8 = vcmp.eq.s32.totalorder %v5989_v19, %v6562_v14 }
 0x195   : > { %v6552_v39 = vpop.permute.xlu1 %1086  ;;  %v780_v51 = vadd.bf16 %v772_v57, %v652_v29  ;;  %v1028_v52 = vpack.c.bf16 %v4501_v23, %v4500_v32  ;;  %v4617_v57 = vsel %vm1841_vm15, 1.0, %v7874_v62  ;;  %v4618_v29 = vsel %vm1842_vm0, 1.0, %v7874_v62 }
 0x196   : > { %v1163_v30 = vadd.bf16 %v1155_v13, %v1035_v38  ;;  %vm1113_vm9 = vcmp.eq.s32.totalorder %v5989_v19, %v6552_v39  ;;  %v4517_v39 = vsel %vm1114_vm7, 1.0, %v7874_v62 }
 0x197   : > { %v4516_v5 = vsel %vm1113_vm9, 1.0, %v7874_v62  ;;  %v908_v13 = vadd.bf16 %v900_v20, %v780_v51 }
 0x19a   : > { %v6556_v21 = vpop.permute.xlu1 %588 }
 0x19b   : > { %vm611_vm10 = vcmp.eq.s32.totalorder %v5989_v19, %v6556_v21  ;;  %v6749_v21 = vsel %vm1116_vm8, 1.0, %v7874_v62 }
 0x19f   : > { %v6576_v33 = vpop.permute.xlu1 %708 }
 0x1a3   : > { %v6586_v59 = vpop.permute.xlu1 %711 }
 0x1a8   : > { %v1212_v58 = vpop.permute.xlu1 %1211 }
 0x1a9   : > { %vm1240_vm12 = vcmp.eq.s32.totalorder %v5989_v19, %v1212_v58  ;;  %v1156_v58 = vpack.c.bf16 %v4517_v39, %v4516_v5  ;;  %v4619_v5 = vsel %vm1843_vm1, 1.0, %v7874_v62 }
 0x1aa   : > { %v4531_v60 = vsel %vm1240_vm12, 1.0, %v7874_v62  ;;  %v4850_v40 = vpop.f32.mrb[0].mxu1  ;;  %vm1839_vm12 = vcmp.eq.s32.totalorder %v6136_v6, %v5989_v19 }
 0x1ab   : > { %v1283_v55 = vpack.c.bf16 %v4531_v60, %v4530_v50  ;;  %v4851_v61 = vpop.f32.mrb[1].mxu1 }
 0x1ac   : > { %v4852_v35 = vadd.f32 %v4851_v61, %v4850_v40  ;;  %v4853_v46 = vpop.f32.mrb[2].mxu1  ;;  %v4532_v40 = vsel %vm1241_vm11, 1.0, %v7874_v62  ;;  %vm732_vm11 = vcmp.eq.s32.totalorder %v5989_v19, %v6586_v59 }
 0x1ad   : > { %v4854_v10 = vpop.f32.mrb[3].mxu1  ;;  %v6600_v45 = vpop.permute.xlu1 %594  ;;  %v1291_v63 = vadd.bf16 %v1283_v55, %v1163_v30  ;;  %v1036_v30 = vadd.bf16 %v1028_v52, %v908_v13 }
 0x1ae   : > { %v6606_v41 = vadd.f32 %v4852_v35, %v4610_v34  ;;  %v4855_v44 = vadd.f32 %v4854_v10, %v4853_v46  ;;  %v4615_v35 = vsel %vm1839_vm12, 1.0, %v7874_v62  ;;  %vm613_vm0 = vcmp.eq.s32.totalorder %v5989_v19, %v6600_v45 }
 0x1af   : > { %5054 = vmatprep.mubr.bf16.mxu0 %v1291_v63 }
 0x1b0   : > { %v6616_v26 = vadd.f32 %v4855_v44, %v4611_v48  ;;  %1979 = vadd.xlane.f32.xlu1 %v6606_v41  ;;  %v1164_v48 = vadd.bf16 %v1156_v58, %v1036_v30  ;;  %v7895_v58 = vld [vmem:[#allocation11_spill] sm:$0xff]  ;;  %v7898_v30 = vld [vmem:[#allocation6_spill] sm:$0xff] }
 0x1b1   : > { %vm612_vm2 = vcmp.eq.s32.totalorder %v5989_v19, %v7895_v58  ;;  %vm1845_vm5 = vcmp.eq.s32.totalorder %v7898_v30, %v5989_v19 }
 0x1b2   : > { %v4856_v7 = vpop.f32.mrb[4].mxu1  ;;  %v6627_v54 = vpop.permute.xlu1 %714  ;;  %1981 = vadd.xlane.f32.xlu0 %v6616_v26 }
 0x1b3   : > { %v4857_v24 = vpop.f32.mrb[5].mxu1 }
 0x1b4   : > { %v4858_v28 = vadd.f32 %v4857_v24, %v4856_v7  ;;  %v4859_v43 = vpop.f32.mrb[6].mxu1  ;;  %v4616_v7 = vsel %vm1840_vm14, 1.0, %v7874_v62  ;;  %vm731_vm14 = vcmp.eq.s32.totalorder %v5989_v19, %v6576_v33 }
 0x1b5   : > { %v4860_v0 = vpop.f32.mrb[7].mxu1  ;;  %v4470_v33 = vsel %vm731_vm14, 1.0, %v7874_v62 }
 0x1b6   : > { %v6643_v49 = vadd.f32 %v4858_v28, %v4612_v11  ;;  %v4861_v9 = vadd.f32 %v4860_v0, %v4859_v43  ;;  %v6645_v12 = vpop.permute.xlu1 %717 }
 0x1b7   : > { %vm734_vm1 = vcmp.eq.s32.totalorder %v5989_v19, %v6645_v12 }
 0x1b8   : > { %v6655_v3 = vadd.f32 %v4861_v9, %v4613_v22  ;;  %1983 = vadd.xlane.f32.xlu0 %v6643_v49 }
 0x1ba   : > { %v4862_v50 = vpop.f32.mrb[8].mxu1  ;;  %1985 = vadd.xlane.f32.xlu1 %v6655_v3 }
 0x1bb   : > { %v4863_v38 = vpop.f32.mrb[9].mxu1  ;;  %v1218_v60 = vpop.permute.xlu1 %1217 }
 0x1bc   : > { %v4864_v55 = vadd.f32 %v4863_v38, %v4862_v50  ;;  %vm1242_vm13 = vcmp.eq.s32.totalorder %v5989_v19, %v1218_v60  ;;  %v4865_v34 = vpop.f32.mrb[10].mxu1  ;;  %v7897_v38 = vld [vmem:[#allocation12_spill] sm:$0xff] }
 0x1bd   : > { %v4533_v61 = vsel %vm1242_vm13, 1.0, %v7874_v62  ;;  %v4866_v46 = vpop.f32.mrb[11].mxu1  ;;  %vm614_vm4 = vcmp.eq.s32.totalorder %v5989_v19, %v7897_v38 }
 0x1be   : > { %v6667_v10 = vadd.f32 %v4864_v55, %v4614_v31  ;;  %v1284_v63 = vpack.c.bf16 %v4533_v61, %v4532_v40  ;;  %v4867_v44 = vadd.f32 %v4866_v46, %v4865_v34  ;;  %v7896_v31 = vld [vmem:[#allocation5_spill] sm:$0xff]  ;;  %v6714_v55 = vsel %vm612_vm2, 1.0, %v7874_v62  ;;  %v7900_v61 = vld [vmem:[#allocation14_spill] sm:$0xff] }
 0x1bf   : > { %vm1844_vm3 = vcmp.eq.s32.totalorder %v7896_v31, %v5989_v19  ;;  %v7899_v34 = vld [vmem:[#allocation13_spill] sm:$0xff]  ;;  %vm987_vm7 = vcmp.eq.s32.totalorder %v5989_v19, %v7900_v61  ;;  %v4473_v61 = vsel %vm734_vm1, 1.0, %v7874_v62 }
 0x1c0   : > { %v6669_v47 = vadd.f32 %v4867_v44, %v4615_v35  ;;  %v6671_v15 = vpop.permute.xlu1 %836  ;;  %1987 = vadd.xlane.f32.xlu0 %v6667_v10  ;;  %v1292_v8 = vadd.bf16 %v1284_v63, %v1164_v48  ;;  %vm860_vm6 = vcmp.eq.s32.totalorder %v5989_v19, %v7899_v34  ;;  %v4620_v35 = vsel %vm1844_vm3, 1.0, %v7874_v62 }
 0x1c1   : > { %v6722_v48 = vsel %vm614_vm4, 1.0, %v7874_v62  ;;  %vm859_vm15 = vcmp.eq.s32.totalorder %v5989_v19, %v6671_v15  ;;  %vm733_vm4 = vcmp.eq.s32.totalorder %v5989_v19, %v6627_v54  ;;  %v4456_v34 = vsel %vm613_vm0, 1.0, %v7874_v62 }
 0x1c2   : > { %v4868_v1 = vpop.f32.mrb[12].mxu1  ;;  %1989 = vadd.xlane.f32.xlu1 %v6669_v47  ;;  %5055 = vmatmul.mubr.bf16.gmra.mrb[8].mxu0 %v1292_v8  ;;  %v7901_v8 = vld [vmem:[#allocation7_spill] sm:$0xff]  ;;  %v4486_v15 = vsel %vm859_vm15, 1.0, %v7874_v62  ;;  %vm5748_vm0 = vmmov 0  }
 0x1c3   : > { %v4869_v27 = vpop.f32.mrb[13].mxu1  ;;  %vm1846_vm9 = vcmp.eq.s32.totalorder %v7901_v8, %v5989_v19 }
 0x1c4   : > { %v4870_v2 = vadd.f32 %v4869_v27, %v4868_v1  ;;  %v4871_v11 = vpop.f32.mrb[14].mxu1  ;;  %v6680_v24 = vpop.permute.xlu1 %842  ;;  %v4621_v1 = vsel %vm1845_vm5, 1.0, %v7874_v62  ;;  %v7902_v27 = vld [vmem:[#allocation8_spill] sm:$0xff]  ;;  %v4622_v59 = vsel %vm1846_vm9, 1.0, %v7874_v62 }
 0x1c5   : > { %v4872_v28 = vpop.f32.mrb[15].mxu1  ;;  %vm1847_vm12 = vcmp.eq.s32.totalorder %v7902_v27, %v5989_v19  ;;  %vm861_vm8 = vcmp.eq.s32.totalorder %v5989_v19, %v6680_v24  ;;  %v7905_v24 = vld [vmem:[#allocation10_spill] sm:$0xff] }
 0x1c6   : > { %v6683_v43 = vadd.f32 %v4870_v2, %v4616_v7  ;;  %v4873_v23 = vadd.f32 %v4872_v28, %v4871_v11  ;;  %v4487_v2 = vsel %vm860_vm6, 1.0, %v7874_v62  ;;  %v6737_v11 = vsel %vm987_vm7, 1.0, %v7874_v62 }
 0x1c7   : > { %v4623_v14 = vsel %vm1847_vm12, 1.0, %v7874_v62 }
 0x1c8   : > { %v6685_v22 = vadd.f32 %v4873_v23, %v4617_v57  ;;  %v6687_v0 = vpop.permute.xlu1 %845  ;;  %1991 = vadd.xlane.f32.xlu0 %v6683_v43 }
 0x1c9   : > { %vm862_vm5 = vcmp.eq.s32.totalorder %v5989_v19, %v6687_v0  ;;  %v654_v0 = vpack.c.bf16 %v6722_v48, %v4456_v34 }
 0x1ca   : > { %v4874_v16 = vpop.f32.mrb[16].mxu1  ;;  %1993 = vadd.xlane.f32.xlu1 %v6685_v22  ;;  %v4489_v45 = vsel %vm862_vm5, 1.0, %v7874_v62 }
 0x1cb   : > { %v4875_v20 = vpop.f32.mrb[17].mxu1 }
 0x1cc   : > { %v4876_v9 = vadd.f32 %v4875_v20, %v4874_v16  ;;  %v4877_v32 = vpop.f32.mrb[18].mxu1  ;;  %v7903_v16 = vld [vmem:[#allocation15_spill] sm:$0xff]  ;;  %v4471_v20 = vsel %vm732_vm11, 1.0, %v7874_v62 }
 0x1cd   : > { %v4878_v39 = vpop.f32.mrb[19].mxu1  ;;  %v968_v51 = vpop.permute.xlu1 %967  ;;  %vm990_vm13 = vcmp.eq.s32.totalorder %v5989_v19, %v7903_v16  ;;  %v773_v58 = vpack.c.bf16 %v4471_v20, %v4470_v33 }
 0x1ce   : > { %v6697_v52 = vadd.f32 %v4876_v9, %v4618_v29  ;;  %v4879_v13 = vadd.f32 %v4878_v39, %v4877_v32  ;;  %v4454_v29 = vsel %vm611_vm10, 1.0, %v7874_v62  ;;  %v1221_v32 = vpop.permute.xlu0 %1220  ;;  %vm988_vm2 = vcmp.eq.s32.totalorder %v5989_v19, %v968_v51 }
 0x1cf   : > { %vm1243_vm3 = vcmp.eq.s32.totalorder %v5989_v19, %v1221_v32  ;;  %vm1849_vm10 = vcmp.eq.s32.totalorder %v7905_v24, %v5989_v19  ;;  %v4505_v48 = vsel %vm990_vm13, 1.0, %v7874_v62 }
 0x1d0   : > { %v6701_v50 = vadd.f32 %v4879_v13, %v4619_v5  ;;  %1995 = vadd.xlane.f32.xlu0 %v6697_v52  ;;  %v653_v13 = vpack.c.bf16 %v6714_v55, %v4454_v29  ;;  %v4503_v55 = vsel %vm988_vm2, 1.0, %v7874_v62  ;;  %v4488_v29 = vsel %vm861_vm8, 1.0, %v7874_v62 }
 0x1d1   : > { %v6708_v60 = vpop.permute.xlu1 %970 }
 0x1d2   : > { %v4880_v40 = vpop.f32.mrb[20].mxu1  ;;  %1997 = vadd.xlane.f32.xlu1 %v6701_v50  ;;  %vm989_vm9 = vcmp.eq.s32.totalorder %v5989_v19, %v6708_v60  ;;  %v1230_v20 = vpop.permute.xlu0 %1229 }
 0x1d3   : > { %v4881_v46 = vpop.f32.mrb[21].mxu1  ;;  %vm1246_vm14 = vcmp.eq.s32.totalorder %v5989_v19, %v1230_v20 }
 0x1d4   : > { %v4882_v63 = vadd.f32 %v4881_v46, %v4880_v40  ;;  %v4883_v44 = vpop.f32.mrb[22].mxu1  ;;  %v7904_v40 = vld [vmem:[#allocation9_spill] sm:$0xff] }
 0x1d5   : > { %v4884_v7 = vpop.f32.mrb[23].mxu1  ;;  %vm1848_vm7 = vcmp.eq.s32.totalorder %v7904_v40, %v5989_v19 }
 0x1d6   : > { %v6739_v57 = vadd.f32 %v4882_v63, %v4620_v35  ;;  %v4885_v28 = vadd.f32 %v4884_v7, %v4883_v44  ;;  %v1093_v23 = vpop.permute.xlu1 %1092  ;;  %v4472_v63 = vsel %vm733_vm4, 1.0, %v7874_v62  ;;  %v901_v44 = vpack.c.bf16 %v4487_v2, %v4486_v15 }
 0x1d7   : > { %vm1115_vm6 = vcmp.eq.s32.totalorder %v5989_v19, %v1093_v23  ;;  %v774_v2 = vpack.c.bf16 %v4473_v61, %v4472_v63  ;;  %v1029_v23 = vpack.c.bf16 %v4503_v55, %v6737_v11  ;;  %v902_v15 = vpack.c.bf16 %v4489_v45, %v4488_v29 }
 0x1d8   : > { %v6756_v9 = vadd.f32 %v4885_v28, %v4621_v1  ;;  %1999 = vadd.xlane.f32.xlu0 %v6739_v57  ;;  %v4518_v51 = vsel %vm1115_vm6, 1.0, %v7874_v62  ;;  %v781_v28 = vadd.bf16 %v773_v58, %v653_v13  ;;  %v4504_v11 = vsel %vm989_vm9, 1.0, %v7874_v62 }
 0x1d9   : > { %v4624_v60 = vsel %vm1848_vm7, 1.0, %v7874_v62  ;;  %v1030_v32 = vpack.c.bf16 %v4505_v48, %v4504_v11  ;;  %vm3019_vm7 = vcmask 64512  }
 0x1da   : > { %v4886_v5 = vpop.f32.mrb[24].mxu1  ;;  %2001 = vadd.xlane.f32.xlu1 %v6756_v9  ;;  %v1099_v39 = vpop.permute.xlu1 %1098 }
 0x1db   : > { %v4887_v38 = vpop.f32.mrb[25].mxu1  ;;  %vm1117_vm12 = vcmp.eq.s32.totalorder %v5989_v19, %v1099_v39  ;;  %v4537_v39 = vsel %vm1246_vm14, 1.0, %v7874_v62 }
 0x1dc   : > { %v4888_v35 = vadd.f32 %v4887_v38, %v4886_v5  ;;  %v4889_v46 = vpop.f32.mrb[26].mxu1  ;;  %v1157_v5 = vpack.c.bf16 %v6749_v21, %v4518_v51  ;;  %v782_v21 = vadd.bf16 %v774_v2, %v654_v0 }
 0x1dd   : > { %v4890_v12 = vpop.f32.mrb[27].mxu1 }
 0x1de   : > { %v6804_v1 = vadd.f32 %v4888_v35, %v4622_v59  ;;  %v4891_v7 = vadd.f32 %v4890_v12, %v4889_v46  ;;  %v1102_v54 = vpop.permute.xlu1 %1101  ;;  %v909_v59 = vadd.bf16 %v901_v44, %v781_v28  ;;  %v4625_v35 = vsel %vm1849_vm10, 1.0, %v7874_v62 }
 0x1df   : > { %vm1118_vm11 = vcmp.eq.s32.totalorder %v5989_v19, %v1102_v54  ;;  %v910_v46 = vadd.bf16 %v902_v15, %v782_v21  ;;  %v4520_v44 = vsel %vm1117_vm12, 1.0, %v7874_v62 }
 0x1e0   : > { %v6811_v33 = vadd.f32 %v4891_v7, %v4623_v14  ;;  %2003 = vadd.xlane.f32.xlu0 %v6804_v1  ;;  %v4534_v14 = vsel %vm1243_vm3, 1.0, %v7874_v62  ;;  %v1037_v58 = vadd.bf16 %v1029_v23, %v909_v59  ;;  %v4521_v16 = vsel %vm1118_vm11, 1.0, %v7874_v62 }
 0x1e1   : > { %v1158_v51 = vpack.c.bf16 %v4521_v16, %v4520_v44  ;;  %v1038_v23 = vadd.bf16 %v1030_v32, %v910_v46 }
 0x1e2   : > { %v4892_v13 = vpop.f32.mrb[28].mxu1  ;;  %2005 = vadd.xlane.f32.xlu1 %v6811_v33  ;;  %v1165_v63 = vadd.bf16 %v1157_v5, %v1037_v58 }
 0x1e3   : > { %v4893_v38 = vpop.f32.mrb[29].mxu1  ;;  %v1224_v34 = vpop.permute.xlu1 %1223  ;;  %v1166_v15 = vadd.bf16 %v1158_v51, %v1038_v23 }
 0x1e4   : > { %v4894_v61 = vadd.f32 %v4893_v38, %v4892_v13  ;;  %vm1244_vm13 = vcmp.eq.s32.totalorder %v5989_v19, %v1224_v34  ;;  %v4895_v55 = vpop.f32.mrb[30].mxu1 }
 0x1e5   : > { %v4535_v45 = vsel %vm1244_vm13, 1.0, %v7874_v62  ;;  %v4896_v12 = vpop.f32.mrb[31].mxu1 }
 0x1e6   : > { %v6844_v7 = vadd.f32 %v4894_v61, %v4624_v60  ;;  %v1285_v54 = vpack.c.bf16 %v4535_v45, %v4534_v14  ;;  %v4897_v28 = vadd.f32 %v4896_v12, %v4895_v55 }
 0x1e7   : > { %v1227_v2 = vpop.permute.xlu1 %1226 }
 0x1e8   : > { %v6846_v0 = vadd.f32 %v4897_v28, %v4625_v35  ;;  %vm1245_vm15 = vcmp.eq.s32.totalorder %v5989_v19, %v1227_v2  ;;  %2007 = vadd.xlane.f32.xlu0 %v6844_v7  ;;  %v1293_v29 = vadd.bf16 %v1285_v54, %v1165_v63 }
 0x1e9   : > { %v4536_v59 = vsel %vm1245_vm15, 1.0, %v7874_v62 }
 0x1ea   : > { %v1286_v11 = vpack.c.bf16 %v4537_v39, %v4536_v59  ;;  %2009 = vadd.xlane.f32.xlu1 %v6846_v0  ;;  %5058 = vmatprep.mubr.bf16.mxu0 %v1293_v29 }
 0x1ec   : > { %v1294_v5 = vadd.bf16 %v1286_v11, %v1166_v15 }
 0x1ee   : > { %5059 = vmatmul.mubr.bf16.gmra.mrb[12].mxu0 %v1294_v5 }
 0x21e   : > { %v5048_v48 = vpop.f32.mrb[0].mxu0 }
 0x21f   : > { %v1393_v14 = vpop.f32.mrb[1].mxu0 }
 0x220   : > { %v5049_v13 = vpop.f32.mrb[2].mxu0 }
 0x221   : > { %v1396_v60 = vpop.f32.mrb[3].mxu0 }
 0x23d   : > { %v1980_v21 = vpop.xlane.xlu1 %1979 }
 0x23e   : > { %5453 = vrsqrt.f32 %v1980_v21 }
 0x23f   : > { %v1982_v58 = vpop.xlane.xlu0 %1981 }
 0x240   : > { %5455 = vrsqrt.f32 %v1982_v58 }
 0x245   : > { %v1984_v16 = vpop.xlane.xlu0 %1983 }
 0x246   : > { %5457 = vrsqrt.f32 %v1984_v16 }
 0x247   : > { %v1986_v20 = vpop.xlane.xlu1 %1985 }
 0x248   : > { %v6855_v38 = vpop.eup %5453  ;;  %5459 = vrsqrt.f32 %v1986_v20 }
 0x249   : > { %v2051_v32 = vmul.f32 %v6855_v38, %v1393_v14  ;;  %v2027_v55 = vmul.f32 %v6855_v38, %v6606_v41 }
 0x24a   : > { %v6857_v34 = vpop.eup %5455 }
 0x24b   : > { %v2052_v61 = vmul.f32 %v6857_v34, %v1396_v60  ;;  %v2028_v35 = vmul.f32 %v6857_v34, %v6616_v26 }
 0x24d   : > { %v1988_v46 = vpop.xlane.xlu0 %1987  ;;  %v2067_v63 = vpack.c.bf16 %v2052_v61, %v2051_v32  ;;  %v2043_v44 = vpack.c.bf16 %v2028_v35, %v2027_v55 }
 0x24e   : > { %5461 = vrsqrt.f32 %v1988_v46 }
 0x24f   : > { %v1990_v45 = vpop.xlane.xlu1 %1989  ;;  %5062 = vmatprep.subr.bf16.mxu0 %v2067_v63  ;;  %5078 = vmatprep.mubr.bf16.mxu0 %v2043_v44 }
 0x250   : > { %v6865_v12 = vpop.eup %5457  ;;  %5463 = vrsqrt.f32 %v1990_v45  ;;  %5142 = vmatprep.mubr.bf16.mxu1 %v2043_v44  ;;  %v5052_v51 = vpop.f32.mrb[4].mxu0  ;;  %5063 = vmatpush3.bf16.msra.mxu0 %v2067_v63 }
 0x251   : > { %v1409_v54 = vpop.f32.mrb[5].mxu0  ;;  %v2053_v26 = vmul.f32 %v6865_v12, %v5048_v48 }
 0x252   : > { %v6867_v28 = vpop.eup %5459  ;;  %v5053_v41 = vpop.f32.mrb[6].mxu0 }
 0x253   : > { %v1412_v2 = vpop.f32.mrb[7].mxu0  ;;  %v2054_v23 = vmul.f32 %v6867_v28, %v5049_v13 }
 0x255   : > { %v1992_v29 = vpop.xlane.xlu0 %1991  ;;  %v2068_v39 = vpack.c.bf16 %v2054_v23, %v2053_v26 }
 0x256   : > { %5465 = vrsqrt.f32 %v1992_v29 }
 0x257   : > { %v1994_v59 = vpop.xlane.xlu1 %1993  ;;  %5064 = vmatprep.subr.bf16.mxu0 %v2068_v39 }
 0x258   : > { %v6871_v15 = vpop.eup %5461  ;;  %5467 = vrsqrt.f32 %v1994_v59  ;;  %5065 = vmatpush3.bf16.msra.mxu0 %v2068_v39 }
 0x259   : > { %v2055_v5 = vmul.f32 %v6871_v15, %v1409_v54 }
 0x25a   : > { %v6873_v11 = vpop.eup %5463 }
 0x25b   : > { %v2056_v14 = vmul.f32 %v6873_v11, %v1412_v2 }
 0x25d   : > { %v2069_v60 = vpack.c.bf16 %v2056_v14, %v2055_v5  ;;  %v1996_v20 = vpop.xlane.xlu0 %1995 }
 0x25e   : > { %5469 = vrsqrt.f32 %v1996_v20 }
 0x25f   : > { %5066 = vmatprep.subr.bf16.mxu0 %v2069_v60  ;;  %v1998_v32 = vpop.xlane.xlu1 %1997 }
 0x260   : > { %v6877_v48 = vpop.eup %5465  ;;  %5067 = vmatpush3.bf16.msra.mxu0 %v2069_v60 }
 0x261   : > { %v2057_v21 = vmul.f32 %v6877_v48, %v5052_v51 }
 0x262   : > { %v6879_v13 = vpop.eup %5467 }
 0x263   : > { %v2058_v58 = vmul.f32 %v6879_v13, %v5053_v41 }
 0x265   : > { %v2070_v16 = vpack.c.bf16 %v2058_v58, %v2057_v21  ;;  %v2000_v61 = vpop.xlane.xlu0 %1999 }
 0x266   : > { %5471 = vrsqrt.f32 %v2000_v61 }
 0x267   : > { %5068 = vmatprep.subr.bf16.mxu0 %v2070_v16  ;;  %v2002_v55 = vpop.xlane.xlu1 %2001 }
 0x268   : > { %5069 = vmatpush3.bf16.msra.mxu0 %v2070_v16  ;;  %5473 = vrsqrt.f32 %v2002_v55  ;;  %v6883_v35 = vpop.eup %5469 }
 0x269   : > { %5475 = vrsqrt.f32 %v1998_v32 }
 0x26d   : > { %v2004_v5 = vpop.xlane.xlu0 %2003 }
 0x26e   : > { %5477 = vrsqrt.f32 %v2004_v5  ;;  %v2029_v5 = vmul.f32 %v6865_v12, %v6643_v49  ;;  %v2033_v49 = vmul.f32 %v6877_v48, %v6683_v43 }
 0x26f   : > { %v2006_v14 = vpop.xlane.xlu1 %2005 }
 0x270   : > { %v6885_v63 = vpop.eup %5471 }
 0x271   : > { %v2037_v43 = vmul.f32 %v6885_v63, %v6739_v57  ;;  %v5437_v57 = vld [vmem:[%s7841_s5] sm:$0xff]  }
 0x272   : > { %v6887_v45 = vpop.eup %5473 }
 0x273   : > { %v6889_v54 = vpop.eup %5475 }
 0x275   : > { %v2008_v60 = vpop.xlane.xlu0 %2007 }
 0x276   : > { %5479 = vrsqrt.f32 %v2008_v60 }
 0x277   : > { %v2010_v21 = vpop.xlane.xlu1 %2009 }
 0x278   : > { %5481 = vrsqrt.f32 %v2010_v21  ;;  %v6895_v58 = vpop.eup %5477 }
 0x279   : > { %5483 = vrsqrt.f32 %v2006_v14  ;;  %v2031_v14 = vmul.f32 %v6871_v15, %v6667_v10  ;;  %v2035_v10 = vmul.f32 %v6883_v35, %v6697_v52  ;;  %v2039_v52 = vmul.f32 %v6895_v58, %v6804_v1  ;;  %v5438_v1 = vld [vmem:[%s7841_s5 + $0x8] sm:$0xff]  }
 0x280   : > { %v6897_v20 = vpop.eup %5479 }
 0x282   : > { %v6899_v61 = vpop.eup %5481 }
 0x295   : > { %v5056_v46 = vpop.f32.mrb[8].mxu0 }
 0x296   : > { %v1425_v44 = vpop.f32.mrb[9].mxu0  ;;  %v2061_v41 = vmul.f32 %v6885_v63, %v5056_v46  ;;  %v6901_v46 = vpop.eup %5483 }
 0x297   : > { %v5057_v51 = vpop.f32.mrb[10].mxu0  ;;  %v2059_v23 = vmul.f32 %v6883_v35, %v1425_v44 }
 0x298   : > { %v2062_v2 = vmul.f32 %v6887_v45, %v5057_v51  ;;  %v1428_v26 = vpop.f32.mrb[11].mxu0 }
 0x299   : > { %v2060_v29 = vmul.f32 %v6889_v54, %v1428_v26 }
 0x29a   : > { %v2072_v39 = vpack.c.bf16 %v2062_v2, %v2061_v41 }
 0x29b   : > { %v2071_v59 = vpack.c.bf16 %v2060_v29, %v2059_v23 }
 0x29d   : > { %5070 = vmatprep.subr.bf16.mxu0 %v2071_v59 }
 0x29e   : > { %5071 = vmatpush3.bf16.msra.mxu0 %v2071_v59  ;;  %v2032_v59 = vmul.f32 %v6873_v11, %v6669_v47  ;;  %v2036_v47 = vmul.f32 %v6889_v54, %v6701_v50  ;;  %v2040_v50 = vmul.f32 %v6901_v46, %v6811_v33  ;;  %v2041_v33 = vmul.f32 %v6897_v20, %v6844_v7  ;;  %v5439_v7 = vld [vmem:[%s7841_s5 + $0x10] sm:$0xff]  }
 0x29f   : > { %5072 = vmatprep.subr.bf16.mxu0 %v2072_v39 }
 0x2a0   : > { %v6917_v21 = vpack.c.bf16 %v2032_v59, %v2031_v14 }
 0x2a2   : > { %5073 = vmatpush3.bf16.msra.mxu0 %v2072_v39  ;;  %v2030_v39 = vmul.f32 %v6867_v28, %v6655_v3  ;;  %v2034_v3 = vmul.f32 %v6879_v13, %v6685_v22  ;;  %v2038_v22 = vmul.f32 %v6887_v45, %v6756_v9  ;;  %v2042_v9 = vmul.f32 %v6899_v61, %v6846_v0  ;;  %v5440_v0 = vld [vmem:[%s7841_s5 + $0x18] sm:$0xff]  }
 0x2a4   : > { %v6915_v60 = vpack.c.bf16 %v2030_v39, %v2029_v5 }
 0x2c1   : > { %v5060_v16 = vpop.f32.mrb[12].mxu0 }
 0x2c2   : > { %v1441_v32 = vpop.f32.mrb[13].mxu0  ;;  %v2065_v44 = vmul.f32 %v6897_v20, %v5060_v16  ;;  %v6929_v16 = vpack.c.bf16 %v2034_v3, %v2033_v49 }
 0x2c3   : > { %v5061_v55 = vpop.f32.mrb[14].mxu0  ;;  %v2063_v2 = vmul.f32 %v6895_v58, %v1441_v32  ;;  %v6931_v32 = vpack.c.bf16 %v2036_v47, %v2035_v10 }
 0x2c4   : > { %v2066_v51 = vmul.f32 %v6899_v61, %v5061_v55  ;;  %v1444_v41 = vpop.f32.mrb[15].mxu0  ;;  %v6943_v55 = vpack.c.bf16 %v2038_v22, %v2037_v43 }
 0x2c5   : > { %v2064_v26 = vmul.f32 %v6901_v46, %v1444_v41  ;;  %v5441_v41 = vld [vmem:[%s7841_s5 + $0x20] sm:$0xff]  }
 0x2c6   : > { %v2074_v23 = vpack.c.bf16 %v2066_v51, %v2065_v44  ;;  %v6945_v44 = vpack.c.bf16 %v2040_v50, %v2039_v52  ;;  %v6953_v51 = vpack.c.bf16 %v2042_v9, %v2041_v33 }
 0x2c7   : > { %v2073_v29 = vpack.c.bf16 %v2064_v26, %v2063_v2  ;;  %v5442_v2 = vld [vmem:[%s7841_s5 + $0x28] sm:$0xff]   ;;  %v5443_v26 = vld [vmem:[%s7841_s5 + $0x30] sm:$0xff]  }
 0x2c9   : > { %5074 = vmatprep.subr.bf16.mxu0 %v2073_v29 }
 0x2ca   : > { %5075 = vmatpush3.bf16.msra.mxu0 %v2073_v29  ;;  %v6983_v29 = vld [vmem:[%s7840_s4] ss:$0 sm:$0xff] }
 0x2cb   : > { %5076 = vmatprep.subr.bf16.mxu0 %v2074_v23 }
 0x2ce   : > { %5077 = vmatpush3.bf16.msra.mxu0 %v2074_v23  ;;  %v5444_v23 = vld [vmem:[%s7841_s5 + $0x38] sm:$0xff]  }
 0x2cf   : > { %5094 = vmatprep.subr.bf16.mxu0 %v5437_v57 }
 0x2d1   : > { %5079 = vmatmul.mubr.bf16.vlgmr.msra.gmra.mrb[16].mxu0 %v6915_v60 }
 0x2d2   : > { %5082 = vmatprep.mubr.bf16.mxu0 %v6917_v21  ;;  %5095 = vmatpush3.bf16.msra.mxu0 %v5437_v57 }
 0x2d3   : > { %5096 = vmatprep.subr.bf16.mxu0 %v5438_v1 }
 0x2d6   : > { %5097 = vmatpush3.bf16.msra.mxu0 %v5438_v1 }
 0x2d7   : > { %5098 = vmatprep.subr.bf16.mxu0 %v5439_v7 }
 0x2d9   : > { %5083 = vmatmul.mubr.bf16.gmra.mrb[20].mxu0 %v6929_v16 }
 0x2da   : > { %5086 = vmatprep.mubr.bf16.mxu0 %v6931_v32  ;;  %5099 = vmatpush3.bf16.msra.mxu0 %v5439_v7 }
 0x2db   : > { %5100 = vmatprep.subr.bf16.mxu0 %v5440_v0 }
 0x2de   : > { %5101 = vmatpush3.bf16.msra.mxu0 %v5440_v0 }
 0x2df   : > { %5102 = vmatprep.subr.bf16.mxu0 %v5441_v41 }
 0x2e1   : > { %5087 = vmatmul.mubr.bf16.gmra.mrb[24].mxu0 %v6943_v55 }
 0x2e2   : > { %5090 = vmatprep.mubr.bf16.mxu0 %v6945_v44  ;;  %5103 = vmatpush3.bf16.msra.mxu0 %v5441_v41 }
 0x2e3   : > { %5104 = vmatprep.subr.bf16.mxu0 %v5442_v2 }
 0x2e6   : > { %5105 = vmatpush3.bf16.msra.mxu0 %v5442_v2 }
 0x2e7   : > { %5106 = vmatprep.subr.bf16.mxu0 %v5443_v26 }
 0x2e9   : > { %5091 = vmatmul.mubr.bf16.gmra.mrb[28].mxu0 %v6953_v51 }
 0x2ea   : > { %5107 = vmatpush3.bf16.msra.mxu0 %v5443_v26 }
 0x2eb   : > { %5108 = vmatprep.subr.bf16.mxu0 %v5444_v23 }
 0x2ee   : > { %5109 = vmatpush3.bf16.msra.mxu0 %v5444_v23 }
 0x3a4   : > { %v5080_v39 = vpop.f32.mrb[16].mxu0 }
 0x3a5   : > { %v2125_v59 = vadd.f32 %v5080_v39, %v6983_v29  ;;  %v2116_v5 = vpop.f32.mrb[17].mxu0 }
 0x3a6   : > { %v2117_v14 = vadd.f32 %v6983_v29, %v2116_v5  ;;  %v5081_v3 = vpop.f32.mrb[18].mxu0 }
 0x3a7   : > { %v4693_v47 = vmul.f32 -1.442695, %v2125_v59  ;;  %v2128_v49 = vadd.f32 %v5081_v3, %v6983_v29  ;;  %v2119_v10 = vpop.f32.mrb[19].mxu0 }
 0x3a8   : > { %v4691_v22 = vmul.f32 -1.442695, %v2117_v14  ;;  %v2120_v50 = vadd.f32 %v6983_v29, %v2119_v10 }
 0x3a9   : > { %5485 = vpow2.f32 %v4693_v47  ;;  %v4694_v43 = vmul.f32 -1.442695, %v2128_v49 }
 0x3aa   : > { %5487 = vpow2.f32 %v4691_v22  ;;  %v4692_v52 = vmul.f32 -1.442695, %v2120_v50 }
 0x3ab   : > { %5489 = vpow2.f32 %v4694_v43 }
 0x3ac   : > { %5491 = vpow2.f32 %v4692_v52  ;;  %v5084_v9 = vpop.f32.mrb[20].mxu0 }
 0x3ad   : > { %v2141_v33 = vadd.f32 %v5084_v9, %v6983_v29  ;;  %v2132_v57 = vpop.f32.mrb[21].mxu0 }
 0x3ae   : > { %v2133_v1 = vadd.f32 %v6983_v29, %v2132_v57  ;;  %v5085_v7 = vpop.f32.mrb[22].mxu0 }
 0x3af   : > { %v4697_v0 = vmul.f32 -1.442695, %v2141_v33  ;;  %v2144_v41 = vadd.f32 %v5085_v7, %v6983_v29  ;;  %v2135_v2 = vpop.f32.mrb[23].mxu0 }
 0x3b0   : > { %v4695_v26 = vmul.f32 -1.442695, %v2133_v1  ;;  %v2136_v23 = vadd.f32 %v6983_v29, %v2135_v2 }
 0x3b1   : > { %5493 = vpow2.f32 %v4697_v0  ;;  %v4698_v39 = vmul.f32 -1.442695, %v2144_v41 }
 0x3b2   : > { %5495 = vpow2.f32 %v4695_v26  ;;  %v4696_v59 = vmul.f32 -1.442695, %v2136_v23 }
 0x3b3   : > { %v5486_v5 = vpop.eup %5485  ;;  %5497 = vpow2.f32 %v4698_v39 }
 0x3b4   : > { %v5488_v14 = vpop.eup %5487  ;;  %v2229_v3 = vadd.f32 1.0, %v5486_v5  ;;  %5499 = vpow2.f32 %v4696_v59  ;;  %v5088_v47 = vpop.f32.mrb[24].mxu0 }
 0x3b5   : > { %v5490_v49 = vpop.eup %5489  ;;  %v2227_v10 = vadd.f32 1.0, %v5488_v14  ;;  %v2157_v22 = vadd.f32 %v5088_v47, %v6983_v29  ;;  %v2148_v50 = vpop.f32.mrb[25].mxu0 }
 0x3b6   : > { %v5492_v43 = vpop.eup %5491  ;;  %5501 = vrcp.f32 %v2229_v3  ;;  %v2230_v52 = vadd.f32 1.0, %v5490_v49  ;;  %v2149_v9 = vadd.f32 %v6983_v29, %v2148_v50  ;;  %v5089_v33 = vpop.f32.mrb[26].mxu0 }
 0x3b7   : > { %5503 = vrcp.f32 %v2227_v10  ;;  %v2228_v57 = vadd.f32 1.0, %v5492_v43  ;;  %v4701_v1 = vmul.f32 -1.442695, %v2157_v22  ;;  %v2160_v7 = vadd.f32 %v5089_v33, %v6983_v29  ;;  %v2151_v0 = vpop.f32.mrb[27].mxu0 }
 0x3b8   : > { %5505 = vrcp.f32 %v2230_v52  ;;  %v4699_v41 = vmul.f32 -1.442695, %v2149_v9  ;;  %v2152_v2 = vadd.f32 %v6983_v29, %v2151_v0 }
 0x3b9   : > { %5507 = vrcp.f32 %v2228_v57  ;;  %v4702_v26 = vmul.f32 -1.442695, %v2160_v7 }
 0x3ba   : > { %5509 = vpow2.f32 %v4701_v1  ;;  %v4700_v23 = vmul.f32 -1.442695, %v2152_v2 }
 0x3bb   : > { %v5494_v39 = vpop.eup %5493  ;;  %5511 = vpow2.f32 %v4699_v41 }
 0x3bc   : > { %v5496_v59 = vpop.eup %5495  ;;  %v2233_v5 = vadd.f32 1.0, %v5494_v39  ;;  %5513 = vpow2.f32 %v4702_v26  ;;  %v5092_v14 = vpop.f32.mrb[28].mxu0 }
 0x3bd   : > { %v5498_v3 = vpop.eup %5497  ;;  %v2231_v47 = vadd.f32 1.0, %v5496_v59  ;;  %5515 = vpow2.f32 %v4700_v23  ;;  %v2173_v49 = vadd.f32 %v5092_v14, %v6983_v29  ;;  %v2164_v10 = vpop.f32.mrb[29].mxu0 }
 0x3be   : > { %v5500_v22 = vpop.eup %5499  ;;  %5517 = vrcp.f32 %v2233_v5  ;;  %v2234_v50 = vadd.f32 1.0, %v5498_v3  ;;  %v2165_v43 = vadd.f32 %v6983_v29, %v2164_v10  ;;  %v5093_v52 = vpop.f32.mrb[30].mxu0 }
 0x3bf   : > { %5519 = vrcp.f32 %v2231_v47  ;;  %v2232_v9 = vadd.f32 1.0, %v5500_v22  ;;  %v4705_v33 = vmul.f32 -1.442695, %v2173_v49  ;;  %v2176_v57 = vadd.f32 %v5093_v52, %v6983_v29  ;;  %v2167_v1 = vpop.f32.mrb[31].mxu0 }
 0x3c0   : > { %v5502_v7 = vpop.eup %5501  ;;  %5521 = vrcp.f32 %v2234_v50  ;;  %v4703_v0 = vmul.f32 -1.442695, %v2165_v43  ;;  %v2168_v41 = vadd.f32 %v6983_v29, %v2167_v1 }
 0x3c1   : > { %v5504_v2 = vpop.eup %5503  ;;  %5523 = vrcp.f32 %v2232_v9  ;;  %v4706_v26 = vmul.f32 -1.442695, %v2176_v57 }
 0x3c2   : > { %v5506_v23 = vpop.eup %5505  ;;  %5525 = vpow2.f32 %v4705_v33  ;;  %v4704_v39 = vmul.f32 -1.442695, %v2168_v41 }
 0x3c3   : > { %v5508_v59 = vpop.eup %5507  ;;  %5527 = vpow2.f32 %v4703_v0  ;;  %v2276_v5 = vpack.c.bf16 %v5506_v23, %v5502_v7 }
 0x3c4   : > { %v5510_v14 = vpop.eup %5509  ;;  %5529 = vpow2.f32 %v4706_v26  ;;  %v2275_v3 = vpack.c.bf16 %v5508_v59, %v5504_v2 }
 0x3c5   : > { %v5512_v47 = vpop.eup %5511  ;;  %v2237_v49 = vadd.f32 1.0, %v5510_v14  ;;  %5531 = vpow2.f32 %v4704_v39 }
 0x3c6   : > { %v5514_v10 = vpop.eup %5513  ;;  %v2235_v22 = vadd.f32 1.0, %v5512_v47  ;;  %5110 = vmatprep.mubr.bf16.mxu0 %v2275_v3 }
 0x3c7   : > { %v5516_v50 = vpop.eup %5515  ;;  %5533 = vrcp.f32 %v2237_v49  ;;  %v2238_v29 = vadd.f32 1.0, %v5514_v10  ;;  %5111 = vmatmul.mubr.bf16.vlgmr.msra.gmra.mrb[32].mxu0 %v2276_v5 }
 0x3c8   : > { %v5518_v43 = vpop.eup %5517  ;;  %5535 = vrcp.f32 %v2235_v22  ;;  %v2236_v52 = vadd.f32 1.0, %v5516_v50 }
 0x3c9   : > { %v5520_v9 = vpop.eup %5519  ;;  %5537 = vrcp.f32 %v2238_v29 }
 0x3ca   : > { %v5522_v33 = vpop.eup %5521  ;;  %5539 = vrcp.f32 %v2236_v52 }
 0x3cb   : > { %v5524_v57 = vpop.eup %5523  ;;  %v2278_v1 = vpack.c.bf16 %v5522_v33, %v5518_v43 }
 0x3cc   : > { %v5526_v7 = vpop.eup %5525  ;;  %v2277_v0 = vpack.c.bf16 %v5524_v57, %v5520_v9 }
 0x3cd   : > { %v5528_v41 = vpop.eup %5527  ;;  %v2241_v2 = vadd.f32 1.0, %v5526_v7 }
 0x3ce   : > { %v5530_v26 = vpop.eup %5529  ;;  %v2239_v23 = vadd.f32 1.0, %v5528_v41  ;;  %5114 = vmatprep.mubr.bf16.mxu0 %v2277_v0 }
 0x3cf   : > { %v5532_v39 = vpop.eup %5531  ;;  %5541 = vrcp.f32 %v2241_v2  ;;  %v2242_v59 = vadd.f32 1.0, %v5530_v26  ;;  %5115 = vmatmul.mubr.bf16.gmra.mrb[36].mxu0 %v2278_v1 }
 0x3d0   : > { %5543 = vrcp.f32 %v2239_v23  ;;  %v2240_v5 = vadd.f32 1.0, %v5532_v39 }
 0x3d1   : > { %v5534_v14 = vpop.eup %5533  ;;  %5545 = vrcp.f32 %v2242_v59 }
 0x3d2   : > { %v5536_v3 = vpop.eup %5535  ;;  %5547 = vrcp.f32 %v2240_v5 }
 0x3d3   : > { %v5538_v47 = vpop.eup %5537 }
 0x3d4   : > { %v5540_v49 = vpop.eup %5539  ;;  %v2280_v10 = vpack.c.bf16 %v5538_v47, %v5534_v14 }
 0x3d5   : > { %v2279_v22 = vpack.c.bf16 %v5540_v49, %v5536_v3 }
 0x3d7   : > { %5118 = vmatprep.mubr.bf16.mxu0 %v2279_v22 }
 0x3d8   : > { %5119 = vmatmul.mubr.bf16.gmra.mrb[40].mxu0 %v2280_v10 }
 0x3d9   : > { %v5542_v50 = vpop.eup %5541 }
 0x3da   : > { %v5544_v29 = vpop.eup %5543 }
 0x3db   : > { %v5546_v43 = vpop.eup %5545 }
 0x3dc   : > { %v5548_v52 = vpop.eup %5547  ;;  %v2282_v9 = vpack.c.bf16 %v5546_v43, %v5542_v50 }
 0x3dd   : > { %v2281_v33 = vpack.c.bf16 %v5548_v52, %v5544_v29 }
 0x3df   : > { %5122 = vmatprep.mubr.bf16.mxu0 %v2281_v33 }
 0x3e0   : > { %5123 = vmatmul.mubr.bf16.gmra.mrb[44].mxu0 %v2282_v9 }
 0x49a   : > { %v5112_v57 = vpop.f32.mrb[32].mxu0 }
 0x49b   : > { %v2381_v1 = vpop.f32.mrb[33].mxu0  ;;  %v2446_v0 = vmul.f32 %v6865_v12, %v5112_v57 }
 0x49c   : > { %v5113_v7 = vpop.f32.mrb[34].mxu0  ;;  %v2444_v26 = vmul.f32 %v6855_v38, %v2381_v1 }
 0x49d   : > { %v2447_v41 = vmul.f32 %v6867_v28, %v5113_v7  ;;  %v2384_v2 = vpop.f32.mrb[35].mxu0 }
 0x49e   : > { %v2445_v23 = vmul.f32 %v6857_v34, %v2384_v2 }
 0x49f   : > { %v2461_v39 = vpack.c.bf16 %v2447_v41, %v2446_v0 }
 0x4a0   : > { %v2460_v59 = vpack.c.bf16 %v2445_v23, %v2444_v26 }
 0x4a2   : > { %v5116_v5 = vpop.f32.mrb[36].mxu0  ;;  %5126 = vmatprep.subr.bf16.mxu1 %v2460_v59 }
 0x4a3   : > { %v2397_v14 = vpop.f32.mrb[37].mxu0  ;;  %5127 = vmatpush3.bf16.msra.mxu1 %v2460_v59  ;;  %v2450_v47 = vmul.f32 %v6877_v48, %v5116_v5 }
 0x4a4   : > { %v5117_v3 = vpop.f32.mrb[38].mxu0  ;;  %5128 = vmatprep.subr.bf16.mxu1 %v2461_v39  ;;  %v2448_v28 = vmul.f32 %v6871_v15, %v2397_v14 }
 0x4a5   : > { %v2451_v49 = vmul.f32 %v6879_v13, %v5117_v3  ;;  %v2400_v12 = vpop.f32.mrb[39].mxu0 }
 0x4a6   : > { %v2449_v10 = vmul.f32 %v6873_v11, %v2400_v12 }
 0x4a7   : > { %v2463_v38 = vpack.c.bf16 %v2451_v49, %v2450_v47  ;;  %5129 = vmatpush3.bf16.msra.mxu1 %v2461_v39 }
 0x4a8   : > { %v2462_v34 = vpack.c.bf16 %v2449_v10, %v2448_v28 }
 0x4aa   : > { %5130 = vmatprep.subr.bf16.mxu1 %v2462_v34 }
 0x4ab   : > { %v5120_v22 = vpop.f32.mrb[40].mxu0  ;;  %5131 = vmatpush3.bf16.msra.mxu1 %v2462_v34 }
 0x4ac   : > { %v2413_v50 = vpop.f32.mrb[41].mxu0  ;;  %5132 = vmatprep.subr.bf16.mxu1 %v2463_v38  ;;  %v2454_v43 = vmul.f32 %v6885_v63, %v5120_v22 }
 0x4ad   : > { %v5121_v29 = vpop.f32.mrb[42].mxu0  ;;  %v2452_v13 = vmul.f32 %v6883_v35, %v2413_v50 }
 0x4ae   : > { %v2455_v48 = vmul.f32 %v6887_v45, %v5121_v29  ;;  %v2416_v52 = vpop.f32.mrb[43].mxu0 }
 0x4af   : > { %v2453_v15 = vmul.f32 %v6889_v54, %v2416_v52  ;;  %5133 = vmatpush3.bf16.msra.mxu1 %v2463_v38 }
 0x4b0   : > { %v2465_v11 = vpack.c.bf16 %v2455_v48, %v2454_v43 }
 0x4b1   : > { %v2464_v9 = vpack.c.bf16 %v2453_v15, %v2452_v13 }
 0x4b3   : > { %v5124_v33 = vpop.f32.mrb[44].mxu0  ;;  %5134 = vmatprep.subr.bf16.mxu1 %v2464_v9 }
 0x4b4   : > { %v2429_v57 = vpop.f32.mrb[45].mxu0  ;;  %5135 = vmatpush3.bf16.msra.mxu1 %v2464_v9  ;;  %v2458_v7 = vmul.f32 %v6897_v20, %v5124_v33  ;;  %v5446_v20 = vld [vmem:[%s7843_s7 + $0x8] sm:$0xff]  }
 0x4b5   : > { %v5125_v1 = vpop.f32.mrb[46].mxu0  ;;  %5136 = vmatprep.subr.bf16.mxu1 %v2465_v11  ;;  %v2456_v45 = vmul.f32 %v6895_v58, %v2429_v57  ;;  %v5445_v58 = vld [vmem:[%s7843_s7] sm:$0xff]  }
 0x4b6   : > { %v2459_v63 = vmul.f32 %v6899_v61, %v5125_v1  ;;  %v2432_v0 = vpop.f32.mrb[47].mxu0  ;;  %5158 = vmatprep.subr.bf16.mxu0 %v5445_v58  ;;  %v5447_v61 = vld [vmem:[%s7843_s7 + $0x10] sm:$0xff]  }
 0x4b7   : > { %v2457_v35 = vmul.f32 %v6901_v46, %v2432_v0  ;;  %5159 = vmatpush3.bf16.msra.mxu0 %v5445_v58  ;;  %v5448_v46 = vld [vmem:[%s7843_s7 + $0x18] sm:$0xff]  }
 0x4b8   : > { %v2467_v41 = vpack.c.bf16 %v2459_v63, %v2458_v7  ;;  %5137 = vmatpush3.bf16.msra.mxu1 %v2465_v11  ;;  %5160 = vmatprep.subr.bf16.mxu0 %v5446_v20 }
 0x4b9   : > { %v2466_v54 = vpack.c.bf16 %v2457_v35, %v2456_v45 }
 0x4bb   : > { %5138 = vmatprep.subr.bf16.mxu1 %v2466_v54  ;;  %5161 = vmatpush3.bf16.msra.mxu0 %v5446_v20 }
 0x4bc   : > { %5139 = vmatpush3.bf16.msra.mxu1 %v2466_v54  ;;  %5162 = vmatprep.subr.bf16.mxu0 %v5447_v61 }
 0x4bd   : > { %5140 = vmatprep.subr.bf16.mxu1 %v2467_v41 }
 0x4bf   : > { %5163 = vmatpush3.bf16.msra.mxu0 %v5447_v61 }
 0x4c0   : > { %5141 = vmatpush3.bf16.msra.mxu1 %v2467_v41  ;;  %5164 = vmatprep.subr.bf16.mxu0 %v5448_v46 }
 0x4c3   : > { %5143 = vmatmul.mubr.bf16.vlgmr.msra.gmra.mrb[32].mxu1 %v6915_v60  ;;  %5165 = vmatpush3.bf16.msra.mxu0 %v5448_v46  ;;  %v5449_v60 = vld [vmem:[%s7843_s7 + $0x20] sm:$0xff]  }
 0x4c4   : > { %5146 = vmatprep.mubr.bf16.mxu1 %v6917_v21  ;;  %5166 = vmatprep.subr.bf16.mxu0 %v5449_v60  ;;  %v5450_v21 = vld [vmem:[%s7843_s7 + $0x28] sm:$0xff]  }
 0x4c7   : > { %5167 = vmatpush3.bf16.msra.mxu0 %v5449_v60 }
 0x4c8   : > { %5168 = vmatprep.subr.bf16.mxu0 %v5450_v21 }
 0x4cb   : > { %5147 = vmatmul.mubr.bf16.gmra.mrb[36].mxu1 %v6929_v16  ;;  %5169 = vmatpush3.bf16.msra.mxu0 %v5450_v21  ;;  %v5451_v16 = vld [vmem:[%s7843_s7 + $0x30] sm:$0xff]  }
 0x4cc   : > { %5150 = vmatprep.mubr.bf16.mxu1 %v6931_v32  ;;  %5170 = vmatprep.subr.bf16.mxu0 %v5451_v16  ;;  %v5452_v32 = vld [vmem:[%s7843_s7 + $0x38] sm:$0xff]  }
 0x4cf   : > { %5171 = vmatpush3.bf16.msra.mxu0 %v5451_v16 }
 0x4d0   : > { %5172 = vmatprep.subr.bf16.mxu0 %v5452_v32 }
 0x4d3   : > { %5151 = vmatmul.mubr.bf16.gmra.mrb[40].mxu1 %v6943_v55  ;;  %5173 = vmatpush3.bf16.msra.mxu0 %v5452_v32  ;;  %v7051_v55 = vld [vmem:[%s7842_s6] ss:$0 sm:$0xff] }
 0x4d4   : > { %5154 = vmatprep.mubr.bf16.mxu1 %v6945_v44 }
 0x4db   : > { %5155 = vmatmul.mubr.bf16.gmra.mrb[44].mxu1 %v6953_v51 }
 0x4dc   : > { %5222 = vmatprep.mubr.msk.f32.mxu1 %vm5748_vm0, %v7874_v62 }
 0x596   : > { %v5144_v44 = vpop.f32.mrb[32].mxu1 }
 0x597   : > { %v2518_v51 = vadd.f32 %v5144_v44, %v7051_v55  ;;  %v2509_v2 = vpop.f32.mrb[33].mxu1 }
 0x598   : > { %v2510_v26 = vadd.f32 %v7051_v55, %v2509_v2  ;;  %v5145_v23 = vpop.f32.mrb[34].mxu1 }
 0x599   : > { %v4718_v39 = vmul.f32 -1.442695, %v2518_v51  ;;  %v2521_v59 = vadd.f32 %v5145_v23, %v7051_v55  ;;  %v2512_v5 = vpop.f32.mrb[35].mxu1 }
 0x59a   : > { %v4716_v14 = vmul.f32 -1.442695, %v2510_v26  ;;  %v2513_v3 = vadd.f32 %v7051_v55, %v2512_v5 }
 0x59b   : > { %5549 = vpow2.f32 %v4718_v39  ;;  %v4719_v47 = vmul.f32 -1.442695, %v2521_v59 }
 0x59c   : > { %5551 = vpow2.f32 %v4716_v14  ;;  %v4717_v49 = vmul.f32 -1.442695, %v2513_v3 }
 0x59d   : > { %5553 = vpow2.f32 %v4719_v47 }
 0x59e   : > { %5555 = vpow2.f32 %v4717_v49  ;;  %v5148_v12 = vpop.f32.mrb[36].mxu1 }
 0x59f   : > { %v2534_v28 = vadd.f32 %v5148_v12, %v7051_v55  ;;  %v2525_v10 = vpop.f32.mrb[37].mxu1 }
 0x5a0   : > { %v2526_v38 = vadd.f32 %v7051_v55, %v2525_v10  ;;  %v5149_v34 = vpop.f32.mrb[38].mxu1 }
 0x5a1   : > { %v4722_v22 = vmul.f32 -1.442695, %v2534_v28  ;;  %v2537_v50 = vadd.f32 %v5149_v34, %v7051_v55  ;;  %v2528_v29 = vpop.f32.mrb[39].mxu1 }
 0x5a2   : > { %v4720_v43 = vmul.f32 -1.442695, %v2526_v38  ;;  %v2529_v48 = vadd.f32 %v7051_v55, %v2528_v29 }
 0x5a3   : > { %5557 = vpow2.f32 %v4722_v22  ;;  %v4723_v52 = vmul.f32 -1.442695, %v2537_v50 }
 0x5a4   : > { %5559 = vpow2.f32 %v4720_v43  ;;  %v4721_v13 = vmul.f32 -1.442695, %v2529_v48 }
 0x5a5   : > { %v5550_v15 = vpop.eup %5549  ;;  %5561 = vpow2.f32 %v4723_v52 }
 0x5a6   : > { %v5552_v11 = vpop.eup %5551  ;;  %v2622_v9 = vadd.f32 1.0, %v5550_v15  ;;  %5563 = vpow2.f32 %v4721_v13  ;;  %v5152_v33 = vpop.f32.mrb[40].mxu1 }
 0x5a7   : > { %v5554_v57 = vpop.eup %5553  ;;  %v2620_v1 = vadd.f32 1.0, %v5552_v11  ;;  %v2550_v7 = vadd.f32 %v5152_v33, %v7051_v55  ;;  %v2541_v63 = vpop.f32.mrb[41].mxu1 }
 0x5a8   : > { %v5556_v0 = vpop.eup %5555  ;;  %5565 = vrcp.f32 %v2622_v9  ;;  %v2623_v45 = vadd.f32 1.0, %v5554_v57  ;;  %v2542_v35 = vadd.f32 %v7051_v55, %v2541_v63  ;;  %v5153_v41 = vpop.f32.mrb[42].mxu1 }
 0x5a9   : > { %5567 = vrcp.f32 %v2620_v1  ;;  %v2621_v54 = vadd.f32 1.0, %v5556_v0  ;;  %v4726_v58 = vmul.f32 -1.442695, %v2550_v7  ;;  %v2553_v20 = vadd.f32 %v5153_v41, %v7051_v55  ;;  %v2544_v61 = vpop.f32.mrb[43].mxu1 }
 0x5aa   : > { %5569 = vrcp.f32 %v2623_v45  ;;  %v4724_v46 = vmul.f32 -1.442695, %v2542_v35  ;;  %v2545_v60 = vadd.f32 %v7051_v55, %v2544_v61  ;;  %v4796_v45 = vld [vmem:[%s7849_s13] ss:$0 sm:$0xff] }
 0x5ab   : > { %5571 = vrcp.f32 %v2621_v54  ;;  %v4727_v21 = vmul.f32 -1.442695, %v2553_v20 }
 0x5ac   : > { %5573 = vpow2.f32 %v4726_v58  ;;  %v4725_v16 = vmul.f32 -1.442695, %v2545_v60 }
 0x5ad   : > { %v5558_v32 = vpop.eup %5557  ;;  %5575 = vpow2.f32 %v4724_v46 }
 0x5ae   : > { %v5560_v44 = vpop.eup %5559  ;;  %v2626_v51 = vadd.f32 1.0, %v5558_v32  ;;  %5577 = vpow2.f32 %v4727_v21  ;;  %v5156_v2 = vpop.f32.mrb[44].mxu1 }
 0x5af   : > { %v5562_v26 = vpop.eup %5561  ;;  %v2624_v23 = vadd.f32 1.0, %v5560_v44  ;;  %5579 = vpow2.f32 %v4725_v16  ;;  %v2566_v39 = vadd.f32 %v5156_v2, %v7051_v55  ;;  %v2557_v59 = vpop.f32.mrb[45].mxu1 }
 0x5b0   : > { %v5564_v5 = vpop.eup %5563  ;;  %5581 = vrcp.f32 %v2626_v51  ;;  %v2627_v14 = vadd.f32 1.0, %v5562_v26  ;;  %v2558_v3 = vadd.f32 %v7051_v55, %v2557_v59  ;;  %v5157_v47 = vpop.f32.mrb[46].mxu1 }
 0x5b1   : > { %5583 = vrcp.f32 %v2624_v23  ;;  %v2625_v49 = vadd.f32 1.0, %v5564_v5  ;;  %v4730_v12 = vmul.f32 -1.442695, %v2566_v39  ;;  %v2569_v28 = vadd.f32 %v5157_v47, %v7051_v55  ;;  %v2560_v10 = vpop.f32.mrb[47].mxu1 }
 0x5b2   : > { %v7068_v38 = vpop.eup %5565  ;;  %5585 = vrcp.f32 %v2627_v14  ;;  %v4728_v34 = vmul.f32 -1.442695, %v2558_v3  ;;  %v2561_v22 = vadd.f32 %v7051_v55, %v2560_v10 }
 0x5b3   : > { %v7071_v50 = vpop.eup %5567  ;;  %5587 = vrcp.f32 %v2625_v49  ;;  %v4731_v29 = vmul.f32 -1.442695, %v2569_v28 }
 0x5b4   : > { %v7073_v43 = vpop.eup %5569  ;;  %5589 = vpow2.f32 %v4730_v12  ;;  %v4729_v48 = vmul.f32 -1.442695, %v2561_v22 }
 0x5b5   : > { %v7075_v52 = vpop.eup %5571  ;;  %5591 = vpow2.f32 %v4728_v34  ;;  %v2669_v13 = vpack.c.bf16 %v7073_v43, %v7068_v38 }
 0x5b6   : > { %v5574_v15 = vpop.eup %5573  ;;  %5593 = vpow2.f32 %v4731_v29  ;;  %v2668_v11 = vpack.c.bf16 %v7075_v52, %v7071_v50 }
 0x5b7   : > { %v5576_v55 = vpop.eup %5575  ;;  %v2630_v9 = vadd.f32 1.0, %v5574_v15  ;;  %5595 = vpow2.f32 %v4729_v48 }
 0x5b8   : > { %v5578_v33 = vpop.eup %5577  ;;  %v2628_v57 = vadd.f32 1.0, %v5576_v55  ;;  %5174 = vmatprep.mubr.bf16.mxu0 %v2668_v11 }
 0x5b9   : > { %v5580_v1 = vpop.eup %5579  ;;  %5597 = vrcp.f32 %v2630_v9  ;;  %v2631_v7 = vadd.f32 1.0, %v5578_v33  ;;  %5175 = vmatmul.mubr.bf16.vlgmr.msra.gmra.mrb[48].mxu0 %v2669_v13 }
 0x5ba   : > { %v5582_v63 = vpop.eup %5581  ;;  %5599 = vrcp.f32 %v2628_v57  ;;  %v2629_v0 = vadd.f32 1.0, %v5580_v1  ;;  %v5747_v57 = vmov 0.0|0.0  }
 0x5bb   : > { %v7084_v35 = vpop.eup %5583  ;;  %5601 = vrcp.f32 %v2631_v7  ;;  %v7086_v41 = vmul.f32 %v5582_v63, %v4796_v45  ;;  %5312 = vmatprep.subr.bf16.mxu1 %v5747_v57  ;;  %5336 = vmatprep.subr.bf16.mxu0 %v5747_v57  ;;  %v4732_v7 = vld [vmem:[%s7844_s8] ss:$0 sm:$0xff] }
 0x5bc   : > { %v5586_v54 = vpop.eup %5585  ;;  %5603 = vrcp.f32 %v2629_v0 }
 0x5bd   : > { %7906 = vst [vmem:[#allocation11_spill] sm:$0xff] %v7086_v41  ;;  %v5588_v58 = vpop.eup %5587  ;;  %v2671_v20 = vpack.c.bf16 %v5586_v54, %v5582_v63  ;;  %v7088_v61 = vmul.f32 %v5586_v54, %v4796_v45 }
 0x5be   : > { %v5590_v46 = vpop.eup %5589  ;;  %v2670_v60 = vpack.c.bf16 %v5588_v58, %v7084_v35  ;;  %v7091_v21 = vmul.f32 %v5588_v58, %v4796_v45 }
 0x5bf   : > { %7907 = vst [vmem:[#allocation5_spill] sm:$0xff] %v7088_v61  ;;  %v5592_v16 = vpop.eup %5591  ;;  %v2634_v32 = vadd.f32 1.0, %v5590_v46 }
 0x5c0   : > { %v5594_v44 = vpop.eup %5593  ;;  %v2632_v51 = vadd.f32 1.0, %v5592_v16  ;;  %5178 = vmatprep.mubr.bf16.mxu0 %v2670_v60 }
 0x5c1   : > { %v5596_v2 = vpop.eup %5595  ;;  %5605 = vrcp.f32 %v2634_v32  ;;  %v2635_v26 = vadd.f32 1.0, %v5594_v44  ;;  %5179 = vmatmul.mubr.bf16.gmra.mrb[52].mxu0 %v2671_v20 }
 0x5c2   : > { %5607 = vrcp.f32 %v2632_v51  ;;  %v2633_v23 = vadd.f32 1.0, %v5596_v2 }
 0x5c3   : > { %v5598_v39 = vpop.eup %5597  ;;  %5609 = vrcp.f32 %v2635_v26 }
 0x5c4   : > { %v5600_v59 = vpop.eup %5599  ;;  %5611 = vrcp.f32 %v2633_v23  ;;  %v7093_v5 = vmul.f32 %v5598_v39, %v4796_v45 }
 0x5c5   : > { %v5602_v14 = vpop.eup %5601  ;;  %v7095_v3 = vmul.f32 %v5600_v59, %v4796_v45 }
 0x5c6   : > { %7908 = vst [vmem:[#allocation12_spill] sm:$0xff] %v7093_v5  ;;  %v5604_v47 = vpop.eup %5603  ;;  %v2673_v49 = vpack.c.bf16 %v5602_v14, %v5598_v39  ;;  %v7097_v12 = vmul.f32 %v5602_v14, %v4796_v45 }
 0x5c7   : > { %7909 = vst [vmem:[#allocation6_spill] sm:$0xff] %v7095_v3  ;;  %v2672_v28 = vpack.c.bf16 %v5604_v47, %v5600_v59  ;;  %v7099_v10 = vmul.f32 %v5604_v47, %v4796_v45 }
 0x5c8   : > { %7910 = vst [vmem:[#allocation13_spill] sm:$0xff] %v7097_v12 }
 0x5c9   : > { %7911 = vst [vmem:[#allocation14_spill] sm:$0xff] %v7099_v10  ;;  %5182 = vmatprep.mubr.bf16.mxu0 %v2672_v28 }
 0x5ca   : > { %5183 = vmatmul.mubr.bf16.gmra.mrb[56].mxu0 %v2673_v49 }
 0x5cb   : > { %v5606_v34 = vpop.eup %5605 }
 0x5cc   : > { %v5608_v22 = vpop.eup %5607  ;;  %v7101_v29 = vmul.f32 %v5606_v34, %v4796_v45 }
 0x5cd   : > { %v5610_v48 = vpop.eup %5609  ;;  %v7103_v13 = vmul.f32 %v5608_v22, %v4796_v45 }
 0x5ce   : > { %7912 = vst [vmem:[#allocation7_spill] sm:$0xff] %v7101_v29  ;;  %v5612_v15 = vpop.eup %5611  ;;  %v2675_v11 = vpack.c.bf16 %v5610_v48, %v5606_v34  ;;  %v7105_v55 = vmul.f32 %v5610_v48, %v4796_v45 }
 0x5cf   : > { %7913 = vst [vmem:[#allocation8_spill] sm:$0xff] %v7103_v13  ;;  %v2674_v9 = vpack.c.bf16 %v5612_v15, %v5608_v22  ;;  %v7107_v33 = vmul.f32 %v5612_v15, %v4796_v45 }
 0x5d0   : > { %7914 = vst [vmem:[#allocation15_spill] sm:$0xff] %v7105_v55 }
 0x5d1   : > { %7915 = vst [vmem:[#allocation9_spill] sm:$0xff] %v7107_v33  ;;  %5186 = vmatprep.mubr.bf16.mxu0 %v2674_v9 }
 0x5d2   : > { %5187 = vmatmul.mubr.bf16.gmra.mrb[60].mxu0 %v2675_v11 }
 0x5d3   : > { %5283 = vmatprep.mubr.msk.f32.mxu0 %vm5748_vm0, %v7874_v62 }
 0x68c   : > { %v5176_v1 = vpop.f32.mrb[48].mxu0 }
 0x68d   : > { %v2781_v63 = vpop.f32.mrb[49].mxu0  ;;  %v7124_v60 = vadd.f32 %v5176_v1, %v4732_v7 }
 0x68e   : > { %v5177_v0 = vpop.f32.mrb[50].mxu0  ;;  %v7116_v54 = vadd.f32 %v4732_v7, %v2781_v63 }
 0x68f   : > { %v2784_v45 = vpop.f32.mrb[51].mxu0  ;;  %v7120_v20 = vadd.f32 %v5177_v0, %v4732_v7 }
 0x690   : > { %v7118_v58 = vadd.f32 %v4732_v7, %v2784_v45  ;;  %v2844_v45 = vmul.u32 16, %v5894_v36 }
 0x691   : > { %v5316_v44 = vpack.c.bf16 %v7120_v20, %v7124_v60 }
 0x692   : > { %v5313_v46 = vpack.c.bf16 %v7118_v58, %v7116_v54 }
 0x694   : > { %v5180_v16 = vpop.f32.mrb[52].mxu0  ;;  %5314 = vmatpush3.bf16.msra.mxu1 %v5313_v46 }
 0x695   : > { %v2797_v32 = vpop.f32.mrb[53].mxu0  ;;  %5315 = vmatprep.subr.bf16.mxu1 %v5747_v57  ;;  %v7138_v14 = vadd.f32 %v5180_v16, %v4732_v7 }
 0x696   : > { %v5181_v51 = vpop.f32.mrb[54].mxu0  ;;  %v7129_v26 = vadd.f32 %v4732_v7, %v2797_v32 }
 0x697   : > { %v2800_v2 = vpop.f32.mrb[55].mxu0  ;;  %v7134_v39 = vadd.f32 %v5181_v51, %v4732_v7 }
 0x698   : > { %v7131_v23 = vadd.f32 %v4732_v7, %v2800_v2  ;;  %5317 = vmatpush3.bf16.msra.mxu1 %v5316_v44  ;;  %v2845_v2 = vsub.s32 %v5989_v19, %v2844_v45 }
 0x699   : > { %5318 = vmatprep.subr.bf16.mxu1 %v5747_v57  ;;  %v5322_v49 = vpack.c.bf16 %v7134_v39, %v7138_v14 }
 0x69a   : > { %v5319_v59 = vpack.c.bf16 %v7131_v23, %v7129_v26  ;;  %vm2846_vm1 = vcmp.ge.s32.totalorder %v2845_v2, 0  ;;  %vm2847_vm2 = vcmp.lt.s32.totalorder %v2845_v2, 16 }
 0x69b   : > { %vm7173_vm3 = vmand %vm2846_vm1, %vm2847_vm2 }
 0x69c   : > { %5320 = vmatpush3.bf16.msra.mxu1 %v5319_v59 }
 0x69d   : > { %v5184_v47 = vpop.f32.mrb[56].mxu0  ;;  %5321 = vmatprep.subr.bf16.mxu1 %v5747_v57 }
 0x69e   : > { %v2813_v28 = vpop.f32.mrb[57].mxu0  ;;  %v7152_v1 = vadd.f32 %v5184_v47, %v4732_v7 }
 0x69f   : > { %v5185_v34 = vpop.f32.mrb[58].mxu0  ;;  %v7143_v48 = vadd.f32 %v4732_v7, %v2813_v28 }
 0x6a0   : > { %v2816_v22 = vpop.f32.mrb[59].mxu0  ;;  %5323 = vmatpush3.bf16.msra.mxu1 %v5322_v49  ;;  %v7148_v11 = vadd.f32 %v5185_v34, %v4732_v7 }
 0x6a1   : > { %v7145_v15 = vadd.f32 %v4732_v7, %v2816_v22  ;;  %5324 = vmatprep.subr.bf16.mxu1 %v5747_v57  ;;  %v5749_v22 = vmov 1.0  }
 0x6a2   : > { %v5328_v46 = vpack.c.bf16 %v7148_v11, %v7152_v1 }
 0x6a3   : > { %v5325_v9 = vpack.c.bf16 %v7145_v15, %v7143_v48 }
 0x6a5   : > { %v5188_v63 = vpop.f32.mrb[60].mxu0  ;;  %5326 = vmatpush3.bf16.msra.mxu1 %v5325_v9 }
 0x6a6   : > { %v2829_v0 = vpop.f32.mrb[61].mxu0  ;;  %5327 = vmatprep.subr.bf16.mxu1 %v5747_v57  ;;  %v7168_v49 = vadd.f32 %v5188_v63, %v4732_v7 }
 0x6a7   : > { %v5189_v16 = vpop.f32.mrb[62].mxu0  ;;  %v7158_v44 = vadd.f32 %v4732_v7, %v2829_v0 }
 0x6a8   : > { %v2832_v32 = vpop.f32.mrb[63].mxu0  ;;  %v7164_v59 = vadd.f32 %v5189_v16, %v4732_v7 }
 0x6a9   : > { %v7160_v51 = vadd.f32 %v4732_v7, %v2832_v32  ;;  %5329 = vmatpush3.bf16.msra.mxu1 %v5328_v46  ;;  %v7181_v7 = vmul.u32 16, %v5989_v19 }
 0x6aa   : > { %5330 = vmatprep.subr.bf16.mxu1 %v5747_v57  ;;  %v5334_v28 = vpack.c.bf16 %v7164_v59, %v7168_v49 }
 0x6ab   : > { %v5331_v47 = vpack.c.bf16 %v7160_v51, %v7158_v44  ;;  %v2852_v9 = vsub.s32 %v5894_v36, %v7181_v7  ;;  %v2853_v0 = vsub.s32 %v5911_v42, %v7181_v7  ;;  %v2854_v45 = vsub.s32 %v6108_v53, %v7181_v7 }
 0x6ac   : > { %v2855_v46 = vsub.s32 %v6111_v56, %v7181_v7  ;;  %v2856_v16 = vsub.s32 %v6133_v4, %v7181_v7  ;;  %v2857_v42 = vsub.s32 %v6136_v6, %v7181_v7  ;;  %v2858_v56 = vsub.s32 %v6159_v17, %v7181_v7 }
 0x6ad   : > { %5332 = vmatpush3.bf16.msra.mxu1 %v5331_v47  ;;  %vm2868_vm4 = vcmp.ge.s32.totalorder %v2852_v9, 0  ;;  %vm2884_vm5 = vcmp.lt.s32.totalorder %v2852_v9, 16  ;;  %vm2869_vm8 = vcmp.ge.s32.totalorder %v2853_v0, 0  ;;  %vm2885_vm9 = vcmp.lt.s32.totalorder %v2853_v0, 16 }
 0x6ae   : > { %5333 = vmatprep.subr.bf16.mxu1 %v5747_v57  ;;  %vm2900_vm6 = vmand %vm2868_vm4, %vm2884_vm5  ;;  %vm2870_vm10 = vcmp.ge.s32.totalorder %v2854_v45, 0  ;;  %vm2886_vm11 = vcmp.lt.s32.totalorder %v2854_v45, 16  ;;  %vm2871_vm13 = vcmp.ge.s32.totalorder %v2855_v46, 0  ;;  %vm2887_vm15 = vcmp.lt.s32.totalorder %v2855_v46, 16 }
 0x6af   : > { %v7186_v63 = vsel %vm2900_vm6, 1.0, %v7874_v62  ;;  %vm2901_vm12 = vmand %vm2869_vm8, %vm2885_vm9  ;;  %vm2872_vm0 = vcmp.ge.s32.totalorder %v2856_v16, 0  ;;  %vm2888_vm1 = vcmp.lt.s32.totalorder %v2856_v16, 16  ;;  %vm2873_vm5 = vcmp.ge.s32.totalorder %v2857_v42, 0 }
 0x6b0   : > { %vm2902_vm14 = vmand %vm2870_vm10, %vm2886_vm11  ;;  %v7203_v47 = vsel %vm2901_vm12, 1.0, %v7874_v62  ;;  %vm2889_vm6 = vcmp.lt.s32.totalorder %v2857_v42, 16  ;;  %v2859_v6 = vsub.s32 %v6162_v18, %v7181_v7  ;;  %vm2874_vm8 = vcmp.ge.s32.totalorder %v2858_v56, 0 }
 0x6b1   : > { %5335 = vmatpush3.bf16.msra.mxu1 %v5334_v28  ;;  %v7206_v4 = vsel %vm2902_vm14, 1.0, %v7874_v62  ;;  %vm2903_vm2 = vmand %vm2871_vm13, %vm2887_vm15  ;;  %vm2890_vm9 = vcmp.lt.s32.totalorder %v2858_v56, 16  ;;  %v2860_v17 = vsub.s32 %v6187_v37, %v7181_v7  ;;  %v2861_v18 = vsub.s32 %v6190_v25, %v7181_v7 }
 0x6b2   : > { %vm2904_vm4 = vmand %vm2872_vm0, %vm2888_vm1  ;;  %v7217_v28 = vsel %vm2903_vm2, 1.0, %v7874_v62  ;;  %vm2875_vm12 = vcmp.ge.s32.totalorder %v2859_v6, 0  ;;  %vm2891_vm14 = vcmp.lt.s32.totalorder %v2859_v6, 16  ;;  %v2862_v37 = vsub.s32 %v7896_v31, %v7181_v7 }
 0x6b3   : > { %v7220_v9 = vsel %vm2904_vm4, 1.0, %v7874_v62  ;;  %vm2905_vm10 = vmand %vm2873_vm5, %vm2889_vm6  ;;  %vm2876_vm13 = vcmp.ge.s32.totalorder %v2860_v17, 0  ;;  %vm2892_vm15 = vcmp.lt.s32.totalorder %v2860_v17, 16  ;;  %vm2877_vm2 = vcmp.ge.s32.totalorder %v2861_v18, 0 }
 0x6b4   : > { %5223 = vmatmul.mubr.msk.f32.vlgmr.msra.gmra.mrb[48].mxu1 %vm7173_vm3, %v5749_v22  ;;  %vm2906_vm11 = vmand %vm2874_vm8, %vm2890_vm9  ;;  %v7231_v0 = vsel %vm2905_vm10, 1.0, %v7874_v62  ;;  %vm2893_vm4 = vcmp.lt.s32.totalorder %v2861_v18, 16  ;;  %v2863_v25 = vsub.s32 %v7898_v30, %v7181_v7  ;;  %vm2878_vm5 = vcmp.ge.s32.totalorder %v2862_v37, 0 }
 0x6b5   : > { %5227 = vmatprep.mubr.msk.f32.mxu1 %vm3019_vm7, %v7186_v63  ;;  %v7234_v45 = vsel %vm2906_vm11, 1.0, %v7874_v62  ;;  %vm2907_vm0 = vmand %vm2875_vm12, %vm2891_vm14  ;;  %vm2894_vm6 = vcmp.lt.s32.totalorder %v2862_v37, 16  ;;  %v2864_v31 = vsub.s32 %v7901_v8, %v7181_v7  ;;  %v2865_v30 = vsub.s32 %v7902_v27, %v7181_v7 }
 0x6b6   : > { %vm2908_vm1 = vmand %vm2876_vm13, %vm2892_vm15  ;;  %v7245_v46 = vsel %vm2907_vm0, 1.0, %v7874_v62  ;;  %vm2879_vm10 = vcmp.ge.s32.totalorder %v2863_v25, 0  ;;  %vm2895_vm11 = vcmp.lt.s32.totalorder %v2863_v25, 16  ;;  %v2866_v8 = vsub.s32 %v7904_v40, %v7181_v7 }
 0x6b7   : > { %v4750_v16 = vsel %vm2908_vm1, 1.0, %v7874_v62  ;;  %vm2909_vm8 = vmand %vm2877_vm2, %vm2893_vm4  ;;  %vm2880_vm12 = vcmp.ge.s32.totalorder %v2864_v31, 0  ;;  %vm2896_vm14 = vcmp.lt.s32.totalorder %v2864_v31, 16  ;;  %vm2881_vm0 = vcmp.ge.s32.totalorder %v2865_v30, 0 }
 0x6b8   : > { %vm2910_vm9 = vmand %vm2878_vm5, %vm2894_vm6  ;;  %vm2897_vm1 = vcmp.lt.s32.totalorder %v2865_v30, 16  ;;  %v2867_v27 = vsub.s32 %v7905_v24, %v7181_v7  ;;  %vm2882_vm2 = vcmp.ge.s32.totalorder %v2866_v8, 0  ;;  %vm2898_vm4 = vcmp.lt.s32.totalorder %v2866_v8, 16 }
 0x6b9   : > { %v7259_v42 = vsel %vm2910_vm9, 1.0, %v7874_v62  ;;  %vm2911_vm13 = vmand %vm2879_vm10, %vm2895_vm11 }
 0x6ba   : > { %vm2912_vm15 = vmand %vm2880_vm12, %vm2896_vm14  ;;  %v7268_v40 = vsel %vm2911_vm13, 1.0, %v7874_v62  ;;  %vm2899_vm9 = vcmp.lt.s32.totalorder %v2867_v27, 16 }
 0x6bb   : > { %vm2913_vm5 = vmand %vm2881_vm0, %vm2897_vm1 }
 0x6bc   : > { %vm2914_vm6 = vmand %vm2882_vm2, %vm2898_vm4  ;;  %v7278_v24 = vsel %vm2913_vm5, 1.0, %v7874_v62 }
 0x6bd   : > { %v7281_v7 = vsel %vm2914_vm6, 1.0, %v7874_v62 }
 0x787   : > { %v3014_v32 = vpop.f32.mrb[48].mxu1 }
 0x788   : > { %v3018_v2 = vmul.f32 0.0625, %v3014_v32  ;;  %v5224_v53 = vpop.f32.mrb[49].mxu1  ;;  %v7256_v32 = vsel %vm2909_vm8, 1.0, %v7874_v62  ;;  %vm2883_vm8 = vcmp.ge.s32.totalorder %v2867_v27, 0 }
 0x789   : > { %vm2915_vm10 = vmand %vm2883_vm8, %vm2899_vm9 }
 0x78a   : > { %5225 = vmatprep.subr.mxu1 %v3018_v2  ;;  %v7288_v53 = vsel %vm2915_vm10, 1.0, %v7874_v62 }
 0x78b   : > { %5226 = vmatpush3.msra.mxu1 %v3018_v2  ;;  %v7271_v2 = vsel %vm2912_vm15, 1.0, %v7874_v62 }
 0x78c   : > { %5228 = vmatmul.mubr.msk.f32.vlgmr.msra.gmra.mrb[50].mxu1 %vm3019_vm7, %v7203_v47 }
 0x78d   : > { %5230 = vmatprep.mubr.msk.f32.mxu1 %vm3019_vm7, %v7206_v4 }
 0x790   : > { %5231 = vmatmul.mubr.msk.f32.gmra.mrb[52].mxu1 %vm3019_vm7, %v7217_v28 }
 0x791   : > { %5233 = vmatprep.mubr.msk.f32.mxu1 %vm3019_vm7, %v7220_v9 }
 0x794   : > { %5234 = vmatmul.mubr.msk.f32.gmra.mrb[54].mxu1 %vm3019_vm7, %v7231_v0 }
 0x795   : > { %5236 = vmatprep.mubr.msk.f32.mxu1 %vm3019_vm7, %v7234_v45 }
 0x798   : > { %5237 = vmatmul.mubr.msk.f32.gmra.mrb[56].mxu1 %vm3019_vm7, %v7245_v46 }
 0x799   : > { %5239 = vmatprep.mubr.msk.f32.mxu1 %vm3019_vm7, %v4750_v16 }
 0x79c   : > { %5240 = vmatmul.mubr.msk.f32.gmra.mrb[58].mxu1 %vm3019_vm7, %v7256_v32 }
 0x79d   : > { %5242 = vmatprep.mubr.msk.f32.mxu1 %vm3019_vm7, %v7259_v42 }
 0x7a0   : > { %5243 = vmatmul.mubr.msk.f32.gmra.mrb[60].mxu1 %vm3019_vm7, %v7268_v40 }
 0x7a1   : > { %5245 = vmatprep.mubr.msk.f32.mxu1 %vm3019_vm7, %v7271_v2 }
 0x7a4   : > { %5246 = vmatmul.mubr.msk.f32.gmra.mrb[62].mxu1 %vm3019_vm7, %v7278_v24 }
 0x7a5   : > { %5248 = vmatprep.mubr.msk.f32.mxu1 %vm3019_vm7, %v7281_v7 }
 0x7a8   : > { %5249 = vmatmul.mubr.msk.f32.gmra.mrb[64].mxu1 %vm3019_vm7, %v7288_v53 }
 0x7a9   : > { %5300 = vmatprep.mubr.msk.f32.mxu1 %vm3019_vm7, %v4750_v16 }
 0x85f   : > { %v5229_v56 = vpop.f32.mrb[50].mxu1 }
 0x860   : > { %v7294_v6 = vsub.f32 %v7118_v58, %v5229_v56  ;;  %v3134_v17 = vpop.f32.mrb[51].mxu1 }
 0x861   : > { %v7297_v18 = vsub.f32 %v7116_v54, %v3134_v17 }
 0x862   : > { %v3230_v37 = vmul.f32 %v7294_v6, %v7294_v6 }
 0x863   : > { %v3229_v25 = vmul.f32 %v7297_v18, %v7297_v18  ;;  %v5232_v31 = vpop.f32.mrb[52].mxu1 }
 0x864   : > { %v7304_v30 = vsub.f32 %v7120_v20, %v5232_v31  ;;  %v3144_v8 = vpop.f32.mrb[53].mxu1 }
 0x865   : > { %v5337_v16 = vpack.c.bf16 %v3230_v37, %v3229_v25  ;;  %v7307_v27 = vsub.f32 %v7124_v60, %v3144_v8 }
 0x866   : > { %v3232_v58 = vmul.f32 %v7304_v30, %v7304_v30 }
 0x867   : > { %v3231_v54 = vmul.f32 %v7307_v27, %v7307_v27  ;;  %v5235_v56 = vpop.f32.mrb[54].mxu1  ;;  %5338 = vmatpush3.bf16.msra.mxu0 %v5337_v16 }
 0x868   : > { %v7314_v17 = vsub.f32 %v7131_v23, %v5235_v56  ;;  %v3154_v62 = vpop.f32.mrb[55].mxu1  ;;  %5339 = vmatprep.subr.bf16.mxu0 %v5747_v57 }
 0x869   : > { %v5340_v20 = vpack.c.bf16 %v3232_v58, %v3231_v54  ;;  %v7318_v37 = vsub.f32 %v7129_v26, %v3154_v62 }
 0x86a   : > { %v3234_v60 = vmul.f32 %v7314_v17, %v7314_v17 }
 0x86b   : > { %v3233_v25 = vmul.f32 %v7318_v37, %v7318_v37  ;;  %v5238_v31 = vpop.f32.mrb[56].mxu1  ;;  %5341 = vmatpush3.bf16.msra.mxu0 %v5340_v20 }
 0x86c   : > { %v7325_v8 = vsub.f32 %v7134_v39, %v5238_v31  ;;  %v3164_v23 = vpop.f32.mrb[57].mxu1  ;;  %5342 = vmatprep.subr.bf16.mxu0 %v5747_v57 }
 0x86d   : > { %v5343_v16 = vpack.c.bf16 %v3234_v60, %v3233_v25  ;;  %v7329_v58 = vsub.f32 %v7138_v14, %v3164_v23 }
 0x86e   : > { %v3236_v62 = vmul.f32 %v7325_v8, %v7325_v8 }
 0x86f   : > { %v3235_v26 = vmul.f32 %v7329_v58, %v7329_v58  ;;  %v5241_v54 = vpop.f32.mrb[58].mxu1  ;;  %5344 = vmatpush3.bf16.msra.mxu0 %v5343_v16 }
 0x870   : > { %v7336_v56 = vsub.f32 %v7145_v15, %v5241_v54  ;;  %v3174_v39 = vpop.f32.mrb[59].mxu1  ;;  %5345 = vmatprep.subr.bf16.mxu0 %v5747_v57 }
 0x871   : > { %v5346_v20 = vpack.c.bf16 %v3236_v62, %v3235_v26  ;;  %v7340_v60 = vsub.f32 %v7143_v48, %v3174_v39 }
 0x872   : > { %v3238_v14 = vmul.f32 %v7336_v56, %v7336_v56 }
 0x873   : > { %v3237_v25 = vmul.f32 %v7340_v60, %v7340_v60  ;;  %v5244_v31 = vpop.f32.mrb[60].mxu1  ;;  %5347 = vmatpush3.bf16.msra.mxu0 %v5346_v20 }
 0x874   : > { %v7347_v23 = vsub.f32 %v7148_v11, %v5244_v31  ;;  %v3184_v15 = vpop.f32.mrb[61].mxu1  ;;  %5348 = vmatprep.subr.bf16.mxu0 %v5747_v57 }
 0x875   : > { %v5349_v16 = vpack.c.bf16 %v3238_v14, %v3237_v25  ;;  %v7351_v62 = vsub.f32 %v7152_v1, %v3184_v15 }
 0x876   : > { %v3240_v48 = vmul.f32 %v7347_v23, %v7347_v23 }
 0x877   : > { %v3239_v26 = vmul.f32 %v7351_v62, %v7351_v62  ;;  %v5247_v54 = vpop.f32.mrb[62].mxu1  ;;  %5350 = vmatpush3.bf16.msra.mxu0 %v5349_v16 }
 0x878   : > { %v7358_v39 = vsub.f32 %v7160_v51, %v5247_v54  ;;  %v3194_v11 = vpop.f32.mrb[63].mxu1  ;;  %5351 = vmatprep.subr.bf16.mxu0 %v5747_v57 }
 0x879   : > { %v5352_v20 = vpack.c.bf16 %v3240_v48, %v3239_v26  ;;  %v7362_v14 = vsub.f32 %v7158_v44, %v3194_v11 }
 0x87a   : > { %v3242_v1 = vmul.f32 %v7358_v39, %v7358_v39 }
 0x87b   : > { %v3241_v25 = vmul.f32 %v7362_v14, %v7362_v14  ;;  %v5250_v31 = vpop.f32.mrb[64].mxu1  ;;  %5353 = vmatpush3.bf16.msra.mxu0 %v5352_v20 }
 0x87c   : > { %v7369_v15 = vsub.f32 %v7164_v59, %v5250_v31  ;;  %v3204_v51 = vpop.f32.mrb[65].mxu1  ;;  %5354 = vmatprep.subr.bf16.mxu0 %v5747_v57 }
 0x87d   : > { %v5355_v16 = vpack.c.bf16 %v3242_v1, %v3241_v25  ;;  %v7373_v48 = vsub.f32 %v7168_v49, %v3204_v51 }
 0x87e   : > { %v3244_v44 = vmul.f32 %v7369_v15, %v7369_v15 }
 0x87f   : > { %v3243_v26 = vmul.f32 %v7373_v48, %v7373_v48  ;;  %5356 = vmatpush3.bf16.msra.mxu0 %v5355_v16 }
 0x880   : > { %5357 = vmatprep.subr.bf16.mxu0 %v5747_v57  ;;  %v5750_v57 = vmov 6  }
 0x881   : > { %v5358_v54 = vpack.c.bf16 %v3244_v44, %v3243_v26  ;;  %5426 = vset.pattern.permute.xlu1 %v5750_v57  ;;  %5425 = vset.pattern.permute.xlu0 %v5750_v57 }
 0x883   : > { %5359 = vmatpush3.bf16.msra.mxu0 %v5358_v54 }
 0x886   : > { %5284 = vmatmul.mubr.msk.f32.vlgmr.msra.gmra.mrb[64].mxu0 %vm7173_vm3, %v5749_v22 }
 0x887   : > { %5288 = vmatprep.mubr.msk.f32.mxu0 %vm3019_vm7, %v7186_v63 }
 0x959   : > { %v3311_v59 = vpop.f32.mrb[64].mxu0 }
 0x95a   : > { %v3315_v49 = vmul.f32 0.0625, %v3311_v59  ;;  %v5285_v11 = vpop.f32.mrb[65].mxu0 }
 0x95c   : > { %5286 = vmatprep.subr.mxu0 %v3315_v49  ;;  %5360 = vmatprep.subr.mxu1 %v3315_v49 }
 0x95d   : > { %5287 = vmatpush3.msra.mxu0 %v3315_v49  ;;  %5361 = vmatpush3.msra.mxu1 %v3315_v49 }
 0x95e   : > { %5289 = vmatmul.mubr.msk.f32.vlgmr.msra.gmra.mrb[66].mxu0 %vm3019_vm7, %v7203_v47  ;;  %5301 = vmatmul.mubr.msk.f32.vlgmr.msra.gmra.mrb[66].mxu1 %vm3019_vm7, %v7256_v32 }
 0x95f   : > { %5291 = vmatprep.mubr.msk.f32.mxu0 %vm3019_vm7, %v7206_v4  ;;  %5303 = vmatprep.mubr.msk.f32.mxu1 %vm3019_vm7, %v7259_v42 }
 0x962   : > { %5292 = vmatmul.mubr.msk.f32.gmra.mrb[68].mxu0 %vm3019_vm7, %v7217_v28  ;;  %5304 = vmatmul.mubr.msk.f32.gmra.mrb[68].mxu1 %vm3019_vm7, %v7268_v40 }
 0x963   : > { %5294 = vmatprep.mubr.msk.f32.mxu0 %vm3019_vm7, %v7220_v9  ;;  %5306 = vmatprep.mubr.msk.f32.mxu1 %vm3019_vm7, %v7271_v2 }
 0x966   : > { %5295 = vmatmul.mubr.msk.f32.gmra.mrb[70].mxu0 %vm3019_vm7, %v7231_v0  ;;  %5307 = vmatmul.mubr.msk.f32.gmra.mrb[70].mxu1 %vm3019_vm7, %v7278_v24 }
 0x967   : > { %5297 = vmatprep.mubr.msk.f32.mxu0 %vm3019_vm7, %v7234_v45  ;;  %5309 = vmatprep.mubr.msk.f32.mxu1 %vm3019_vm7, %v7281_v7 }
 0x96a   : > { %5298 = vmatmul.mubr.msk.f32.gmra.mrb[72].mxu0 %vm3019_vm7, %v7245_v46  ;;  %5310 = vmatmul.mubr.msk.f32.gmra.mrb[72].mxu1 %vm3019_vm7, %v7288_v53 }
 0xa31   : > { %v5290_v34 = vpop.f32.mrb[66].mxu0  ;;  %v5302_v22 = vpop.f32.mrb[66].mxu1 }
 0xa32   : > { %v3388_v63 = vadd.f32 1e-05, %v5290_v34  ;;  %v3428_v47 = vadd.f32 1e-05, %v5302_v22  ;;  %v3382_v4 = vpop.f32.mrb[67].mxu0  ;;  %v3422_v28 = vpop.f32.mrb[67].mxu1 }
 0xa33   : > { %v3383_v9 = vadd.f32 1e-05, %v3382_v4  ;;  %v3423_v0 = vadd.f32 1e-05, %v3422_v28  ;;  %v7416_v34 = vld [vmem:[%s7845_s9] ss:$0 sm:$0xff] }
 0xa34   : > { %5613 = vrsqrt.f32 %v3388_v63 }
 0xa35   : > { %5615 = vrsqrt.f32 %v3428_v47  ;;  %v5293_v45 = vpop.f32.mrb[68].mxu0  ;;  %v5305_v32 = vpop.f32.mrb[68].mxu1 }
 0xa36   : > { %5617 = vrsqrt.f32 %v3383_v9  ;;  %v3398_v46 = vadd.f32 1e-05, %v5293_v45  ;;  %v3438_v42 = vadd.f32 1e-05, %v5305_v32  ;;  %v3392_v40 = vpop.f32.mrb[69].mxu0  ;;  %v3432_v2 = vpop.f32.mrb[69].mxu1 }
 0xa37   : > { %5619 = vrsqrt.f32 %v3423_v0  ;;  %v3393_v24 = vadd.f32 1e-05, %v3392_v40  ;;  %v3433_v7 = vadd.f32 1e-05, %v3432_v2  ;;  %v7422_v9 = vld [vmem:[%s7846_s10] ss:$0 sm:$0xff] }
 0xa38   : > { %5621 = vrsqrt.f32 %v3398_v46 }
 0xa39   : > { %5623 = vrsqrt.f32 %v3438_v42  ;;  %v5296_v53 = vpop.f32.mrb[70].mxu0  ;;  %v5308_v20 = vpop.f32.mrb[70].mxu1 }
 0xa3a   : > { %5625 = vrsqrt.f32 %v3393_v24  ;;  %v3408_v1 = vadd.f32 1e-05, %v5296_v53  ;;  %v3448_v25 = vadd.f32 1e-05, %v5308_v20  ;;  %v3402_v31 = vpop.f32.mrb[71].mxu0  ;;  %v3442_v51 = vpop.f32.mrb[71].mxu1 }
 0xa3b   : > { %5627 = vrsqrt.f32 %v3433_v7  ;;  %v3403_v16 = vadd.f32 1e-05, %v3402_v31  ;;  %v3443_v44 = vadd.f32 1e-05, %v3442_v51 }
 0xa3c   : > { %5629 = vrsqrt.f32 %v3408_v1 }
 0xa3d   : > { %5631 = vrsqrt.f32 %v3448_v25  ;;  %v5299_v26 = vpop.f32.mrb[72].mxu0  ;;  %v5311_v54 = vpop.f32.mrb[72].mxu1 }
 0xa3e   : > { %v5614_v59 = vpop.eup %5613  ;;  %5633 = vrsqrt.f32 %v3403_v16  ;;  %v3418_v49 = vadd.f32 1e-05, %v5299_v26  ;;  %v3412_v11 = vpop.f32.mrb[73].mxu0  ;;  %v3458_v63 = vadd.f32 1e-05, %v5311_v54 }
 0xa3f   : > { %v3452_v57 = vpop.f32.mrb[73].mxu1  ;;  %v5616_v22 = vpop.eup %5615  ;;  %v3478_v47 = vmul.f32 %v5614_v59, %v7294_v6  ;;  %5635 = vrsqrt.f32 %v3443_v44  ;;  %v3413_v28 = vadd.f32 1e-05, %v3412_v11 }
 0xa40   : > { %v5618_v4 = vpop.eup %5617  ;;  %v3486_v0 = vmul.f32 %v5616_v22, %v7336_v56  ;;  %5637 = vrsqrt.f32 %v3418_v49  ;;  %v3453_v40 = vadd.f32 1e-05, %v3452_v57 }
 0xa41   : > { %v5620_v45 = vpop.eup %5619  ;;  %v3501_v32 = vmul.f32 %v7416_v34, %v3478_v47  ;;  %v3477_v46 = vmul.f32 %v5618_v4, %v7297_v18  ;;  %5639 = vrsqrt.f32 %v3458_v63  ;;  %v7435_v18 = vld [vmem:[%s7847_s11] ss:$0 sm:$0xff] }
 0xa42   : > { %v5622_v42 = vpop.eup %5621  ;;  %v3509_v6 = vmul.f32 %v7416_v34, %v3486_v0  ;;  %v3485_v2 = vmul.f32 %v5620_v45, %v7340_v60  ;;  %5641 = vrsqrt.f32 %v3413_v28 }
 0xa43   : > { %v5624_v24 = vpop.eup %5623  ;;  %v3524_v7 = vadd.f32 %v7422_v9, %v3501_v32  ;;  %v3500_v53 = vmul.f32 %v7416_v34, %v3477_v46  ;;  %v3480_v56 = vmul.f32 %v5622_v42, %v7304_v30  ;;  %5643 = vrsqrt.f32 %v3453_v40 }
 0xa44   : > { %v5626_v20 = vpop.eup %5625  ;;  %v3532_v1 = vadd.f32 %v7422_v9, %v3509_v6  ;;  %v3508_v25 = vmul.f32 %v7416_v34, %v3485_v2  ;;  %v3488_v60 = vmul.f32 %v5624_v24, %v7347_v23 }
 0xa45   : > { %v5628_v31 = vpop.eup %5627  ;;  %v3540_v51 = vmax.f32 %v3524_v7, 0.0  ;;  %v3523_v16 = vadd.f32 %v7422_v9, %v3500_v53  ;;  %v3503_v44 = vmul.f32 %v7416_v34, %v3480_v56  ;;  %v3479_v30 = vmul.f32 %v5626_v20, %v7307_v27 }
 0xa46   : > { %v5630_v26 = vpop.eup %5629  ;;  %v3548_v54 = vmax.f32 %v3532_v1, 0.0  ;;  %v3531_v59 = vadd.f32 %v7422_v9, %v3508_v25  ;;  %v3511_v49 = vmul.f32 %v7416_v34, %v3488_v60  ;;  %v3487_v11 = vmul.f32 %v5628_v31, %v7351_v62 }
 0xa47   : > { %v5632_v57 = vpop.eup %5631  ;;  %v3563_v22 = vmul.f32 %v7435_v18, %v3540_v51  ;;  %v3539_v23 = vmax.f32 %v3523_v16, 0.0  ;;  %v3526_v63 = vadd.f32 %v7422_v9, %v3503_v44  ;;  %v3502_v47 = vmul.f32 %v7416_v34, %v3479_v30 }
 0xa48   : > { %v5634_v4 = vpop.eup %5633  ;;  %v3510_v27 = vmul.f32 %v7416_v34, %v3487_v11  ;;  %v3547_v0 = vmax.f32 %v3531_v59, 0.0  ;;  %v3482_v62 = vmul.f32 %v5630_v26, %v7314_v17  ;;  %v3534_v46 = vadd.f32 %v7422_v9, %v3511_v49 }
 0xa49   : > { %3580 = vadd.xlane.f32.xlu1 %v3563_v22  ;;  %v3562_v28 = vmul.f32 %v7435_v18, %v3539_v23  ;;  %v3525_v45 = vadd.f32 %v7422_v9, %v3502_v47  ;;  %v5636_v32 = vpop.eup %5635  ;;  %v3481_v42 = vmul.f32 %v5634_v4, %v7318_v37  ;;  %v3571_v6 = vmul.f32 %v7435_v18, %v3548_v54 }
 0xa4a   : > { %v3542_v2 = vmax.f32 %v3526_v63, 0.0  ;;  %v3505_v40 = vmul.f32 %v7416_v34, %v3482_v62  ;;  %v3490_v24 = vmul.f32 %v5632_v57, %v7358_v39  ;;  %v5638_v7 = vpop.eup %5637  ;;  %v3533_v53 = vadd.f32 %v7422_v9, %v3510_v27 }
 0xa4b   : > { %3578 = vadd.xlane.f32.xlu0 %v3562_v28  ;;  %v5640_v56 = vpop.eup %5639  ;;  %v3570_v17 = vmul.f32 %v7435_v18, %v3547_v0  ;;  %v3541_v20 = vmax.f32 %v3525_v45, 0.0  ;;  %v3504_v1 = vmul.f32 %v7416_v34, %v3481_v42  ;;  %v3489_v37 = vmul.f32 %v5636_v32, %v7362_v14 }
 0xa4c   : > { %v5642_v25 = vpop.eup %5641  ;;  %v3550_v60 = vmax.f32 %v3534_v46, 0.0  ;;  %v3565_v31 = vmul.f32 %v7435_v18, %v3542_v2  ;;  %v3528_v51 = vadd.f32 %v7422_v9, %v3505_v40  ;;  %v3513_v39 = vmul.f32 %v7416_v34, %v3490_v24 }
 0xa4d   : > { %3596 = vadd.xlane.f32.xlu1 %v3571_v6  ;;  %v3484_v16 = vmul.f32 %v5638_v7, %v7325_v8  ;;  %v3549_v44 = vmax.f32 %v3533_v53, 0.0  ;;  %v3564_v30 = vmul.f32 %v7435_v18, %v3541_v20  ;;  %v3527_v26 = vadd.f32 %v7422_v9, %v3504_v1  ;;  %v5644_v59 = vpop.eup %5643  ;;  %v5715_v1 = vld [vmem:[%s5889_s29 + $0x10] sm:$0xff] }
 0xa4e   : > { %v3512_v54 = vmul.f32 %v7416_v34, %v3489_v37  ;;  %v3483_v14 = vmul.f32 %v5642_v25, %v7329_v58  ;;  %v3573_v49 = vmul.f32 %v7435_v18, %v3550_v60  ;;  %v3544_v11 = vmax.f32 %v3528_v51, 0.0  ;;  %v5716_v37 = vld [vmem:[%s5889_s29] sm:$0xff]  ;;  %v5717_v25 = vld [vmem:[%s5889_s29 + $0x18] sm:$0xff]  ;;  %v5718_v60 = vld [vmem:[%s5889_s29 + $0x48] sm:$0xff] }
 0xa4f   : > { %3594 = vadd.xlane.f32.xlu0 %v3570_v17  ;;  %v3536_v57 = vadd.f32 %v7422_v9, %v3513_v39  ;;  %v3507_v22 = vmul.f32 %v7416_v34, %v3484_v16  ;;  %v3492_v8 = vmul.f32 %v5640_v56, %v7369_v15  ;;  %v3572_v23 = vmul.f32 %v7435_v18, %v3549_v44  ;;  %v5721_v51 = vld [vmem:[%s5889_s29 + $0x28] sm:$0xff]  ;;  %v5722_v39 = vld [vmem:[%s5889_s29 + $0x60] sm:$0xff]  ;;  %v5723_v16 = vld [vmem:[%s5889_s29 + $0x30] sm:$0xff] }
 0xa50   : > { %v3543_v63 = vmax.f32 %v3527_v26, 0.0  ;;  %v3535_v47 = vadd.f32 %v7422_v9, %v3512_v54  ;;  %v3506_v4 = vmul.f32 %v7416_v34, %v3483_v14  ;;  %v3491_v58 = vmul.f32 %v5644_v59, %v7373_v48  ;;  %v5724_v44 = vld [vmem:[%s5889_s29 + $0x78] sm:$0xff]  ;;  %v5726_v54 = vld [vmem:[%s5889_s29 + $0x40] sm:$0xff]  ;;  %v5727_v14 = vld [vmem:[%s5889_s29 + $0x50] sm:$0xff] }
 0xa51   : > { %3584 = vadd.xlane.f32.xlu1 %v3565_v31  ;;  %v3567_v27 = vmul.f32 %v7435_v18, %v3544_v11  ;;  %v3552_v28 = vmax.f32 %v3536_v57, 0.0  ;;  %v3530_v0 = vadd.f32 %v7422_v9, %v3507_v22  ;;  %v3515_v45 = vmul.f32 %v7416_v34, %v3492_v8  ;;  %v5719_v31 = vld [vmem:[%s5889_s29 + $0x20] sm:$0xff]  ;;  %v5728_v59 = vld [vmem:[%s5889_s29 + $0x68] sm:$0xff] }
 0xa52   : > { %v3566_v15 = vmul.f32 %v7435_v18, %v3543_v63  ;;  %v3551_v62 = vmax.f32 %v3535_v47, 0.0  ;;  %v3529_v32 = vadd.f32 %v7422_v9, %v3506_v4  ;;  %v3514_v46 = vmul.f32 %v7416_v34, %v3491_v58  ;;  %v4795_v11 = vld [vmem:[#allocation2] ss:$0 sm:$0xff] }
 0xa53   : > { %3582 = vadd.xlane.f32.xlu0 %v3564_v30  ;;  %v3575_v42 = vmul.f32 %v7435_v18, %v3552_v28  ;;  %v3546_v48 = vmax.f32 %v3530_v0, 0.0  ;;  %v3538_v6 = vadd.f32 %v7422_v9, %v3515_v45  ;;  %v5725_v30 = vld [vmem:[%s5889_s29 + $0x38] sm:$0xff]  ;;  %v7918_v26 = vmov 0  }
 0xa54   : > { %v3574_v2 = vmul.f32 %v7435_v18, %v3551_v62  ;;  %v3545_v40 = vmax.f32 %v3529_v32, 0.0  ;;  %v3537_v24 = vadd.f32 %v7422_v9, %v3514_v46  ;;  %v5714_v9 = vld [vmem:[%s5889_s29 + $0x8] sm:$0xff] }
 0xa55   : > { %3600 = vadd.xlane.f32.xlu1 %v3573_v49  ;;  %v3569_v7 = vmul.f32 %v7435_v18, %v3546_v48  ;;  %v3554_v34 = vmax.f32 %v3538_v6, 0.0  ;;  %v5729_v49 = vld [vmem:[%s5889_s29 + $0x70] sm:$0xff] }
 0xa56   : > { %v3568_v53 = vmul.f32 %v7435_v18, %v3545_v40  ;;  %v3553_v56 = vmax.f32 %v3537_v24, 0.0 }
 0xa57   : > { %3598 = vadd.xlane.f32.xlu0 %v3572_v23  ;;  %v3577_v17 = vmul.f32 %v7435_v18, %v3554_v34 }
 0xa58   : > { %v3576_v20 = vmul.f32 %v7435_v18, %v3553_v56  ;;  %v5720_v18 = vld [vmem:[%s5889_s29 + $0x58] sm:$0xff] }
 0xa59   : > { %3588 = vadd.xlane.f32.xlu1 %v3567_v27 }
 0xa5b   : > { %3586 = vadd.xlane.f32.xlu0 %v3566_v15 }
 0xa5d   : > { %3604 = vadd.xlane.f32.xlu1 %v3575_v42 }
 0xa5f   : > { %3602 = vadd.xlane.f32.xlu0 %v3574_v2 }
 0xa61   : > { %3592 = vadd.xlane.f32.xlu1 %v3569_v7 }
 0xa63   : > { %3590 = vadd.xlane.f32.xlu0 %v3568_v53 }
 0xa65   : > { %3608 = vadd.xlane.f32.xlu1 %v3577_v17 }
 0xa67   : > { %3606 = vadd.xlane.f32.xlu0 %v3576_v20 }
 0xa76   : > { %3692 = vperm.xlu1 %5426, %v5714_v9  }
 0xa7a   : > { %3695 = vperm.xlu1 %5426, %v5715_v1  }
 0xa7d   : > { %3689 = vperm.xlu0 %5425, %v5716_v37  }
 0xa7e   : > { %3698 = vperm.xlu1 %5426, %v5717_v25  }
 0xa81   : > { %3716 = vperm.xlu0 %5425, %v5718_v60  }
 0xa82   : > { %3701 = vperm.xlu1 %5426, %v5719_v31  }
 0xa85   : > { %3722 = vperm.xlu0 %5425, %v5720_v18  }
 0xa86   : > { %3704 = vperm.xlu1 %5426, %v5721_v51  }
 0xa89   : > { %3725 = vperm.xlu0 %5425, %v5722_v39  }
 0xa8a   : > { %3707 = vperm.xlu1 %5426, %v5723_v16  }
 0xa8d   : > { %3734 = vperm.xlu0 %5425, %v5724_v44  }
 0xa8e   : > { %3710 = vperm.xlu1 %5426, %v5725_v30  }
 0xa91   : > { %5427 = vset.pattern.permute.xlu0 %v7918_v26 }
 0xa92   : > { %3713 = vperm.xlu1 %5426, %v5726_v54  }
 0xa96   : > { %3719 = vperm.xlu1 %5426, %v5727_v14  }
 0xa9a   : > { %3728 = vperm.xlu1 %5426, %v5728_v59  }
 0xa9e   : > { %3731 = vperm.xlu1 %5426, %v5729_v49  }
 0xaa2   : > { %5428 = vset.pattern.permute.xlu1 %v7918_v26 }
 0xad6   : > { %v3581_v57 = vpop.xlane.xlu1 %3580 }
 0xad7   : > { %v7510_v22 = vadd.f32 %v4795_v11, %v3581_v57 }
 0xad8   : > { %v3579_v8 = vpop.xlane.xlu0 %3578 }
 0xad9   : > { %v7512_v23 = vadd.f32 %v4795_v11, %v3579_v8  ;;  %3807 = vperm.xlu0 %5427, %v7510_v22  }
 0xada   : > { %v3597_v63 = vpop.xlane.xlu1 %3596 }
 0xadb   : > { %v7515_v47 = vadd.f32 %v4795_v11, %v3597_v63  ;;  %3802 = vperm.xlu1 %5428, %v7512_v23  }
 0xadc   : > { %v3595_v4 = vpop.xlane.xlu0 %3594 }
 0xadd   : > { %v7518_v58 = vadd.f32 %v4795_v11, %v3595_v4  ;;  %3847 = vperm.xlu0 %5427, %v7515_v47  }
 0xade   : > { %v3585_v27 = vpop.xlane.xlu1 %3584 }
 0xadf   : > { %v7521_v28 = vadd.f32 %v4795_v11, %v3585_v27  ;;  %3842 = vperm.xlu1 %5428, %v7518_v58  }
 0xae0   : > { %v3583_v0 = vpop.xlane.xlu0 %3582 }
 0xae1   : > { %v7528_v42 = vadd.f32 %v4795_v11, %v3583_v0 }
 0xae2   : > { %v3601_v45 = vpop.xlane.xlu1 %3600 }
 0xae3   : > { %v7524_v15 = vadd.f32 %v4795_v11, %v3601_v45  ;;  %3817 = vperm.xlu1 %5428, %v7521_v28  }
 0xae4   : > { %v3599_v62 = vpop.xlane.xlu0 %3598 }
 0xae5   : > { %v7534_v2 = vadd.f32 %v4795_v11, %v3599_v62 }
 0xae6   : > { %v3589_v32 = vpop.xlane.xlu1 %3588 }
 0xae7   : > { %3857 = vperm.xlu1 %5428, %v7524_v15   ;;  %v7540_v34 = vadd.f32 %v4795_v11, %v3589_v32 }
 0xae8   : > { %v3587_v46 = vpop.xlane.xlu0 %3586 }
 0xae9   : > { %v7530_v48 = vadd.f32 %v4795_v11, %v3587_v46 }
 0xaea   : > { %v3605_v24 = vpop.xlane.xlu1 %3604 }
 0xaeb   : > { %3812 = vperm.xlu1 %5428, %v7528_v42   ;;  %3822 = vperm.xlu0 %5427, %v7530_v48   ;;  %v7546_v20 = vadd.f32 %v4795_v11, %v3605_v24 }
 0xaec   : > { %v3603_v6 = vpop.xlane.xlu0 %3602 }
 0xaed   : > { %v7536_v40 = vadd.f32 %v4795_v11, %v3603_v6  ;;  %v7919_v6 = vmov 0.0  }
 0xaee   : > { %v3593_v56 = vpop.xlane.xlu1 %3592 }
 0xaef   : > { %3852 = vperm.xlu1 %5428, %v7534_v2   ;;  %3862 = vperm.xlu0 %5427, %v7536_v40   ;;  %v7552_v1 = vadd.f32 %v4795_v11, %v3593_v56 }
 0xaf0   : > { %v3591_v7 = vpop.xlane.xlu0 %3590 }
 0xaf1   : > { %v7542_v53 = vadd.f32 %v4795_v11, %v3591_v7 }
 0xaf2   : > { %v3609_v37 = vpop.xlane.xlu1 %3608 }
 0xaf3   : > { %3827 = vperm.xlu1 %5428, %v7540_v34   ;;  %3832 = vperm.xlu0 %5427, %v7542_v53   ;;  %v7555_v25 = vadd.f32 %v4795_v11, %v3609_v37 }
 0xaf4   : > { %v3607_v17 = vpop.xlane.xlu0 %3606 }
 0xaf5   : > { %v7548_v9 = vadd.f32 %v4795_v11, %v3607_v17 }
 0xaf6   : > { %v3693_v60 = vpop.permute.xlu1 %3692 }
 0xaf7   : > { %3867 = vperm.xlu1 %5428, %v7546_v20   ;;  %3872 = vperm.xlu0 %5427, %v7548_v9   ;;  %vm3737_vm3 = vcmp.eq.s32.totalorder %v5989_v19, %v3693_v60 }
 0xaf8   : > { %v7573_v24 = vsel %vm3737_vm3, 1.0, %v7919_v6 }
 0xaf9   : > { %vm3785_vm2 = vcmp.gt.f32.partialorder %v7573_v24, 0.0 }
 0xafa   : > { %v3696_v31 = vpop.permute.xlu1 %3695 }
 0xafb   : > { %3837 = vperm.xlu1 %5428, %v7552_v1   ;;  %vm3738_vm7 = vcmp.eq.s32.totalorder %v5989_v19, %v3696_v31 }
 0xafc   : > { %v3690_v30 = vpop.permute.xlu0 %3689  ;;  %v7576_v7 = vsel %vm3738_vm7, 1.0, %v7919_v6 }
 0xafd   : > { %vm3736_vm14 = vcmp.eq.s32.totalorder %v5989_v19, %v3690_v30  ;;  %vm3786_vm4 = vcmp.gt.f32.partialorder %v7576_v7, 0.0 }
 0xafe   : > { %v3699_v18 = vpop.permute.xlu1 %3698  ;;  %v7588_v31 = vsel %vm3736_vm14, 1.0, %v7919_v6 }
 0xaff   : > { %3877 = vperm.xlu1 %5428, %v7555_v25   ;;  %vm3739_vm11 = vcmp.eq.s32.totalorder %v5989_v19, %v3699_v18  ;;  %vm3784_vm8 = vcmp.gt.f32.partialorder %v7588_v31, 0.0 }
 0xb00   : > { %v3717_v54 = vpop.permute.xlu0 %3716  ;;  %v7582_v37 = vsel %vm3739_vm11, 1.0, %v7919_v6 }
 0xb01   : > { %vm3745_vm13 = vcmp.eq.s32.totalorder %v5989_v19, %v3717_v54  ;;  %vm3787_vm10 = vcmp.gt.f32.partialorder %v7582_v37, 0.0 }
 0xb02   : > { %v3702_v51 = vpop.permute.xlu1 %3701  ;;  %v7591_v18 = vsel %vm3745_vm13, 1.0, %v7919_v6 }
 0xb03   : > { %vm3740_vm15 = vcmp.eq.s32.totalorder %v5989_v19, %v3702_v51  ;;  %vm3793_vm9 = vcmp.gt.f32.partialorder %v7591_v18, 0.0 }
 0xb04   : > { %v3723_v59 = vpop.permute.xlu0 %3722  ;;  %v7594_v51 = vsel %vm3740_vm15, 1.0, %v7919_v6 }
 0xb05   : > { %vm3747_vm1 = vcmp.eq.s32.totalorder %v5989_v19, %v3723_v59 }
 0xb06   : > { %v3705_v39 = vpop.permute.xlu1 %3704 }
 0xb07   : > { %vm3741_vm12 = vcmp.eq.s32.totalorder %v5989_v19, %v3705_v39 }
 0xb08   : > { %v3726_v57 = vpop.permute.xlu0 %3725  ;;  %v7585_v60 = vsel %vm3741_vm12, 1.0, %v7919_v6  ;;  %vm3788_vm12 = vcmp.gt.f32.partialorder %v7594_v51, 0.0 }
 0xb09   : > { %vm3748_vm6 = vcmp.eq.s32.totalorder %v5989_v19, %v3726_v57  ;;  %vm3789_vm3 = vcmp.gt.f32.partialorder %v7585_v60, 0.0 }
 0xb0a   : > { %v3708_v16 = vpop.permute.xlu1 %3707  ;;  %v7618_v57 = vsel %vm3748_vm6, 1.0, %v7919_v6 }
 0xb0b   : > { %vm3742_vm0 = vcmp.eq.s32.totalorder %v5989_v19, %v3708_v16  ;;  %v7603_v16 = vsel %vm3747_vm1, 1.0, %v7919_v6 }
 0xb0c   : > { %v3735_v11 = vpop.permute.xlu0 %3734  ;;  %v7599_v39 = vsel %vm3742_vm0, 1.0, %v7919_v6  ;;  %vm3795_vm13 = vcmp.gt.f32.partialorder %v7603_v16, 0.0 }
 0xb0d   : > { %vm3790_vm15 = vcmp.gt.f32.partialorder %v7599_v39, 0.0  ;;  %vm3751_vm0 = vcmp.eq.s32.totalorder %v5989_v19, %v3735_v11 }
 0xb0e   : > { %v3711_v44 = vpop.permute.xlu1 %3710 }
 0xb0f   : > { %vm3743_vm5 = vcmp.eq.s32.totalorder %v5989_v19, %v3711_v44 }
 0xb10   : > { %v7614_v59 = vsel %vm3743_vm5, 1.0, %v7919_v6 }
 0xb11   : > { %vm3791_vm5 = vcmp.gt.f32.partialorder %v7614_v59, 0.0 }
 0xb12   : > { %v3714_v26 = vpop.permute.xlu1 %3713 }
 0xb13   : > { %vm3744_vm7 = vcmp.eq.s32.totalorder %v5989_v19, %v3714_v26 }
 0xb16   : > { %v3720_v14 = vpop.permute.xlu1 %3719 }
 0xb17   : > { %vm3746_vm11 = vcmp.eq.s32.totalorder %v5989_v19, %v3720_v14 }
 0xb18   : > { %v7629_v29 = vsel %vm3746_vm11, 1.0, %v7919_v6 }
 0xb1a   : > { %v3729_v49 = vpop.permute.xlu1 %3728 }
 0xb1b   : > { %vm3749_vm14 = vcmp.eq.s32.totalorder %v5989_v19, %v3729_v49 }
 0xb1c   : > { %v7634_v13 = vsel %vm3749_vm14, 1.0, %v7919_v6 }
 0xb1e   : > { %v7558_v8 = vpop.permute.xlu1 %3731 }
 0xb1f   : > { %vm3750_vm1 = vcmp.eq.s32.totalorder %v5989_v19, %v7558_v8 }
 0xb20   : > { %v7646_v19 = vsel %vm3750_vm1, 1.0, %v7919_v6 }
 0xb58   : > { %v3808_v27 = vpop.permute.xlu0 %3807 }
 0xb59   : > { %v3881_v26 = vsel %vm3785_vm2, %v3808_v27, -1e+30  ;;  %vm3796_vm2 = vcmp.gt.f32.partialorder %v7618_v57, 0.0 }
 0xb5a   : > { %v3803_v63 = vpop.permute.xlu1 %3802 }
 0xb5b   : > { %v3880_v11 = vsel %vm3784_vm8, %v3803_v63, -1e+30  ;;  %vm3794_vm8 = vcmp.gt.f32.partialorder %v7629_v29, 0.0 }
 0xb5c   : > { %v3848_v45 = vpop.permute.xlu0 %3847 }
 0xb5d   : > { %v3889_v8 = vsel %vm3793_vm9, %v3848_v45, -1e+30  ;;  %vm3798_vm9 = vcmp.gt.f32.partialorder %v7646_v19, 0.0 }
 0xb5e   : > { %v7560_v4 = vpop.permute.xlu1 %3842 }
 0xb62   : > { %v7562_v0 = vpop.permute.xlu1 %3817 }
 0xb66   : > { %v7564_v62 = vpop.permute.xlu1 %3857 }
 0xb6a   : > { %v3813_v32 = vpop.permute.xlu1 %3812  ;;  %v3823_v46 = vpop.permute.xlu0 %3822 }
 0xb6b   : > { %v3884_v14 = vsel %vm3788_vm12, %v3823_v46, -1e+30  ;;  %v3882_v27 = vsel %vm3786_vm4, %v3813_v32, -1e+30  ;;  %v7642_v46 = vsel %vm3751_vm0, 1.0, %v7919_v6  ;;  %vm3797_vm4 = vcmp.gt.f32.partialorder %v7634_v13, 0.0 }
 0xb6c   : > { %v3883_v32 = vsel %vm3787_vm10, %v7562_v0, -1e+30  ;;  %vm3799_vm10 = vcmp.gt.f32.partialorder %v7642_v46, 0.0 }
 0xb6e   : > { %v3853_v56 = vpop.permute.xlu1 %3852  ;;  %v3863_v17 = vpop.permute.xlu0 %3862 }
 0xb6f   : > { %v3892_v0 = vsel %vm3796_vm2, %v3863_v17, -1e+30 }
 0xb72   : > { %v3828_v30 = vpop.permute.xlu1 %3827  ;;  %v3833_v54 = vpop.permute.xlu0 %3832 }
 0xb73   : > { %v3885_v44 = vsel %vm3789_vm3, %v3828_v30, -1e+30  ;;  %v3886_v36 = vsel %vm3790_vm15, %v3833_v54, -1e+30  ;;  %v7626_v30 = vsel %vm3744_vm7, 1.0, %v7919_v6  ;;  %v3896_v54 = vmax.f32 %v3880_v11, %v3884_v14 }
 0xb74   : > { %v3897_v49 = vmax.f32 %v3881_v26, %v3885_v44  ;;  %v3898_v33 = vmax.f32 %v3882_v27, %v3886_v36  ;;  %vm3792_vm6 = vcmp.gt.f32.partialorder %v7626_v30, 0.0  ;;  %v3890_v6 = vsel %vm3794_vm8, %v3853_v56, -1e+30 }
 0xb75   : > { %v3888_v63 = vsel %vm3792_vm6, %v7560_v4, -1e+30  ;;  %v3891_v4 = vsel %vm3795_vm13, %v7564_v62, -1e+30 }
 0xb76   : > { %v3868_v55 = vpop.permute.xlu1 %3867  ;;  %v3901_v36 = vmax.f32 %v3897_v49, %v3889_v8  ;;  %v3873_v44 = vpop.permute.xlu0 %3872  ;;  %v3900_v27 = vmax.f32 %v3896_v54, %v3888_v63  ;;  %v3902_v45 = vmax.f32 %v3898_v33, %v3890_v6 }
 0xb77   : > { %v3893_v14 = vsel %vm3797_vm4, %v3868_v55, -1e+30  ;;  %v3894_v12 = vsel %vm3798_vm9, %v3873_v44, -1e+30 }
 0xb78   : > { %v3905_v10 = vmax.f32 %v3901_v36, %v3893_v14  ;;  %v3904_v8 = vmax.f32 %v3900_v27, %v3892_v0  ;;  %v3906_v54 = vmax.f32 %v3902_v45, %v3894_v12 }
 0xb7a   : > { %v3838_v26 = vpop.permute.xlu1 %3837 }
 0xb7b   : > { %v3887_v11 = vsel %vm3791_vm5, %v3838_v26, -1e+30  ;;  %v3908_v26 = vmax.f32 %v3904_v8, %v3905_v10 }
 0xb7c   : > { %v3899_v5 = vmax.f32 %v3883_v32, %v3887_v11 }
 0xb7e   : > { %v3878_v49 = vpop.permute.xlu1 %3877  ;;  %v3903_v56 = vmax.f32 %v3899_v5, %v3891_v4 }
 0xb7f   : > { %v3895_v55 = vsel %vm3799_vm10, %v3878_v49, -1e+30 }
 0xb80   : > { %v3907_v63 = vmax.f32 %v3903_v56, %v3895_v55 }
 0xb82   : > { %v3909_v33 = vmax.f32 %v3906_v54, %v3907_v63 }
 0xb84   : > { %v3910_v32 = vmax.f32 %v3908_v26, %v3909_v33 }
 0xb86   : > { %v3911_v6 = vrot.slane %v3910_v32, 4 }
 0xb88   : > { %v3912_v11 = vmax.f32 %v3910_v32, %v3911_v6 }
 0xb8a   : > { %v3913_v3 = vrot.slane %v3912_v11, 2 }
 0xb8c   : > { %v3914_v62 = vmax.f32 %v3912_v11, %v3913_v3 }
 0xb8e   : > { %v3915_v61 = vrot.slane %v3914_v62, 1 }
 0xb90   : > { %v3916_v41 = vmax.f32 %v3914_v62, %v3915_v61 }
 0xb92   : > { %v3918_v17 = vmul.f32 %v7573_v24, %v3916_v41  ;;  %v3917_v36 = vmul.f32 %v7588_v31, %v3916_v41  ;;  %v3921_v5 = vmul.f32 %v7594_v51, %v3916_v41  ;;  %v3919_v12 = vmul.f32 %v7576_v7, %v3916_v41 }
 0xb93   : > { %v3923_v10 = vmul.f32 %v7599_v39, %v3916_v41  ;;  %v3920_v44 = vmul.f32 %v7582_v37, %v3916_v41  ;;  %v3925_v61 = vmul.f32 %v7626_v30, %v3916_v41  ;;  %v3922_v3 = vmul.f32 %v7585_v60, %v3916_v41 }
 0xb94   : > { %3935 = vadd.xlane.f32.xlu1 %v3918_v17  ;;  %3933 = vadd.xlane.f32.xlu0 %v3917_v36  ;;  %v3927_v14 = vmul.f32 %v7629_v29, %v3916_v41  ;;  %v3924_v27 = vmul.f32 %v7614_v59, %v3916_v41  ;;  %v3929_v45 = vmul.f32 %v7618_v57, %v3916_v41 }
 0xb95   : > { %v3926_v4 = vmul.f32 %v7591_v18, %v3916_v41  ;;  %v3931_v0 = vmul.f32 %v7646_v19, %v3916_v41  ;;  %v3928_v49 = vmul.f32 %v7603_v16, %v3916_v41  ;;  %v3930_v56 = vmul.f32 %v7634_v13, %v3916_v41 }
 0xb96   : > { %v3932_v55 = vmul.f32 %v7642_v46, %v3916_v41 }
 0xb98   : > { %3941 = vadd.xlane.f32.xlu1 %v3921_v5  ;;  %3937 = vadd.xlane.f32.xlu0 %v3919_v12 }
 0xb9c   : > { %3945 = vadd.xlane.f32.xlu1 %v3923_v10  ;;  %3939 = vadd.xlane.f32.xlu0 %v3920_v44 }
 0xba0   : > { %3949 = vadd.xlane.f32.xlu1 %v3925_v61  ;;  %3943 = vadd.xlane.f32.xlu0 %v3922_v3 }
 0xba4   : > { %3953 = vadd.xlane.f32.xlu1 %v3927_v14  ;;  %3947 = vadd.xlane.f32.xlu0 %v3924_v27 }
 0xba8   : > { %3957 = vadd.xlane.f32.xlu1 %v3929_v45  ;;  %3951 = vadd.xlane.f32.xlu0 %v3926_v4 }
 0xbac   : > { %3961 = vadd.xlane.f32.xlu1 %v3931_v0  ;;  %3955 = vadd.xlane.f32.xlu0 %v3928_v49 }
 0xbb0   : > { %3959 = vadd.xlane.f32.xlu0 %v3930_v56 }
 0xbb4   : > { %3963 = vadd.xlane.f32.xlu0 %v3932_v55 }
 0xc21   : > { %v3936_v8 = vpop.xlane.xlu1 %3935  ;;  %v3934_v54 = vpop.xlane.xlu0 %3933 }
 0xc22   : > { %v3966_v63 = vsub.f32 %v7510_v22, %v3936_v8  ;;  %v3965_v26 = vsub.f32 %v7512_v23, %v3934_v54 }
 0xc24   : > { %v3983_v33 = vmul.f32 1.442695, %v3966_v63  ;;  %v3981_v32 = vmul.f32 1.442695, %v3965_v26 }
 0xc25   : > { %v3942_v6 = vpop.xlane.xlu1 %3941  ;;  %v3938_v11 = vpop.xlane.xlu0 %3937 }
 0xc26   : > { %5645 = vpow2.f32 %v3983_v33  ;;  %v3969_v62 = vsub.f32 %v7530_v48, %v3942_v6  ;;  %v3967_v17 = vsub.f32 %v7528_v42, %v3938_v11 }
 0xc27   : > { %5647 = vpow2.f32 %v3981_v32 }
 0xc28   : > { %v3989_v36 = vmul.f32 1.442695, %v3969_v62  ;;  %v3985_v5 = vmul.f32 1.442695, %v3967_v17 }
 0xc29   : > { %v3946_v41 = vpop.xlane.xlu1 %3945  ;;  %v3940_v12 = vpop.xlane.xlu0 %3939 }
 0xc2a   : > { %5649 = vpow2.f32 %v3989_v36  ;;  %v3971_v10 = vsub.f32 %v7542_v53, %v3946_v41  ;;  %v3968_v22 = vsub.f32 %v7521_v28, %v3940_v12 }
 0xc2b   : > { %5651 = vpow2.f32 %v3985_v5 }
 0xc2c   : > { %v3993_v23 = vmul.f32 1.442695, %v3971_v10  ;;  %v3987_v44 = vmul.f32 1.442695, %v3968_v22 }
 0xc2d   : > { %v3950_v61 = vpop.xlane.xlu1 %3949  ;;  %v3944_v3 = vpop.xlane.xlu0 %3943 }
 0xc2e   : > { %5653 = vpow2.f32 %v3993_v23  ;;  %v3973_v48 = vsub.f32 %v7518_v58, %v3950_v61  ;;  %v3970_v42 = vsub.f32 %v7540_v34, %v3944_v3 }
 0xc2f   : > { %5655 = vpow2.f32 %v3987_v44 }
 0xc30   : > { %v7688_v14 = vpop.eup %5645  ;;  %v3997_v27 = vmul.f32 1.442695, %v3973_v48  ;;  %v3991_v45 = vmul.f32 1.442695, %v3970_v42 }
 0xc31   : > { %v7690_v4 = vpop.eup %5647  ;;  %v3954_v53 = vpop.xlane.xlu1 %3953  ;;  %4020 = vperm.xlu0 %5427, %v7688_v14  }
 0xc32   : > { %v3948_v28 = vpop.xlane.xlu0 %3947  ;;  %5657 = vpow2.f32 %v3997_v27  ;;  %v3975_v0 = vsub.f32 %v7534_v2, %v3954_v53  ;;  %4015 = vperm.xlu1 %5428, %v7690_v4   ;;  %v5730_v27 = vld [vmem:[%s7849_s13] ss:$0 sm:$0xff] }
 0xc33   : > { %v3972_v58 = vsub.f32 %v7552_v1, %v3948_v28  ;;  %5659 = vpow2.f32 %v3991_v45  ;;  %v3641_v45 = vmul.f32 %v5730_v27, %v7075_v52  ;;  %v3642_v53 = vmul.f32 %v5730_v27, %v7068_v38 }
 0xc34   : > { %v7696_v34 = vpop.eup %5649  ;;  %v4001_v49 = vmul.f32 1.442695, %v3975_v0  ;;  %v3643_v28 = vmul.f32 %v5730_v27, %v7073_v43  ;;  %v3644_v0 = vmul.f32 %v5730_v27, %v7084_v35 }
 0xc35   : > { %v3995_v56 = vmul.f32 1.442695, %v3972_v58  ;;  %v7698_v55 = vpop.eup %5651  ;;  %v3958_v8 = vpop.xlane.xlu1 %3957  ;;  %4035 = vperm.xlu0 %5427, %v7696_v34   ;;  %v3640_v58 = vmul.f32 %v5730_v27, %v7071_v50 }
 0xc36   : > { %v3952_v54 = vpop.xlane.xlu0 %3951  ;;  %5661 = vpow2.f32 %v4001_v49  ;;  %v3977_v63 = vsub.f32 %v7536_v40, %v3958_v8  ;;  %4025 = vperm.xlu1 %5428, %v7698_v55  }
 0xc37   : > { %v3974_v2 = vsub.f32 %v7515_v47, %v3952_v54  ;;  %5663 = vpow2.f32 %v3995_v56 }
 0xc38   : > { %v7704_v1 = vpop.eup %5653  ;;  %v4005_v26 = vmul.f32 1.442695, %v3977_v63 }
 0xc39   : > { %v3999_v33 = vmul.f32 1.442695, %v3974_v2  ;;  %v7706_v32 = vpop.eup %5655  ;;  %v3962_v6 = vpop.xlane.xlu1 %3961  ;;  %4045 = vperm.xlu0 %5427, %v7704_v1  }
 0xc3a   : > { %v3956_v11 = vpop.xlane.xlu0 %3955  ;;  %5665 = vpow2.f32 %v4005_v26  ;;  %v3979_v62 = vsub.f32 %v7548_v9, %v3962_v6  ;;  %4030 = vperm.xlu1 %5428, %v7706_v32  }
 0xc3b   : > { %v3976_v40 = vsub.f32 %v7524_v15, %v3956_v11  ;;  %5667 = vpow2.f32 %v3999_v33 }
 0xc3c   : > { %v7712_v47 = vpop.eup %5657  ;;  %v4009_v17 = vmul.f32 1.442695, %v3979_v62 }
 0xc3d   : > { %v4003_v36 = vmul.f32 1.442695, %v3976_v40  ;;  %v7714_v5 = vpop.eup %5659  ;;  %4055 = vperm.xlu0 %5427, %v7712_v47  }
 0xc3e   : > { %v3960_v41 = vpop.xlane.xlu0 %3959  ;;  %5669 = vpow2.f32 %v4009_v17  ;;  %4040 = vperm.xlu1 %5428, %v7714_v5  }
 0xc3f   : > { %v3978_v12 = vsub.f32 %v7546_v20, %v3960_v41  ;;  %5671 = vpow2.f32 %v4003_v36 }
 0xc40   : > { %v7719_v9 = vpop.eup %5661 }
 0xc41   : > { %v4007_v10 = vmul.f32 1.442695, %v3978_v12  ;;  %v7721_v15 = vpop.eup %5663  ;;  %4065 = vperm.xlu0 %5427, %v7719_v9  }
 0xc42   : > { %v3964_v22 = vpop.xlane.xlu0 %3963  ;;  %4050 = vperm.xlu1 %5428, %v7721_v15  }
 0xc43   : > { %5673 = vpow2.f32 %v4007_v10  ;;  %v3980_v23 = vsub.f32 %v7555_v25, %v3964_v22 }
 0xc44   : > { %v7726_v44 = vpop.eup %5665 }
 0xc45   : > { %v4011_v61 = vmul.f32 1.442695, %v3980_v23  ;;  %v7728_v3 = vpop.eup %5667  ;;  %4075 = vperm.xlu0 %5427, %v7726_v44  }
 0xc46   : > { %4060 = vperm.xlu1 %5428, %v7728_v3  }
 0xc47   : > { %5675 = vpow2.f32 %v4011_v61 }
 0xc48   : > { %v7732_v20 = vpop.eup %5669 }
 0xc49   : > { %v7734_v48 = vpop.eup %5671  ;;  %4085 = vperm.xlu0 %5427, %v7732_v20  }
 0xc4a   : > { %4070 = vperm.xlu1 %5428, %v7734_v48  }
 0xc4d   : > { %v7738_v42 = vpop.eup %5673 }
 0xc4e   : > { %4080 = vperm.xlu1 %5428, %v7738_v42  }
 0xc51   : > { %v7741_v25 = vpop.eup %5675 }
 0xc52   : > { %4090 = vperm.xlu1 %5428, %v7741_v25  }
 0xc68   : > { %3658 = vadd.xlane.f32.xlu0 %v3641_v45 }
 0xc6c   : > { %3660 = vadd.xlane.f32.xlu0 %v3642_v53 }
 0xc70   : > { %3662 = vadd.xlane.f32.xlu0 %v3643_v28 }
 0xc74   : > { %3664 = vadd.xlane.f32.xlu0 %v3644_v0 }
 0xc76   : > { %3656 = vadd.xlane.f32.xlu1 %v3640_v58 }
 0xcb0   : > { %v4021_v49 = vpop.permute.xlu0 %4020 }
 0xcb1   : > { %v4016_v56 = vpop.permute.xlu1 %4015  ;;  %v4094_v54 = vmul.f32 %v7573_v24, %v4021_v49 }
 0xcb2   : > { %v4093_v8 = vmul.f32 %v7588_v31, %v4016_v56 }
 0xcb4   : > { %v4036_v52 = vpop.permute.xlu0 %4035  ;;  %v4109_v2 = vadd.f32 %v4094_v54, %v4093_v8 }
 0xcb5   : > { %v4026_v63 = vpop.permute.xlu1 %4025  ;;  %v4097_v6 = vmul.f32 %v7594_v51, %v4036_v52 }
 0xcb6   : > { %v4095_v38 = vmul.f32 %v7576_v7, %v4026_v63 }
 0xcb8   : > { %v4046_v26 = vpop.permute.xlu0 %4045  ;;  %v4110_v33 = vadd.f32 %v4109_v2, %v4095_v38 }
 0xcb9   : > { %v4031_v43 = vpop.permute.xlu1 %4030  ;;  %v4099_v36 = vmul.f32 %v7599_v39, %v4046_v26 }
 0xcba   : > { %v4096_v35 = vmul.f32 %v7582_v37, %v4031_v43 }
 0xcbc   : > { %v4111_v50 = vadd.f32 %v4110_v33, %v4096_v35  ;;  %v4056_v11 = vpop.permute.xlu0 %4055 }
 0xcbd   : > { %v4041_v62 = vpop.permute.xlu1 %4040  ;;  %v4101_v61 = vmul.f32 %v7626_v30, %v4056_v11 }
 0xcbe   : > { %v4098_v40 = vmul.f32 %v7585_v60, %v4041_v62  ;;  %v4112_v17 = vadd.f32 %v4111_v50, %v4097_v6 }
 0xcc0   : > { %v4113_v41 = vadd.f32 %v4112_v17, %v4098_v40  ;;  %v4066_v10 = vpop.permute.xlu0 %4065 }
 0xcc1   : > { %v4051_v12 = vpop.permute.xlu1 %4050  ;;  %v4103_v58 = vmul.f32 %v7629_v29, %v4066_v10 }
 0xcc2   : > { %v4100_v22 = vmul.f32 %v7614_v59, %v4051_v12  ;;  %v4114_v23 = vadd.f32 %v4113_v41, %v4099_v36 }
 0xcc4   : > { %v4115_v27 = vadd.f32 %v4114_v23, %v4100_v22  ;;  %v4076_v0 = vpop.permute.xlu0 %4075 }
 0xcc5   : > { %v4061_v45 = vpop.permute.xlu1 %4060  ;;  %v4105_v52 = vmul.f32 %v7618_v57, %v4076_v0 }
 0xcc6   : > { %v4102_v53 = vmul.f32 %v7591_v18, %v4061_v45  ;;  %v4116_v28 = vadd.f32 %v4115_v27, %v4101_v61 }
 0xcc8   : > { %v4117_v49 = vadd.f32 %v4116_v28, %v4102_v53  ;;  %v4086_v38 = vpop.permute.xlu0 %4085 }
 0xcc9   : > { %v4071_v56 = vpop.permute.xlu1 %4070  ;;  %v4107_v33 = vmul.f32 %v7646_v19, %v4086_v38 }
 0xcca   : > { %v4104_v8 = vmul.f32 %v7603_v16, %v4071_v56  ;;  %v4118_v54 = vadd.f32 %v4117_v49, %v4103_v58 }
 0xccc   : > { %v4119_v63 = vadd.f32 %v4118_v54, %v4104_v8  ;;  %v7920_v54 = vld [vmem:[#allocation11_spill] sm:$0xff] }
 0xccd   : > { %v4081_v2 = vpop.permute.xlu1 %4080 }
 0xcce   : > { %v4106_v26 = vmul.f32 %v7634_v13, %v4081_v2  ;;  %v4120_v43 = vadd.f32 %v4119_v63, %v4105_v52  ;;  %v7921_v63 = vld [vmem:[#allocation5_spill] sm:$0xff]  ;;  %v7922_v2 = vld [vmem:[#allocation6_spill] sm:$0xff] }
 0xcd0   : > { %v4121_v35 = vadd.f32 %v4120_v43, %v4106_v26  ;;  %v7923_v43 = vld [vmem:[#allocation14_spill] sm:$0xff] }
 0xcd1   : > { %v4091_v6 = vpop.permute.xlu1 %4090 }
 0xcd2   : > { %v4108_v50 = vmul.f32 %v7642_v46, %v4091_v6  ;;  %v4122_v11 = vadd.f32 %v4121_v35, %v4107_v33  ;;  %v7924_v33 = vld [vmem:[#allocation13_spill] sm:$0xff]  ;;  %v7925_v35 = vld [vmem:[#allocation12_spill] sm:$0xff] }
 0xcd3   : > { %v7926_v6 = vld [vmem:[#allocation9_spill] sm:$0xff] }
 0xcd4   : > { %v4123_v62 = vadd.f32 %v4122_v11, %v4108_v50  ;;  %v7927_v50 = vld [vmem:[#allocation8_spill] sm:$0xff]  ;;  %v7928_v11 = vld [vmem:[#allocation15_spill] sm:$0xff] }
 0xcd6   : > { %v4124_v40 = vrot.slane %v4123_v62, 4 }
 0xcd8   : > { %v4125_v17 = vadd.f32 %v4124_v40, %v4123_v62  ;;  %v7929_v62 = vld [vmem:[#allocation7_spill] sm:$0xff] }
 0xcda   : > { %v4126_v36 = vrot.slane %v4125_v17, 2 }
 0xcdc   : > { %v4127_v41 = vadd.f32 %v4126_v36, %v4125_v17 }
 0xcde   : > { %v4128_v12 = vrot.slane %v4127_v41, 1 }
 0xce0   : > { %v4129_v10 = vadd.f32 %v4128_v12, %v4127_v41 }
 0xce2   : > { %v4131_v22 = vmul.f32 %v7573_v24, %v4129_v10  ;;  %v4130_v23 = vmul.f32 %v7588_v31, %v4129_v10  ;;  %v4134_v61 = vmul.f32 %v7594_v51, %v4129_v10  ;;  %v4132_v27 = vmul.f32 %v7576_v7, %v4129_v10 }
 0xce3   : > { %v4136_v45 = vmul.f32 %v7599_v39, %v4129_v10  ;;  %v4133_v53 = vmul.f32 %v7582_v37, %v4129_v10  ;;  %v4138_v28 = vmul.f32 %v7626_v30, %v4129_v10  ;;  %v4135_v0 = vmul.f32 %v7585_v60, %v4129_v10 }
 0xce4   : > { %4148 = vadd.xlane.f32.xlu1 %v4131_v22  ;;  %4146 = vadd.xlane.f32.xlu0 %v4130_v23  ;;  %v4139_v58 = vmul.f32 %v7591_v18, %v4129_v10  ;;  %v4137_v49 = vmul.f32 %v7614_v59, %v4129_v10  ;;  %v4140_v56 = vmul.f32 %v7629_v29, %v4129_v10 }
 0xce5   : > { %v4141_v8 = vmul.f32 %v7603_v16, %v4129_v10  ;;  %v4142_v52 = vmul.f32 %v7618_v57, %v4129_v10  ;;  %v4143_v38 = vmul.f32 %v7634_v13, %v4129_v10  ;;  %v4144_v26 = vmul.f32 %v7646_v19, %v4129_v10 }
 0xce8   : > { %4154 = vadd.xlane.f32.xlu1 %v4134_v61  ;;  %4150 = vadd.xlane.f32.xlu0 %v4132_v27 }
 0xcec   : > { %4158 = vadd.xlane.f32.xlu1 %v4136_v45  ;;  %4152 = vadd.xlane.f32.xlu0 %v4133_v53 }
 0xcf0   : > { %4162 = vadd.xlane.f32.xlu1 %v4138_v28  ;;  %4156 = vadd.xlane.f32.xlu0 %v4135_v0 }
 0xcf4   : > { %4164 = vadd.xlane.f32.xlu1 %v4139_v58  ;;  %4160 = vadd.xlane.f32.xlu0 %v4137_v49 }
 0xcf5   : > { %v3659_v40 = vpop.xlane.xlu0 %3658 }
 0xcf8   : > { %4166 = vadd.xlane.f32.xlu1 %v4140_v56  ;;  %3666 = vadd.xlane.f32.xlu0 %v7091_v21  ;;  %v4145_v21 = vmul.f32 %v7642_v46, %v4129_v10 }
 0xcf9   : > { %v3661_v17 = vpop.xlane.xlu0 %3660 }
 0xcfc   : > { %4168 = vadd.xlane.f32.xlu1 %v4141_v8  ;;  %3668 = vadd.xlane.f32.xlu0 %v7920_v54 }
 0xcfd   : > { %v3663_v36 = vpop.xlane.xlu0 %3662 }
 0xd00   : > { %4170 = vadd.xlane.f32.xlu1 %v4142_v52  ;;  %3670 = vadd.xlane.f32.xlu0 %v7921_v63 }
 0xd01   : > { %v3665_v41 = vpop.xlane.xlu0 %3664 }
 0xd03   : > { %v3657_v12 = vpop.xlane.xlu1 %3656 }
 0xd04   : > { %4172 = vadd.xlane.f32.xlu1 %v4143_v38  ;;  %3672 = vadd.xlane.f32.xlu0 %v7922_v2 }
 0xd08   : > { %4174 = vadd.xlane.f32.xlu1 %v4144_v26  ;;  %3674 = vadd.xlane.f32.xlu0 %v7923_v43 }
 0xd0c   : > { %4176 = vadd.xlane.f32.xlu1 %v4145_v21  ;;  %3678 = vadd.xlane.f32.xlu0 %v7924_v33 }
 0xd10   : > { %3676 = vadd.xlane.f32.xlu1 %v7925_v35  ;;  %3682 = vadd.xlane.f32.xlu0 %v7926_v6 }
 0xd14   : > { %3680 = vadd.xlane.f32.xlu1 %v7927_v50  ;;  %3686 = vadd.xlane.f32.xlu0 %v7928_v11 }
 0xd18   : > { %3684 = vadd.xlane.f32.xlu1 %v7929_v62 }
 0xd71   : > { %v4149_v22 = vpop.xlane.xlu1 %4148  ;;  %v4147_v10 = vpop.xlane.xlu0 %4146 }
 0xd72   : > { %5677 = vrcp.f32 %v4149_v22 }
 0xd73   : > { %5679 = vrcp.f32 %v4147_v10 }
 0xd75   : > { %v4155_v23 = vpop.xlane.xlu1 %4154  ;;  %v4151_v61 = vpop.xlane.xlu0 %4150 }
 0xd76   : > { %5681 = vrcp.f32 %v4155_v23 }
 0xd77   : > { %5683 = vrcp.f32 %v4151_v61 }
 0xd79   : > { %v4159_v27 = vpop.xlane.xlu1 %4158  ;;  %v4153_v45 = vpop.xlane.xlu0 %4152 }
 0xd7a   : > { %5685 = vrcp.f32 %v4159_v27 }
 0xd7b   : > { %5687 = vrcp.f32 %v4153_v45 }
 0xd7c   : > { %v5678_v53 = vpop.eup %5677 }
 0xd7d   : > { %v5680_v28 = vpop.eup %5679  ;;  %v4163_v0 = vpop.xlane.xlu1 %4162  ;;  %v4181_v49 = vmul.f32 %v5678_v53, %v7688_v14 }
 0xd7e   : > { %v4157_v58 = vpop.xlane.xlu0 %4156  ;;  %v4179_v56 = vmul.f32 %v5680_v28, %v7690_v4 }
 0xd7f   : > { %5689 = vrcp.f32 %v4157_v58  ;;  %v4211_v8 = vmul.f32 %v4181_v49, %v3659_v40 }
 0xd80   : > { %v5682_v54 = vpop.eup %5681  ;;  %v4210_v52 = vmul.f32 %v4179_v56, %v3657_v12  ;;  %5691 = vrcp.f32 %v4163_v0 }
 0xd81   : > { %v5684_v63 = vpop.eup %5683  ;;  %v4165_v38 = vpop.xlane.xlu1 %4164  ;;  %4233 = vperm.xlu0 %5427, %v4211_v8   ;;  %v4187_v26 = vmul.f32 %v5682_v54, %v7696_v34 }
 0xd82   : > { %v4161_v2 = vpop.xlane.xlu0 %4160  ;;  %4228 = vperm.xlu1 %5428, %v4210_v52   ;;  %v4183_v43 = vmul.f32 %v5684_v63, %v7698_v55 }
 0xd83   : > { %5693 = vrcp.f32 %v4161_v2  ;;  %v4214_v21 = vmul.f32 %v4187_v26, %v3665_v41 }
 0xd84   : > { %v5686_v33 = vpop.eup %5685  ;;  %v4212_v14 = vmul.f32 %v4183_v43, %v3661_v17  ;;  %5695 = vrcp.f32 %v4165_v38 }
 0xd85   : > { %v5688_v35 = vpop.eup %5687  ;;  %v4167_v4 = vpop.xlane.xlu1 %4166  ;;  %4248 = vperm.xlu0 %5427, %v4214_v21   ;;  %v4191_v62 = vmul.f32 %v5686_v33, %v7704_v1 }
 0xd86   : > { %v3667_v6 = vpop.xlane.xlu0 %3666  ;;  %4238 = vperm.xlu1 %5428, %v4212_v14   ;;  %v4185_v50 = vmul.f32 %v5688_v35, %v7706_v32 }
 0xd88   : > { %v4213_v11 = vmul.f32 %v4185_v50, %v3663_v36 }
 0xd89   : > { %v5690_v34 = vpop.eup %5689  ;;  %v4169_v40 = vpop.xlane.xlu1 %4168 }
 0xd8a   : > { %v3669_v12 = vpop.xlane.xlu0 %3668  ;;  %v4189_v55 = vmul.f32 %v5690_v34, %v7714_v5  ;;  %4243 = vperm.xlu1 %5428, %v4213_v11   ;;  %5697 = vrcp.f32 %v4169_v40  ;;  %v5692_v17 = vpop.eup %5691  ;;  %v4343_v40 = vld [vmem:[#allocation3] sm:$0x1] }
 0xd8b   : > { %v4216_v41 = vmul.f32 %v4191_v62, %v3669_v12  ;;  %5699 = vrcp.f32 %v4167_v4  ;;  %v4195_v1 = vmul.f32 %v5692_v17, %v7712_v47 }
 0xd8c   : > { %v4215_v22 = vmul.f32 %v4189_v55, %v3667_v6 }
 0xd8d   : > { %4258 = vperm.xlu0 %5427, %v4216_v41   ;;  %v5694_v10 = vpop.eup %5693  ;;  %v4171_v23 = vpop.xlane.xlu1 %4170 }
 0xd8e   : > { %v3671_v61 = vpop.xlane.xlu0 %3670  ;;  %4253 = vperm.xlu1 %5428, %v4215_v22   ;;  %v4193_v32 = vmul.f32 %v5694_v10, %v7721_v15  ;;  %v5696_v27 = vpop.eup %5695 }
 0xd8f   : > { %v4197_v28 = vmul.f32 %v5696_v27, %v7728_v3 }
 0xd90   : > { %v4217_v36 = vmul.f32 %v4193_v32, %v3671_v61 }
 0xd91   : > { %v4173_v45 = vpop.xlane.xlu1 %4172 }
 0xd92   : > { %v3673_v53 = vpop.xlane.xlu0 %3672  ;;  %5701 = vrcp.f32 %v4173_v45  ;;  %4263 = vperm.xlu1 %5428, %v4217_v36  }
 0xd93   : > { %v4218_v5 = vmul.f32 %v4195_v1, %v3673_v53  ;;  %5703 = vrcp.f32 %v4171_v23 }
 0xd94   : > { %v5698_v0 = vpop.eup %5697 }
 0xd95   : > { %4268 = vperm.xlu0 %5427, %v4218_v5   ;;  %v4175_v58 = vpop.xlane.xlu1 %4174  ;;  %v4201_v15 = vmul.f32 %v5698_v0, %v7734_v48  ;;  %v5700_v8 = vpop.eup %5699 }
 0xd96   : > { %v3675_v49 = vpop.xlane.xlu0 %3674  ;;  %5705 = vrcp.f32 %v4175_v58  ;;  %v4199_v38 = vmul.f32 %v5700_v8, %v7719_v9 }
 0xd97   : > { %v4219_v56 = vmul.f32 %v4197_v28, %v3675_v49 }
 0xd99   : > { %4273 = vperm.xlu1 %5428, %v4219_v56   ;;  %v4177_v47 = vpop.xlane.xlu1 %4176 }
 0xd9a   : > { %v3679_v54 = vpop.xlane.xlu0 %3678  ;;  %5707 = vrcp.f32 %v4177_v47 }
 0xd9b   : > { %v4221_v52 = vmul.f32 %v4201_v15, %v3679_v54 }
 0xd9c   : > { %v5702_v63 = vpop.eup %5701 }
 0xd9d   : > { %4283 = vperm.xlu1 %5428, %v4221_v52   ;;  %v5704_v2 = vpop.eup %5703  ;;  %v3677_v26 = vpop.xlane.xlu1 %3676  ;;  %v4205_v3 = vmul.f32 %v5702_v63, %v7738_v42 }
 0xd9e   : > { %v3683_v43 = vpop.xlane.xlu0 %3682  ;;  %v4220_v21 = vmul.f32 %v4199_v38, %v3677_v26  ;;  %v4203_v14 = vmul.f32 %v5704_v2, %v7726_v44 }
 0xd9f   : > { %v4223_v33 = vmul.f32 %v4205_v3, %v3683_v43 }
 0xda0   : > { %4278 = vperm.xlu0 %5427, %v4220_v21   ;;  %v5706_v48 = vpop.eup %5705 }
 0xda1   : > { %v3681_v35 = vpop.xlane.xlu1 %3680  ;;  %4293 = vperm.xlu1 %5428, %v4223_v33   ;;  %v4207_v50 = vmul.f32 %v5706_v48, %v7732_v20 }
 0xda2   : > { %v4222_v4 = vmul.f32 %v4203_v14, %v3681_v35  ;;  %v3687_v62 = vpop.xlane.xlu0 %3686 }
 0xda4   : > { %v5708_v6 = vpop.eup %5707  ;;  %4288 = vperm.xlu0 %5427, %v4222_v4  }
 0xda5   : > { %v4209_v9 = vmul.f32 %v5708_v6, %v7741_v25  ;;  %v3685_v11 = vpop.xlane.xlu1 %3684 }
 0xda6   : > { %v4224_v34 = vmul.f32 %v4207_v50, %v3685_v11  ;;  %v7930_v50 = vld [vmem:[#allocation4_spill] sm:$0xff] }
 0xda7   : > { %v4225_v42 = vmul.f32 %v4209_v9, %v3687_v62 }
 0xda8   : > { %4298 = vperm.xlu0 %5427, %v4224_v34  }
 0xda9   : > { %4303 = vperm.xlu1 %5428, %v4225_v42  }
 0xdac   : > { %4346 = vperm.xlu0 %5427, %v4343_v40  }
 0xe00   : > { %v4234_v44 = vpop.permute.xlu0 %4233 }
 0xe01   : > { %v4229_v12 = vpop.permute.xlu1 %4228  ;;  %v4307_v41 = vmul.f32 %v7573_v24, %v4234_v44 }
 0xe02   : > { %v4306_v55 = vmul.f32 %v7588_v31, %v4229_v12 }
 0xe04   : > { %v4322_v20 = vadd.f32 %v4307_v41, %v4306_v55  ;;  %v4249_v10 = vpop.permute.xlu0 %4248 }
 0xe05   : > { %v4239_v17 = vpop.permute.xlu1 %4238  ;;  %v4310_v32 = vmul.f32 %v7594_v51, %v4249_v10 }
 0xe06   : > { %v4308_v22 = vmul.f32 %v7576_v7, %v4239_v17 }
 0xe08   : > { %v4323_v23 = vadd.f32 %v4322_v20, %v4308_v22 }
 0xe09   : > { %v4244_v25 = vpop.permute.xlu1 %4243 }
 0xe0a   : > { %v4309_v61 = vmul.f32 %v7582_v37, %v4244_v25 }
 0xe0c   : > { %v4324_v36 = vadd.f32 %v4323_v23, %v4309_v61  ;;  %v4259_v53 = vpop.permute.xlu0 %4258 }
 0xe0d   : > { %v4254_v1 = vpop.permute.xlu1 %4253  ;;  %v4312_v24 = vmul.f32 %v7599_v39, %v4259_v53 }
 0xe0e   : > { %v4311_v27 = vmul.f32 %v7585_v60, %v4254_v1  ;;  %v4325_v45 = vadd.f32 %v4324_v36, %v4310_v32 }
 0xe10   : > { %v4326_v31 = vadd.f32 %v4325_v45, %v4311_v27 }
 0xe11   : > { %v4264_v5 = vpop.permute.xlu1 %4263 }
 0xe12   : > { %v4313_v7 = vmul.f32 %v7614_v59, %v4264_v5  ;;  %v4327_v28 = vadd.f32 %v4326_v31, %v4312_v24 }
 0xe14   : > { %v4269_v0 = vpop.permute.xlu0 %4268  ;;  %v4328_v49 = vadd.f32 %v4327_v28, %v4313_v7 }
 0xe15   : > { %v4314_v37 = vmul.f32 %v7626_v30, %v4269_v0 }
 0xe17   : > { %v4329_v15 = vadd.f32 %v4328_v49, %v4314_v37 }
 0xe18   : > { %v4274_v58 = vpop.permute.xlu1 %4273 }
 0xe19   : > { %v4315_v51 = vmul.f32 %v7591_v18, %v4274_v58 }
 0xe1b   : > { %v4330_v60 = vadd.f32 %v4329_v15, %v4315_v51 }
 0xe1c   : > { %v4284_v56 = vpop.permute.xlu1 %4283 }
 0xe1d   : > { %v4317_v54 = vmul.f32 %v7603_v16, %v4284_v56 }
 0xe1f   : > { %v4279_v8 = vpop.permute.xlu0 %4278 }
 0xe20   : > { %v4316_v47 = vmul.f32 %v7629_v29, %v4279_v8  ;;  %v4294_v39 = vpop.permute.xlu1 %4293 }
 0xe21   : > { %v4319_v2 = vmul.f32 %v7634_v13, %v4294_v39  ;;  %v7931_v13 = vsub.s32 0, %v7930_v50 }
 0xe22   : > { %v4331_v52 = vadd.f32 %v4330_v60, %v4316_v47 }
 0xe23   : > { %v4289_v63 = vpop.permute.xlu0 %4288 }
 0xe24   : > { %v4332_v59 = vadd.f32 %v4331_v52, %v4317_v54  ;;  %v4318_v38 = vmul.f32 %v7618_v57, %v4289_v63 }
 0xe26   : > { %v4333_v26 = vadd.f32 %v4332_v59, %v4318_v38 }
 0xe27   : > { %v4299_v30 = vpop.permute.xlu0 %4298 }
 0xe28   : > { %v4334_v3 = vadd.f32 %v4333_v26, %v4319_v2  ;;  %v4320_v18 = vmul.f32 %v7646_v19, %v4299_v30  ;;  %v4304_v43 = vpop.permute.xlu1 %4303 }
 0xe29   : > { %v4321_v21 = vmul.f32 %v7642_v46, %v4304_v43 }
 0xe2a   : > { %v4335_v33 = vadd.f32 %v4334_v3, %v4320_v18 }
 0xe2b   : > { %v4347_v4 = vpop.permute.xlu0 %4346 }
 0xe2c   : > { %v4336_v29 = vadd.f32 %v4335_v33, %v4321_v21  ;;  %v4352_v9 = vrot.slane %v4347_v4, %v7931_v13 }
 0xe2e   : > { %v4337_v16 = vrot.slane %v4336_v29, 4 }
 0xe30   : > { %v4338_v14 = vadd.f32 %v4337_v16, %v4336_v29 }
 0xe32   : > { %v4339_v48 = vrot.slane %v4338_v14, 2 }
 0xe34   : > { %v4340_v35 = vadd.f32 %v4339_v48, %v4338_v14 }
 0xe36   : > { %v4341_v6 = vrot.slane %v4340_v35, 1 }
 0xe38   : > { %v4342_v57 = vadd.f32 %v4341_v6, %v4340_v35 }
 0xe3a   : > { %v4353_v11 = vadd.f32 %v4352_v9, %v4342_v57 }
 0xe3c   : > { %v4813_v62 = vmul.f32 -1.442695, %v4353_v11 }
 0xe3e   : > { %5709 = vpow2.f32 %v4813_v62 }
 0xe48   : > { %v5710_v19 = vpop.eup %5709 }
 0xe49   : > { %v4357_v34 = vadd.f32 1.0, %v5710_v19 }
 0xe4b   : > { %5711 = vrcp.f32 %v4357_v34 }
 0xe55   : > { %v5712_v46 = vpop.eup %5711 }
 0xe56   : > { %4360 = vst [vmem:[%s531_s28] sm:$0x1] %v5712_v46 }
 0xe57 PF: > { %s29_s22 = sadd.s32 1, %s5737_s22  }
 0xe58   : > { %p26_p4 = scmp.ge.s32.totalorder %s29_s22, 4  }
 0xe5a   :  { %28 = sbr.rel (!%p26_p4) target bundleno = 3 (0x3), region = 116 }

</bundles_post_ra>
